<compile_context>
chip_gen: v6e
topology: v6e:2x2x1
jax: 0.10.0
libtpu: 0.0.40
codegen_flags: <defaults>
</compile_context>

<pallas_src>
import functools
import math

import jax
import jax.numpy as jnp
from jax.experimental import pallas as pl
from jax.experimental.pallas import tpu as pltpu


_SQRT_2_OVER_PI = math.sqrt(2.0 / math.pi)


def _gelu(x):
    # Matches the reference GELU (tanh approximation); dtype-polymorphic.
    return 0.5 * x * (1.0 + jnp.tanh(_SQRT_2_OVER_PI * (x + 0.044715 * x * x * x)))


def _round_up(v, m):
    return (v + m - 1) // m * m


def _default_gelu_dtype():
    # v5e has no bf16 VPU/EUP -> keep GELU math in f32 there.  v6e/v7x get
    # 2x-packed bf16 vector math and half the VMEM temp.
    try:
        kind = jax.devices()[0].device_kind.lower()
    except Exception:
        return jnp.bfloat16
    if ("v5e" in kind) or ("v5 lite" in kind) or ("v5lite" in kind):
        return jnp.float32
    return jnp.bfloat16


# ----------------------------------------------------------------------------
# Kernel: fused linear -> GELU -> linear -> residual -> LayerNorm on a row tile
# ----------------------------------------------------------------------------

def _ffn_kernel(x_ref, w1_ref, b1_ref, w2_ref, b2_ref, g_ref, beta_ref,
                o_ref, *, eps, gelu_dtype):
    x = x_ref[...]                                          # (TM, D), native dtype

    # Linear 1: bf16 operands, f32 MXU accumulation; bias folded in f32.
    h = jnp.dot(x.astype(jnp.bfloat16), w1_ref[...],
                preferred_element_type=jnp.float32) + b1_ref[...]

    # GELU in bf16 on v6e/v7x (f32 on v5e); result fed straight to matmul2.
    h = _gelu(h.astype(gelu_dtype)).astype(jnp.bfloat16)    # (TM, d_ff)

    # Linear 2: bf16 operands, f32 accumulation.
    o = jnp.dot(h, w2_ref[...],
                preferred_element_type=jnp.float32) + b2_ref[...]

    # Residual + LayerNorm in f32 (numerically sensitive path).
    o = o + x.astype(jnp.float32)
    mean = jnp.mean(o, axis=-1, keepdims=True)
    cen = o - mean
    var = jnp.mean(cen * cen, axis=-1, keepdims=True)
    out = (cen * jax.lax.rsqrt(var + eps)) * g_ref[...] + beta_ref[...]
    o_ref[...] = out.astype(o_ref.dtype)


# ----------------------------------------------------------------------------
# Wrapper
# ----------------------------------------------------------------------------

def poswise_ffn(x, params, *, block_m=512, eps=1e-5, gelu_dtype=None):
    """Position-wise FFN.  x: (..., d_model), f32 or bf16; output matches x.dtype."""
    orig_shape = x.shape
    d_model = orig_shape[-1]
    d_ff = params["w1"].shape[1]
    out_dtype = x.dtype

    if gelu_dtype is None:
        gelu_dtype = _default_gelu_dtype()

    # Flatten all leading dims into one token axis; NO dtype cast, NO padding.
    xf = x.reshape(-1, d_model)
    m = xf.shape[0]

    # Tile sizing: keep the tile a multiple of 8 rows; ensure >= 2 tiles when
    # possible so v7x's two TensorCores both get work ("parallel" grid axis).
    block_m = min(block_m, _round_up(m, 8))
    if m > 8 and pl.cdiv(m, block_m) < 2:
        block_m = _round_up(pl.cdiv(m, 2), 8)
    num_blocks = pl.cdiv(m, block_m)   # edge block (if any) is masked by Pallas

    # Weights cast once to bf16 (halves HBM/VMEM traffic); small params in f32.
    w1 = params["w1"].astype(jnp.bfloat16)                  # (d_model, d_ff)
    w2 = params["w2"].astype(jnp.bfloat16)                  # (d_ff, d_model)
    b1 = params["b1"].reshape(1, d_ff).astype(jnp.float32)
    b2 = params["b2"].reshape(1, d_model).astype(jnp.float32)
    gamma = params["gamma"].reshape(1, d_model).astype(jnp.float32)
    beta = params["beta"].reshape(1, d_model).astype(jnp.float32)

    # Resident full-array blocks: constant block index across the grid and
    # single-buffered (fetched once -> no need for a double buffer).
    def resident(arr):
        return pl.BlockSpec(arr.shape, lambda i: (0, 0),
                            pipeline_mode=pl.Buffered(1))

    # Explicit scoped-VMEM budget for this tiling (+2x headroom), capped at
    # v7x's 64 MiB physical VMEM, instead of the 16/32 MiB scoped defaults.
    vmem_bytes = (
        2 * block_m * d_model * xf.dtype.itemsize                 # x tiles (dbl-buf)
        + 2 * block_m * d_model * jnp.dtype(out_dtype).itemsize   # out tiles (dbl-buf)
        + 2 * d_model * d_ff * 2                                  # w1 + w2 (bf16, 1-buf)
        + (d_ff + 3 * d_model) * 4                                # biases + LN params
        + block_m * d_ff * (4 + jnp.dtype(gelu_dtype).itemsize + 2)  # mm1 acc + gelu + bf16 h
        + 4 * block_m * d_model * 4                               # f32 residual/LN temps
    )
    vmem_limit = int(min(max(2 * vmem_bytes, 16 * 1024 * 1024),
                         64 * 1024 * 1024))

    out = pl.pallas_call(
        functools.partial(_ffn_kernel, eps=eps, gelu_dtype=gelu_dtype),
        grid=(num_blocks,),
        in_specs=[
            pl.BlockSpec((block_m, d_model), lambda i: (i, 0)),   # x tile
            resident(w1), resident(b1),
            resident(w2), resident(b2),
            resident(gamma), resident(beta),
        ],
        out_specs=pl.BlockSpec((block_m, d_model), lambda i: (i, 0)),
        out_shape=jax.ShapeDtypeStruct((m, d_model), out_dtype),
        compiler_params=pltpu.CompilerParams(
            dimension_semantics=("parallel",),
            vmem_limit_bytes=vmem_limit),
    )(xf, w1, b1, w2, b2, gamma, beta)

    return out.reshape(orig_shape)


# ----------------------------------------------------------------------------
# Pure-JAX reference (f32) for a sanity check
# ----------------------------------------------------------------------------

def poswise_ffn_ref(x, params, eps=1e-5):
    x = x.astype(jnp.float32)
    h = _gelu(x @ params["w1"] + params["b1"])
    o = h @ params["w2"] + params["b2"] + x
    mean = jnp.mean(o, axis=-1, keepdims=True)
    var = jnp.mean((o - mean) ** 2, axis=-1, keepdims=True)
    return (o - mean) * jax.lax.rsqrt(var + eps) * params["gamma"] + params["beta"]


# ----------------------------------------------------------------------------
# Demo
# ----------------------------------------------------------------------------

if __name__ == "__main__":
    d_model = 128      # lane-dense model dim (multiple of 128)
    d_ff = 512         # lane-dense hidden dim
    B, L = 4, 128      # 512 tokens -> 2 grid tiles of 256 rows (auto-sized)

    key = jax.random.PRNGKey(0)
    k1, k2, k3, k4, kx = jax.random.split(key, 5)

    # Weights stored as (in_features, out_features): y = x @ W + b
    # (transpose of torch.nn.Linear's weight layout).
    params = dict(
        w1=jax.random.normal(k1, (d_model, d_ff), jnp.float32) * 0.02,
        b1=jax.random.normal(k2, (d_ff,), jnp.float32) * 0.02,
        w2=jax.random.normal(k3, (d_ff, d_model), jnp.float32) * 0.02,
        b2=jax.random.normal(k4, (d_model,), jnp.float32) * 0.02,
        gamma=jnp.ones((d_model,), jnp.float32),
        beta=jnp.zeros((d_model,), jnp.float32),
    )

    x = jax.random.normal(kx, (B, L, d_model), jnp.float32)

    # f32 activation path.
    fwd = jax.jit(lambda inp: poswise_ffn(inp, params))
    out = fwd(x)
    jax.block_until_ready(out)

    ref = poswise_ffn_ref(x, params)
    assert out.shape == x.shape and out.dtype == x.dtype
    assert bool(jnp.all(jnp.isfinite(out.astype(jnp.float32))))
    max_err = float(jnp.max(jnp.abs(out.astype(jnp.float32) - ref)))
    # bf16 matmul operands / bf16 GELU with f32 accumulation + f32 LN.
    assert max_err < 5e-2, f"max abs error vs f32 reference: {max_err}"

    # bf16 activation-I/O path (no wrapper cast/pad passes; bf16 in, bf16 out).
    x_bf16 = x.astype(jnp.bfloat16)
    fwd_bf16 = jax.jit(lambda inp: poswise_ffn(inp, params))
    out_bf16 = fwd_bf16(x_bf16)
    jax.block_until_ready(out_bf16)
    assert out_bf16.shape == x.shape and out_bf16.dtype == jnp.bfloat16
    ref_bf16 = poswise_ffn_ref(x_bf16, params)
    max_err_bf16 = float(jnp.max(jnp.abs(out_bf16.astype(jnp.float32) - ref_bf16)))
    assert max_err_bf16 < 2e-1, f"bf16 path max abs error: {max_err_bf16}"

    print("KERNEL_OK")
</pallas_src>

<mosaic_0001>
module attributes {stable_mosaic.version = 11 : i64} {
  func.func @_ffn_kernel(%arg0: i32, %arg1: memref<256x128xf32, #tpu.memory_space<vmem>>, %arg2: memref<128x512xbf16, #tpu.memory_space<vmem>>, %arg3: memref<1x512xf32, #tpu.memory_space<vmem>>, %arg4: memref<512x128xbf16, #tpu.memory_space<vmem>>, %arg5: memref<1x128xf32, #tpu.memory_space<vmem>>, %arg6: memref<1x128xf32, #tpu.memory_space<vmem>>, %arg7: memref<1x128xf32, #tpu.memory_space<vmem>>, %arg8: memref<256x128xf32, #tpu.memory_space<vmem>>) attributes {dimension_semantics = [#tpu.dimension_semantics<parallel>], iteration_bounds = array<i64: 2>, scalar_prefetch = 0 : i64, scratch_operands = 0 : i64, tpu.core_type = #tpu.core_type<tc>, window_params = [{transform_indices = @transform_0, window_bounds = array<i64: 256, 128>}, {pipeline_mode = #tpu.pipeline_mode<synchronous>, transform_indices = @transform_1, window_bounds = array<i64: 128, 512>}, {pipeline_mode = #tpu.pipeline_mode<synchronous>, transform_indices = @transform_2, window_bounds = array<i64: 1, 512>}, {pipeline_mode = #tpu.pipeline_mode<synchronous>, transform_indices = @transform_3, window_bounds = array<i64: 512, 128>}, {pipeline_mode = #tpu.pipeline_mode<synchronous>, transform_indices = @transform_4, window_bounds = array<i64: 1, 128>}, {pipeline_mode = #tpu.pipeline_mode<synchronous>, transform_indices = @transform_5, window_bounds = array<i64: 1, 128>}, {pipeline_mode = #tpu.pipeline_mode<synchronous>, transform_indices = @transform_6, window_bounds = array<i64: 1, 128>}, {transform_indices = @transform_7, window_bounds = array<i64: 256, 128>}]} {
    %c0 = arith.constant 0 : index
    %c0_0 = arith.constant 0 : index
    %0 = vector.load %arg1[%c0, %c0_0] : memref<256x128xf32, #tpu.memory_space<vmem>>, vector<256x128xf32>
    %1 = arith.truncf %0 : vector<256x128xf32> to vector<256x128xbf16>
    %c0_1 = arith.constant 0 : index
    %c0_2 = arith.constant 0 : index
    %2 = vector.load %arg2[%c0_1, %c0_2] : memref<128x512xbf16, #tpu.memory_space<vmem>>, vector<128x512xbf16>
    %cst = arith.constant dense<0.000000e+00> : vector<256x512xf32>
    %3 = tpu.matmul %1, %2, %cst {dimension_numbers = #tpu.dot_dimension_numbers<[1], [0], [0], [1], [0, 0, 1, 1], [], []>} : vector<256x128xbf16>, vector<128x512xbf16>, vector<256x512xf32> -> vector<256x512xf32>
    %c0_3 = arith.constant 0 : index
    %c0_4 = arith.constant 0 : index
    %4 = vector.load %arg3[%c0_3, %c0_4] : memref<1x512xf32, #tpu.memory_space<vmem>>, vector<1x512xf32>
    %5 = vector.broadcast %4 : vector<1x512xf32> to vector<256x512xf32>
    %6 = arith.addf %3, %5 : vector<256x512xf32>
    %7 = arith.truncf %6 : vector<256x512xf32> to vector<256x512xbf16>
    %cst_5 = arith.constant 5.000000e-01 : bf16
    %8 = vector.broadcast %cst_5 : bf16 to vector<256x512xbf16>
    %9 = arith.mulf %8, %7 : vector<256x512xbf16>
    %cst_6 = arith.constant 4.467770e-02 : bf16
    %10 = vector.broadcast %cst_6 : bf16 to vector<256x512xbf16>
    %11 = arith.mulf %10, %7 : vector<256x512xbf16>
    %12 = arith.mulf %11, %7 : vector<256x512xbf16>
    %13 = arith.mulf %12, %7 : vector<256x512xbf16>
    %14 = arith.addf %7, %13 : vector<256x512xbf16>
    %cst_7 = arith.constant 7.968750e-01 : bf16
    %15 = vector.broadcast %cst_7 : bf16 to vector<256x512xbf16>
    %16 = arith.mulf %15, %14 : vector<256x512xbf16>
    %17 = math.tanh %16 : vector<256x512xbf16>
    %cst_8 = arith.constant 1.000000e+00 : bf16
    %18 = vector.broadcast %cst_8 : bf16 to vector<256x512xbf16>
    %19 = arith.addf %18, %17 : vector<256x512xbf16>
    %20 = arith.mulf %9, %19 : vector<256x512xbf16>
    %c0_9 = arith.constant 0 : index
    %c0_10 = arith.constant 0 : index
    %21 = vector.load %arg4[%c0_9, %c0_10] : memref<512x128xbf16, #tpu.memory_space<vmem>>, vector<512x128xbf16>
    %cst_11 = arith.constant dense<0.000000e+00> : vector<256x128xf32>
    %22 = tpu.matmul %20, %21, %cst_11 {dimension_numbers = #tpu.dot_dimension_numbers<[1], [0], [0], [1], [0, 0, 1, 1], [], []>} : vector<256x512xbf16>, vector<512x128xbf16>, vector<256x128xf32> -> vector<256x128xf32>
    %c0_12 = arith.constant 0 : index
    %c0_13 = arith.constant 0 : index
    %23 = vector.load %arg5[%c0_12, %c0_13] : memref<1x128xf32, #tpu.memory_space<vmem>>, vector<1x128xf32>
    %24 = vector.broadcast %23 : vector<1x128xf32> to vector<256x128xf32>
    %25 = arith.addf %22, %24 : vector<256x128xf32>
    %26 = arith.addf %25, %0 : vector<256x128xf32>
    %cst_14 = arith.constant dense<0.000000e+00> : vector<256xf32>
    %27 = vector.multi_reduction <add>, %26, %cst_14 [1] : vector<256x128xf32> to vector<256xf32>
    %28 = vector.shape_cast %27 : vector<256xf32> to vector<256x1xf32>
    %cst_15 = arith.constant 1.280000e+02 : f32
    %29 = vector.broadcast %cst_15 : f32 to vector<256x1xf32>
    %30 = arith.divf %28, %29 : vector<256x1xf32>
    %31 = vector.broadcast %30 : vector<256x1xf32> to vector<256x128xf32>
    %32 = arith.subf %26, %31 : vector<256x128xf32>
    %33 = arith.mulf %32, %32 : vector<256x128xf32>
    %cst_16 = arith.constant dense<0.000000e+00> : vector<256xf32>
    %34 = vector.multi_reduction <add>, %33, %cst_16 [1] : vector<256x128xf32> to vector<256xf32>
    %35 = vector.shape_cast %34 : vector<256xf32> to vector<256x1xf32>
    %cst_17 = arith.constant 1.280000e+02 : f32
    %36 = vector.broadcast %cst_17 : f32 to vector<256x1xf32>
    %37 = arith.divf %35, %36 : vector<256x1xf32>
    %cst_18 = arith.constant 9.99999974E-6 : f32
    %38 = vector.broadcast %cst_18 : f32 to vector<256x1xf32>
    %39 = arith.addf %37, %38 : vector<256x1xf32>
    %40 = math.rsqrt %39 : vector<256x1xf32>
    %41 = vector.broadcast %40 : vector<256x1xf32> to vector<256x128xf32>
    %42 = arith.mulf %32, %41 : vector<256x128xf32>
    %c0_19 = arith.constant 0 : index
    %c0_20 = arith.constant 0 : index
    %43 = vector.load %arg6[%c0_19, %c0_20] : memref<1x128xf32, #tpu.memory_space<vmem>>, vector<1x128xf32>
    %44 = vector.broadcast %43 : vector<1x128xf32> to vector<256x128xf32>
    %45 = arith.mulf %42, %44 : vector<256x128xf32>
    %c0_21 = arith.constant 0 : index
    %c0_22 = arith.constant 0 : index
    %46 = vector.load %arg7[%c0_21, %c0_22] : memref<1x128xf32, #tpu.memory_space<vmem>>, vector<1x128xf32>
    %47 = vector.broadcast %46 : vector<1x128xf32> to vector<256x128xf32>
    %48 = arith.addf %45, %47 : vector<256x128xf32>
    %c0_23 = arith.constant 0 : index
    %c0_24 = arith.constant 0 : index
    %49 = vector.load %arg8[%c0_23, %c0_24] : memref<256x128xf32, #tpu.memory_space<vmem>>, vector<256x128xf32>
    tpu.vector_store %arg8[%c0_23, %c0_24], %48 {strides = array<i32>} : memref<256x128xf32, #tpu.memory_space<vmem>>, vector<256x128xf32>,
    return
  }
  func.func @transform_0(%arg0: i32) -> (i32, i32) {
    %c0_i32 = arith.constant 0 : i32
    %c0_i32_0 = arith.constant 0 : i32
    return %arg0, %c0_i32 : i32, i32
  }
  func.func @transform_1(%arg0: i32) -> (i32, i32) {
    %c0_i32 = arith.constant 0 : i32
    %c0_i32_0 = arith.constant 0 : i32
    %c0_i32_1 = arith.constant 0 : i32
    return %c0_i32, %c0_i32_0 : i32, i32
  }
  func.func @transform_2(%arg0: i32) -> (i32, i32) {
    %c0_i32 = arith.constant 0 : i32
    %c0_i32_0 = arith.constant 0 : i32
    %c0_i32_1 = arith.constant 0 : i32
    return %c0_i32, %c0_i32_0 : i32, i32
  }
  func.func @transform_3(%arg0: i32) -> (i32, i32) {
    %c0_i32 = arith.constant 0 : i32
    %c0_i32_0 = arith.constant 0 : i32
    %c0_i32_1 = arith.constant 0 : i32
    return %c0_i32, %c0_i32_0 : i32, i32
  }
  func.func @transform_4(%arg0: i32) -> (i32, i32) {
    %c0_i32 = arith.constant 0 : i32
    %c0_i32_0 = arith.constant 0 : i32
    %c0_i32_1 = arith.constant 0 : i32
    return %c0_i32, %c0_i32_0 : i32, i32
  }
  func.func @transform_5(%arg0: i32) -> (i32, i32) {
    %c0_i32 = arith.constant 0 : i32
    %c0_i32_0 = arith.constant 0 : i32
    %c0_i32_1 = arith.constant 0 : i32
    return %c0_i32, %c0_i32_0 : i32, i32
  }
  func.func @transform_6(%arg0: i32) -> (i32, i32) {
    %c0_i32 = arith.constant 0 : i32
    %c0_i32_0 = arith.constant 0 : i32
    %c0_i32_1 = arith.constant 0 : i32
    return %c0_i32, %c0_i32_0 : i32, i32
  }
  func.func @transform_7(%arg0: i32) -> (i32, i32) {
    %c0_i32 = arith.constant 0 : i32
    %c0_i32_0 = arith.constant 0 : i32
    return %arg0, %c0_i32 : i32, i32
  }
}

</mosaic_0001>

<bundles_post_ra>
// kernel: _lambda_.1
= control target key start
LH: loop header
LB: loop body
LE: loop exit
PB: predicated region body
PF: predicated region fallthrough
CT: control target
= control target key end

     0   :  { %s5280_s0 = inlined_call_operand.hbm [shape: f32[512,128], index: 0, kind: input, shape index: {}]   ;;  %s5281_s1 = inlined_call_operand.hbm [shape: bf16[128,512], index: 1, kind: input, shape index: {}]   ;;  %s5282_s2 = inlined_call_operand.vmem [shape: f32[1,512], index: 2, kind: input, shape index: {}]   ;;  %s5283_s3 = inlined_call_operand.hbm [shape: bf16[512,128], index: 3, kind: input, shape index: {}]   ;;  %s5284_s4 = inlined_call_operand.vmem [shape: f32[1,128], index: 4, kind: input, shape index: {}]   ;;  %s5285_s5 = inlined_call_operand.vmem [shape: f32[1,128], index: 5, kind: input, shape index: {}]   ;;  %s5286_s6 = inlined_call_operand.vmem [shape: f32[1,128], index: 6, kind: input, shape index: {}]   ;;  %s5287_s7 = inlined_call_operand.hbm [shape: f32[512,128], index: 7, kind: output, shape index: {}]  }
   0x1   :  { %5292 = sst [smem:[#allocation12_spill]] %s5281_s1 }
   0x2   :  { %12 = vsyncpa [#allocation3], 0 }
   0x3   :  { %14 = vsyncpa [#allocation3 + $0x1], 0 }
   0x4   :  { %15 = vsyncpa [#allocation6], 0 }
   0x5   :  { %16 = vsyncpa [#allocation4], 0 }
   0x6   :  { %18 = vsyncpa [#allocation4 + $0x1], 0  ;;  %s3701_s24 = smov 0   ;;  %s3703_s25 = smov 0  }
   0x7   :  { %s3705_s26 = smov 0   ;;  %s3707_s27 = smov 0  }
   0x8 LB: > { %s3722_s28 = sadd.s32 4294967295, %s3646_s27   ;;  %s2807_s29 = sadd.s32 4294967294, %s3646_s27   ;;  %s3646_s27 = sphi %s3707_s27, %s5341_s27   ;;  %s3642_s26 = sphi %s3705_s26, %s5340_s26   ;;  %s3638_s25 = sphi %s3703_s25, %s5339_s25   ;;  %s3634_s24 = sphi %s3701_s24, %s5338_s24  }
   0x9   : > { %p44_p0 = scmp.ne.s32.totalorder %s3638_s25, %s3634_s24  ;;  %p5288_p1 = scmp.eq.s32.totalorder %s3722_s28, 0 }
   0xa   : > { %p200_p3 = scmp.eq.s32.totalorder %s2807_s29, 1  ;;  %p2808_p5 = scmp.ge.s32.totalorder %s3646_s27, 1 }
   0xb   : > { %p3731_p4 = por %p5288_p1, %p44_p0  ;;  %p207_p7 = scmp.lt.s32.totalorder %s3646_s27, 3 }
   0xc   : > { %p3736_p6 = por %p200_p3, %p44_p0  ;;  %s3648_s10 = smov [#allocation5]  }
   0xd   : > { %s5293_s30 = scalar_select %p3731_p4, 1, 0 }
   0xe   : > { %s5294_s8 = scalar_select %p3736_p6, 1, 0 }
   0xf   : > { %p3741_p8 = pnand %p2808_p5, %p207_p7  ;;  %s219_s11 = sshll.u32 %s3648_s10, 4  ;;  %s220_s11 = int_to_ptr.vmem [resolvable:$true] %s219_s11 }
  0x10   : > { %s3649_s13 = smov [#allocation7]   ;;  %s3509_s15 = scalar_lea.vmem %s220_s11, 4096 }
  0x11   : > { %s5295_s9 = scalar_select %p3741_p8, 1, 0 }
  0x12   : > { %p3130_p9 = pneg %p3741_p8  ;;  %s235_s14 = sshll.u32 %s3649_s13, 4  ;;  %s236_s14 = int_to_ptr.vmem [resolvable:$true] %s235_s14 }
  0x13   : > { %p3510_p13 = scmp.ne.s32.totalorder %s220_s11, %s3509_s15  ;;  %p3517_p5 = scmp.lt.s32.totalorder %s220_s11, %s220_s11 }
  0x14   : > { %p3750_p11 = pnand %p3130_p9, %p5288_p1  ;;  %p3518_p7 = scmp.lt.s32.totalorder %s3509_s15, %s3509_s15 }
  0x16   : > { %p3500_p12 = pneg %p3750_p11  ;;  %p3519_p10 = por %p3518_p7, %p3517_p5 }
  0x18   : > { %p3512_p0 = pnand %p3510_p13, %p3500_p12 }
  0x1a   : > { %p3513_p3 = pneg %p3512_p0 }
  0x1c   : > { %p3520_p9 = pnand %p3519_p10, %p3513_p3 }
  0x1e   : > { %3523 = shalt.err (!%p3520_p9)
}
  0x1f   : > { %s3650_s16 = smov 256   ;;  %s3651_s17 = smov 16  }
  0x20   : > { %s5297_s1 = sld [smem:[#allocation12_spill]]  ;;  %s3535_s20 = scalar_lea.vmem %s236_s14, 4096 }
  0x21   : > { %p3536_p1 = scmp.ne.s32.totalorder %s236_s14, %s3535_s20  ;;  %p3543_p2 = scmp.lt.s32.totalorder %s236_s14, %s236_s14 }
  0x22   : > { %p3544_p6 = scmp.lt.s32.totalorder %s3535_s20, %s3535_s20 }
  0x23   : > { %p3538_p13 = pnand %p3536_p1, %p3500_p12 }
  0x24   : > { %p3545_p5 = por %p3544_p6, %p3543_p2 }
  0x25   : > { %p3539_p0 = pneg %p3538_p13 }
  0x26   : > { %3133 = dma.hbm_to_vmem [thread:$0]  (!%p3750_p11), %s5297_s1, 4096, %s220_s11, [#allocation6], %s3650_s16, %s3650_s16, %s3651_s17  }
  0x27   : > { %p3546_p10 = pnand %p3545_p5, %p3539_p0 }
  0x29   : > { %3549 = shalt.err (!%p3546_p10)
}
  0x2a   : > { %s3652_s21 = smov 64   ;;  %s3653_s22 = smov 4  }
  0x2b   : > { %3136 = dma.hbm_to_vmem [thread:$0]  (!%p3750_p11), %s5283_s3, 4096, %s236_s14, [#allocation6], %s3652_s21, %s3652_s21, %s3653_s22  }
  0x2c   : > { %s3773_s10 = sadd.s32 1, %s3646_s27   ;;  %s31_s13 = sadd.s32 1, %s3642_s26 }
  0x2d   : > { %s28_s11 = ssub.s32 %s3646_s27, %s3773_s10  ;;  %p38_p2 = scmp.ne.s32.totalorder %s3642_s26, %s3638_s25 }
  0x2e   : > { %p29_p1 = scmp.eq.s32.totalorder %s28_s11, 0  ;;  %p39_p6 = scmp.eq.s32.totalorder %s3646_s27, 0 }
  0x2f   : > { %p5298_p3 = scmp.eq.s32.totalorder %s3722_s28, 1  ;;  %p3147_p9 = scmp.lt.s32.totalorder %s3646_s27, 2 }
  0x30   : > { %s3782_s15 = scalar_select %p29_p1, %s3642_s26, %s31_s13  }
  0x31   : > { %p40_p12 = por %p39_p6, %p38_p2  ;;  %p3786_p7 = por %p5298_p3, %p38_p2 }
  0x32   : > { %s258_s12 = sand.u32 1, %s3642_s26   ;;  %s2892_s14 = sshll.u32 %s3646_s27, 12 }
  0x33   : > { %s5299_s16 = scalar_select %p3786_p7, 1, 0 }
  0x34   : > { %s2812_s17 = sshll.u32 %s258_s12, 8  ;;  %s3796_s20 = scalar_lea.hbm %s5280_s0, %s2892_s14 }
  0x35   : > { %s262_s21 = scalar_lea.vmem [#allocation2], %s2812_s17  ;;  %p3800_p11 = pnand %p3147_p9, %p40_p12 }
  0x36   : > { %s269_s22 = sshll.u32 %s262_s21, 4  ;;  %s3804_s29 = scalar_lea.sflag [#allocation3], %s258_s12  ;;  %s3798_s22 = int_to_ptr.vmem [resolvable:$true] %s269_s22 }
  0x37   : > { %s3550_s11 = scalar_lea.hbm %s3796_s20, 4096  ;;  %p3552_p0 = pneg %p3800_p11 }
  0x38   : > { %p3551_p13 = scmp.ne.s32.totalorder %s3796_s20, %s3550_s11  ;;  %s3555_s17 = scalar_lea.hbm %s5280_s0, 8192 }
  0x39   : > { %p3556_p1 = scmp.lt.s32.totalorder %s3796_s20, %s5280_s0  ;;  %p3557_p2 = scmp.lt.s32.totalorder %s3555_s17, %s3550_s11 }
  0x3a   : > { %p3553_p5 = pnand %p3552_p0, %p3551_p13 }
  0x3b   : > { %p3558_p6 = por %p3557_p2, %p3556_p1 }
  0x3c   : > { %p3554_p10 = pneg %p3553_p5 }
  0x3e   : > { %p3559_p12 = pnand %p3558_p6, %p3554_p10 }
  0x40   : > { %3562 = shalt.err (!%p3559_p12)
}
  0x41   : > { %s3563_s12 = scalar_lea.vmem %s3798_s22, 4096  ;;  %s3654_s21 = smov [#allocation2]  }
  0x42   : > { %p3564_p3 = scmp.ne.s32.totalorder %s3798_s22, %s3563_s12  ;;  %s3568_s1 = sshll.u32 %s3654_s21, 4  ;;  %s3569_s1 = int_to_ptr.vmem [resolvable:$false] %s3568_s1 }
  0x43   : > { %s3570_s13 = scalar_lea.vmem %s3569_s1, 8192  ;;  %p3571_p5 = scmp.lt.s32.totalorder %s3798_s22, %s3569_s1 }
  0x44   : > { %p3566_p9 = pnand %p3564_p3, %p3552_p0  ;;  %p3572_p7 = scmp.lt.s32.totalorder %s3570_s13, %s3563_s12 }
  0x46   : > { %p3567_p13 = pneg %p3566_p9  ;;  %p3573_p4 = por %p3572_p7, %p3571_p5 }
  0x48   : > { %p3574_p8 = pnand %p3573_p4, %p3567_p13 }
  0x4a   : > { %3577 = shalt.err (!%p3574_p8)
}
  0x4b   : > { %s3655_s11 = smov 128   ;;  %s3656_s14 = smov 8  }
  0x4c   : > { %3140 = dma.hbm_to_vmem [thread:$0]  (!%p3800_p11), %s3796_s20, 4096, %s3798_s22, %s3804_s29, %s3655_s11, %s3655_s11, %s3656_s14  }
  0x4d   : > { %p5301_p0 = scmp.ne.s32.totalorder %s5295_s9, 0 }
  0x4e   : > { %s3828_s17 = sand.u32 (!%p5301_p0), 1, %s3638_s25   ;;  %p5302_p4 = scmp.ne.s32.totalorder (!%p5301_p0), %s5293_s30, 0 }
  0x4f   : > { %281 = sbr.rel (%p5301_p0) target bundleno = 1060 (0x424), region = 48  ;;  %s2816_s1 = sshll.u32 (!%p5301_p0), %s3828_s17, 8 }
  0x50   : > { %s284_s18 = scalar_lea.sflag (!%p5301_p0), [#allocation3], %s3828_s17  ;;  %s3834_s19 = scalar_lea.vmem (!%p5301_p0), [#allocation2], %s2816_s1 }
  0x54   : > { %3621 = dma.done.wait (%p5302_p4), %s284_s18, 4096  }
  0x55   : > { %3623 = vsyncadd (%p5302_p4), %s284_s18, 4294963200  ;;  %p5303_p8 = scmp.eq.s32.totalorder %s3722_s28, 0 }
  0x57   : > { %3625 = dma.done.wait (%p5303_p8), [#allocation6], 8192   ;;  %p5304_p7 = pmov %p5303_p8 }
  0x58   : > { %v3657_v0 = vmov 0   ;;  %v3194_v1 = vld [vmem:[#allocation5 + $0xe4] ss:$16 sps:$4 sm:$0xff]   ;;  %v3196_v2 = vld [vmem:[#allocation5 + $0xec] ss:$16 sps:$4 sm:$0xff]   ;;  %s5105_s13 = scalar_lea.vmem [#allocation8], %s2816_s1 }
  0x59   : > { %3627 = vsyncadd (%p5304_p7), [#allocation6], 4294959104  ;;  %627 = vmatprep.mubr.bf16.mxu0 %v3657_v0  ;;  %820 = vmatprep.mubr.bf16.mxu1 %v3657_v0  ;;  %v3198_v3 = vld [vmem:[#allocation5 + $0xe0] ss:$16 sps:$4 sm:$0xff]   ;;  %v3199_v4 = vld [vmem:[#allocation5 + $0xe8] ss:$16 sps:$4 sm:$0xff]  }
  0x5a   : > { %595 = vmatprep.subr.bf16.mxu0 %v3194_v1  ;;  %788 = vmatprep.subr.bf16.mxu1 %v3196_v2  ;;  %v3200_v5 = vld [vmem:[#allocation5 + $0xc4] ss:$16 sps:$4 sm:$0xff]   ;;  %v3202_v6 = vld [vmem:[#allocation5 + $0xcc] ss:$16 sps:$4 sm:$0xff]   ;;  %v3204_v7 = vld [vmem:[#allocation5 + $0xc0] ss:$16 sps:$4 sm:$0xff]  }
  0x5b   : > { %596 = vmatpush1.bf16.msra.mxu0 %v3198_v3  ;;  %789 = vmatpush1.bf16.msra.mxu1 %v3199_v4  ;;  %v3205_v8 = vld [vmem:[#allocation5 + $0xc8] ss:$16 sps:$4 sm:$0xff]   ;;  %v3206_v9 = vld [vmem:[#allocation5 + $0xa4] ss:$16 sps:$4 sm:$0xff]   ;;  %v3208_v10 = vld [vmem:[#allocation5 + $0xac] ss:$16 sps:$4 sm:$0xff]  }
  0x5c   : > { %597 = vmatprep.subr.bf16.mxu0 %v3200_v5  ;;  %790 = vmatprep.subr.bf16.mxu1 %v3202_v6  ;;  %v3210_v11 = vld [vmem:[#allocation5 + $0xa0] ss:$16 sps:$4 sm:$0xff]   ;;  %v3211_v12 = vld [vmem:[#allocation5 + $0xa8] ss:$16 sps:$4 sm:$0xff]   ;;  %v3212_v13 = vld [vmem:[#allocation5 + $0x84] ss:$16 sps:$4 sm:$0xff]  }
  0x5d   : > { %v3214_v14 = vld [vmem:[#allocation5 + $0x8c] ss:$16 sps:$4 sm:$0xff]   ;;  %v3216_v15 = vld [vmem:[#allocation5 + $0x80] ss:$16 sps:$4 sm:$0xff]   ;;  %v3217_v16 = vld [vmem:[#allocation5 + $0x88] ss:$16 sps:$4 sm:$0xff]  }
  0x5e   : > { %v3218_v17 = vld [vmem:[#allocation5 + $0x64] ss:$16 sps:$4 sm:$0xff]   ;;  %v3220_v18 = vld [vmem:[#allocation5 + $0x6c] ss:$16 sps:$4 sm:$0xff]   ;;  %v3222_v19 = vld [vmem:[#allocation5 + $0x60] ss:$16 sps:$4 sm:$0xff]  }
  0x5f   : > { %598 = vmatpush1.bf16.msra.mxu0 %v3204_v7  ;;  %791 = vmatpush1.bf16.msra.mxu1 %v3205_v8  ;;  %v3223_v20 = vld [vmem:[#allocation5 + $0x68] ss:$16 sps:$4 sm:$0xff]   ;;  %v3224_v21 = vld [vmem:[#allocation5 + $0x44] ss:$16 sps:$4 sm:$0xff]   ;;  %v3226_v22 = vld [vmem:[#allocation5 + $0x4c] ss:$16 sps:$4 sm:$0xff]  }
  0x60   : > { %599 = vmatprep.subr.bf16.mxu0 %v3206_v9  ;;  %792 = vmatprep.subr.bf16.mxu1 %v3208_v10  ;;  %v3228_v23 = vld [vmem:[#allocation5 + $0x40] ss:$16 sps:$4 sm:$0xff]   ;;  %v3229_v24 = vld [vmem:[#allocation5 + $0x48] ss:$16 sps:$4 sm:$0xff]   ;;  %v3230_v25 = vld [vmem:[#allocation5 + $0x24] ss:$16 sps:$4 sm:$0xff]  }
  0x61   : > { %v3232_v26 = vld [vmem:[#allocation5 + $0x2c] ss:$16 sps:$4 sm:$0xff]   ;;  %v3234_v27 = vld [vmem:[#allocation5 + $0x20] ss:$16 sps:$4 sm:$0xff]   ;;  %v3235_v28 = vld [vmem:[#allocation5 + $0x28] ss:$16 sps:$4 sm:$0xff]  }
  0x62   : > { %v3236_v29 = vld [vmem:[#allocation5 + $0x4] ss:$16 sps:$4 sm:$0xff]   ;;  %v3238_v30 = vld [vmem:[#allocation5 + $0xc] ss:$16 sps:$4 sm:$0xff]   ;;  %v3240_v31 = vld [vmem:[#allocation5] ss:$16 sps:$4 sm:$0xff]  }
  0x63   : > { %600 = vmatpush1.bf16.msra.mxu0 %v3210_v11  ;;  %793 = vmatpush1.bf16.msra.mxu1 %v3211_v12  ;;  %v3241_v32 = vld [vmem:[#allocation5 + $0x8] ss:$16 sps:$4 sm:$0xff]   ;;  %v333_v33 = vld [vmem:[%s3834_s19] sm:$0xff]  ;;  %v335_v40 = vld [vmem:[%s3834_s19 + $0x10] sm:$0xff]  ;;  %s2893_s11 = sshll.u32 %s3722_s28, 12  ;;  %s2715_s14 = sshll.u32 %s5105_s13, 4  ;;  %s5235_s14 = int_to_ptr.vmem [resolvable:$true] %s2715_s14 }
  0x64   : > { %601 = vmatprep.subr.bf16.mxu0 %v3212_v13  ;;  %794 = vmatprep.subr.bf16.mxu1 %v3214_v14  ;;  %v334_v34 = vld [vmem:[%s3834_s19 + $0x8] sm:$0xff]  ;;  %v3242_v36 = vld [vmem:[#allocation7 + $0x78] sm:$0xff]   ;;  %v3246_v42 = vld [vmem:[#allocation7 + $0x70] sm:$0xff]   ;;  %s2702_s30 = scalar_lea.sflag [#allocation4], %s3828_s17  ;;  %s3578_s9 = scalar_lea.vmem %s5235_s14, 4096 }
  0x65   : > { %v365_v35 = vpack.c.bf16 %v334_v34, %v333_v33  ;;  %v3243_v37 = vld [vmem:[#allocation7 + $0x38] sm:$0xff]   ;;  %v3247_v43 = vld [vmem:[#allocation7 + $0x30] sm:$0xff]   ;;  %v3250_v47 = vld [vmem:[#allocation7 + $0x68] sm:$0xff]   ;;  %p3579_p11 = scmp.ne.s32.totalorder %s5235_s14, %s3578_s9  ;;  %p5335_p10 = scmp.ne.s32.totalorder %s5299_s16, 0 }
  0x66   : > { %v3244_v38 = vld [vmem:[#allocation7 + $0xf8] sm:$0xff]   ;;  %v3248_v44 = vld [vmem:[#allocation7 + $0xf0] sm:$0xff]   ;;  %v3251_v48 = vld [vmem:[#allocation7 + $0x28] sm:$0xff]   ;;  %s3658_s28 = smov [#allocation8]  }
  0x67   : > { %602 = vmatpush1.bf16.msra.mxu0 %v3216_v15  ;;  %795 = vmatpush1.bf16.msra.mxu1 %v3217_v16  ;;  %v3245_v39 = vld [vmem:[#allocation7 + $0xb8] sm:$0xff]   ;;  %v3249_v46 = vld [vmem:[#allocation7 + $0xb0] sm:$0xff]   ;;  %v337_v49 = vld [vmem:[%s3834_s19 + $0x20] sm:$0xff]  ;;  %p3580_p1 = pnand %p3579_p11, %p5335_p10  ;;  %s3582_s20 = sshll.u32 %s3658_s28, 4  ;;  %s3583_s20 = int_to_ptr.vmem [resolvable:$false] %s3582_s20 }
  0x68   : > { %603 = vmatprep.subr.bf16.mxu0 %v3218_v17  ;;  %796 = vmatprep.subr.bf16.mxu1 %v3220_v18  ;;  %v336_v41 = vld [vmem:[%s3834_s19 + $0x18] sm:$0xff]  ;;  %v338_v50 = vld [vmem:[%s3834_s19 + $0x28] sm:$0xff]  ;;  %v3254_v53 = vld [vmem:[#allocation7 + $0x60] sm:$0xff]   ;;  %s3584_s22 = scalar_lea.vmem %s3583_s20, 8192  ;;  %p3585_p6 = scmp.lt.s32.totalorder %s5235_s14, %s3583_s20 }
  0x69   : > { %v366_v45 = vpack.c.bf16 %v336_v41, %v335_v40  ;;  %v3252_v51 = vld [vmem:[#allocation7 + $0xe8] sm:$0xff]   ;;  %v3255_v54 = vld [vmem:[#allocation7 + $0x20] sm:$0xff]   ;;  %v367_v56 = vpack.c.bf16 %v338_v50, %v337_v49  ;;  %v3258_v58 = vld [vmem:[#allocation7 + $0x58] sm:$0xff]   ;;  %v415_v50 = vlaneseq  ;;  %p3581_p2 = pneg %p3580_p1  ;;  %p3586_p12 = scmp.lt.s32.totalorder %s3584_s22, %s3578_s9 }
  0x6a   : > { %v3253_v52 = vld [vmem:[#allocation7 + $0xa8] sm:$0xff]   ;;  %v3256_v55 = vld [vmem:[#allocation7 + $0xe0] sm:$0xff]   ;;  %v3259_v59 = vld [vmem:[#allocation7 + $0x18] sm:$0xff]  }
  0x6b   : > { %604 = vmatpush1.bf16.msra.mxu0 %v3222_v19  ;;  %797 = vmatpush1.bf16.msra.mxu1 %v3223_v20  ;;  %v3257_v57 = vld [vmem:[#allocation7 + $0xa0] sm:$0xff]   ;;  %v339_v60 = vld [vmem:[%s3834_s19 + $0x30] sm:$0xff]  ;;  %v340_v61 = vld [vmem:[%s3834_s19 + $0x38] sm:$0xff]  ;;  %p3587_p3 = por %p3586_p12, %p3585_p6 }
  0x6c   : > { %605 = vmatprep.subr.bf16.mxu0 %v3224_v21  ;;  %798 = vmatprep.subr.bf16.mxu1 %v3226_v22  ;;  %v3260_v62 = vld [vmem:[#allocation7 + $0xd8] sm:$0xff]   ;;  %v3262_v1 = vld [vmem:[#allocation7 + $0x50] sm:$0xff]   ;;  %v368_v4 = vpack.c.bf16 %v340_v61, %v339_v60  ;;  %v341_v6 = vld [vmem:[%s3834_s19 + $0x40] sm:$0xff] }
  0x6d   : > { %v3261_v63 = vld [vmem:[#allocation7 + $0x98] sm:$0xff]   ;;  %v3263_v2 = vld [vmem:[#allocation7 + $0x10] sm:$0xff]   ;;  %v342_v7 = vld [vmem:[%s3834_s19 + $0x48] sm:$0xff]  ;;  %p3588_p9 = pnand %p3587_p3, %p3581_p2 }
  0x6e   : > { %v3264_v3 = vld [vmem:[#allocation7 + $0xd0] sm:$0xff]   ;;  %v369_v8 = vpack.c.bf16 %v342_v7, %v341_v6  ;;  %v344_v10 = vld [vmem:[%s3834_s19 + $0x58] sm:$0xff]  ;;  %v345_v12 = vld [vmem:[%s3834_s19 + $0x60] sm:$0xff] }
  0x6f   : > { %606 = vmatpush1.bf16.msra.mxu0 %v3228_v23  ;;  %799 = vmatpush1.bf16.msra.mxu1 %v3229_v24  ;;  %v3265_v5 = vld [vmem:[#allocation7 + $0x90] sm:$0xff]   ;;  %v346_v13 = vld [vmem:[%s3834_s19 + $0x68] sm:$0xff]  ;;  %v348_v16 = vld [vmem:[%s3834_s19 + $0x78] sm:$0xff] }
  0x70   : > { %607 = vmatprep.subr.bf16.mxu0 %v3230_v25  ;;  %800 = vmatprep.subr.bf16.mxu1 %v3232_v26  ;;  %v343_v9 = vld [vmem:[%s3834_s19 + $0x50] sm:$0xff]  ;;  %v371_v14 = vpack.c.bf16 %v346_v13, %v345_v12  ;;  %v349_v18 = vld [vmem:[%s3834_s19 + $0x80] sm:$0xff]  ;;  %v350_v19 = vld [vmem:[%s3834_s19 + $0x88] sm:$0xff] }
  0x71   : > { %v370_v11 = vpack.c.bf16 %v344_v10, %v343_v9  ;;  %v347_v15 = vld [vmem:[%s3834_s19 + $0x70] sm:$0xff]  ;;  %v373_v20 = vpack.c.bf16 %v350_v19, %v349_v18  ;;  %v352_v22 = vld [vmem:[%s3834_s19 + $0x98] sm:$0xff]  ;;  %v353_v24 = vld [vmem:[%s3834_s19 + $0xa0] sm:$0xff] }
  0x72   : > { %v372_v17 = vpack.c.bf16 %v348_v16, %v347_v15  ;;  %v351_v21 = vld [vmem:[%s3834_s19 + $0x90] sm:$0xff]  ;;  %v354_v25 = vld [vmem:[%s3834_s19 + $0xa8] sm:$0xff]  ;;  %v357_v34 = vld [vmem:[%s3834_s19 + $0xc0] sm:$0xff] }
  0x73   : > { %608 = vmatpush1.bf16.msra.mxu0 %v3234_v27  ;;  %801 = vmatpush1.bf16.msra.mxu1 %v3235_v28  ;;  %v374_v23 = vpack.c.bf16 %v352_v22, %v351_v21  ;;  %v375_v26 = vpack.c.bf16 %v354_v25, %v353_v24  ;;  %v355_v27 = vld [vmem:[%s3834_s19 + $0xb0] sm:$0xff]  ;;  %v356_v28 = vld [vmem:[%s3834_s19 + $0xb8] sm:$0xff]  ;;  %v3269_v33 = vld [vmem:[#allocation7 + $0x88] sm:$0xff]  }
  0x74   : > { %609 = vmatprep.subr.bf16.mxu0 %v3236_v29  ;;  %802 = vmatprep.subr.bf16.mxu1 %v3238_v30  ;;  %v376_v29 = vpack.c.bf16 %v356_v28, %v355_v27  ;;  %v3266_v30 = vld [vmem:[#allocation7 + $0x48] sm:$0xff]   ;;  %v3273_v40 = vld [vmem:[#allocation7 + $0x80] sm:$0xff]   ;;  %v359_v41 = vld [vmem:[%s3834_s19 + $0xd0] sm:$0xff] }
  0x77   : > { %610 = vmatpush1.bf16.msra.mxu0 %v3240_v31  ;;  %803 = vmatpush1.bf16.msra.mxu1 %v3241_v32  ;;  %v3267_v31 = vld [vmem:[#allocation7 + $0x8] sm:$0xff]  }
  0x78   : > { %2894 = vmatprep.subr.bf16.mxu0 %v3242_v36  ;;  %3006 = vmatprep.subr.bf16.mxu1 %v3244_v38  ;;  %v3268_v32 = vld [vmem:[#allocation7 + $0xc8] sm:$0xff]   ;;  %v3270_v36 = vld [vmem:[#allocation7 + $0x40] sm:$0xff]  }
  0x79   : > { %v3272_v38 = vld [vmem:[#allocation7 + $0xc0] sm:$0xff]  }
  0x7a   : > { %628 = vmatmul.mubr.bf16.vlgmr.msra.gmra.mxu0 %v365_v35  ;;  %821 = vmatmul.mubr.bf16.vlgmr.msra.gmra.mxu1 %v365_v35  ;;  %v358_v35 = vld [vmem:[%s3834_s19 + $0xc8] sm:$0xff] }
  0x7b   : > { %637 = vmatprep.mubr.bf16.mxu0 %v3657_v0  ;;  %830 = vmatprep.mubr.bf16.mxu1 %v3657_v0 }
  0x7c   : > { %2895 = vmatpush3.bf16.msra.mxu0 %v3243_v37  ;;  %3007 = vmatpush3.bf16.msra.mxu1 %v3245_v39  ;;  %v3271_v37 = vld [vmem:[#allocation7] sm:$0xff]   ;;  %v377_v39 = vpack.c.bf16 %v358_v35, %v357_v34 }
  0x7d   : > { %2896 = vmatprep.subr.bf16.mxu0 %v3246_v42  ;;  %3008 = vmatprep.subr.bf16.mxu1 %v3248_v44  ;;  %v360_v42 = vld [vmem:[%s3834_s19 + $0xd8] sm:$0xff]  ;;  %v361_v44 = vld [vmem:[%s3834_s19 + $0xe0] sm:$0xff] }
  0x80   : > { %2897 = vmatpush3.bf16.msra.mxu0 %v3247_v43  ;;  %3009 = vmatpush3.bf16.msra.mxu1 %v3249_v46  ;;  %v378_v43 = vpack.c.bf16 %v360_v42, %v359_v41 }
  0x81   : > { %2898 = vmatprep.subr.bf16.mxu0 %v3250_v47  ;;  %3010 = vmatprep.subr.bf16.mxu1 %v3252_v51  ;;  %v363_v47 = vld [vmem:[%s3834_s19 + $0xf0] sm:$0xff]  ;;  %v416_v51 = vshrl.u32 %v415_v50, 7 }
  0x82   : > { %638 = vmatmul.mubr.bf16.gmra.mxu0 %v366_v45  ;;  %831 = vmatmul.mubr.bf16.gmra.mxu1 %v366_v45  ;;  %v362_v45 = vld [vmem:[%s3834_s19 + $0xe8] sm:$0xff] }
  0x83   : > { %647 = vmatprep.mubr.bf16.mxu0 %v3657_v0  ;;  %840 = vmatprep.mubr.bf16.mxu1 %v3657_v0  ;;  %v379_v46 = vpack.c.bf16 %v362_v45, %v361_v44 }
  0x84   : > { %2899 = vmatpush3.bf16.msra.mxu0 %v3251_v48  ;;  %3011 = vmatpush3.bf16.msra.mxu1 %v3253_v52  ;;  %v364_v48 = vld [vmem:[%s3834_s19 + $0xf8] sm:$0xff]  ;;  %v417_v52 = vsub.s32 0, %v416_v51 }
  0x85   : > { %2900 = vmatprep.subr.bf16.mxu0 %v3254_v53  ;;  %3012 = vmatprep.subr.bf16.mxu1 %v3256_v55  ;;  %v380_v49 = vpack.c.bf16 %v364_v48, %v363_v47  ;;  %v425_v53 = vsub.s32 2, %v416_v51  ;;  %v421_v55 = vsub.s32 1, %v416_v51 }
  0x88   : > { %2901 = vmatpush3.bf16.msra.mxu0 %v3255_v54  ;;  %3013 = vmatpush3.bf16.msra.mxu1 %v3257_v57  ;;  %v413_v54 = vld [vmem:[%s5282_s2] sm:$0xf] }
  0x89   : > { %2902 = vmatprep.subr.bf16.mxu0 %v3258_v58  ;;  %3014 = vmatprep.subr.bf16.mxu1 %v3260_v62  ;;  %v3915_v60 = vrot.slane %v413_v54, %v421_v55 }
  0x8a   : > { %648 = vmatmul.mubr.bf16.gmra.mxu0 %v367_v56  ;;  %841 = vmatmul.mubr.bf16.gmra.mxu1 %v367_v56  ;;  %v429_v56 = vsub.s32 3, %v416_v51 }
  0x8b   : > { %657 = vmatprep.mubr.bf16.mxu0 %v3657_v0  ;;  %850 = vmatprep.mubr.bf16.mxu1 %v3657_v0 }
  0x8c   : > { %2903 = vmatpush3.bf16.msra.mxu0 %v3259_v59  ;;  %3015 = vmatpush3.bf16.msra.mxu1 %v3261_v63  ;;  %v3911_v59 = vrot.slane %v413_v54, %v417_v52  ;;  %v3917_v62 = vrot.slane %v413_v54, %v429_v56 }
  0x8d   : > { %2904 = vmatprep.subr.bf16.mxu0 %v3262_v1  ;;  %3016 = vmatprep.subr.bf16.mxu1 %v3264_v3 }
  0x90   : > { %2905 = vmatpush3.bf16.msra.mxu0 %v3263_v2  ;;  %3017 = vmatpush3.bf16.msra.mxu1 %v3265_v5 }
  0x91   : > { %2906 = vmatprep.subr.bf16.mxu0 %v3266_v30  ;;  %3018 = vmatprep.subr.bf16.mxu1 %v3268_v32 }
  0x92   : > { %658 = vmatmul.mubr.bf16.gmra.mxu0 %v368_v4  ;;  %851 = vmatmul.mubr.bf16.gmra.mxu1 %v368_v4 }
  0x93   : > { %667 = vmatprep.mubr.bf16.mxu0 %v3657_v0  ;;  %860 = vmatprep.mubr.bf16.mxu1 %v3657_v0 }
  0x94   : > { %2907 = vmatpush3.bf16.msra.mxu0 %v3267_v31  ;;  %3019 = vmatpush3.bf16.msra.mxu1 %v3269_v33 }
  0x95   : > { %2908 = vmatprep.subr.bf16.mxu0 %v3270_v36  ;;  %3020 = vmatprep.subr.bf16.mxu1 %v3272_v38 }
  0x98   : > { %2909 = vmatpush3.bf16.msra.mxu0 %v3271_v37  ;;  %3021 = vmatpush3.bf16.msra.mxu1 %v3273_v40 }
  0x9a   : > { %668 = vmatmul.mubr.bf16.gmra.mxu0 %v369_v8  ;;  %861 = vmatmul.mubr.bf16.gmra.mxu1 %v369_v8 }
  0x9b   : > { %677 = vmatprep.mubr.bf16.mxu0 %v3657_v0  ;;  %870 = vmatprep.mubr.bf16.mxu1 %v3657_v0 }
  0xa2   : > { %678 = vmatmul.mubr.bf16.gmra.mxu0 %v370_v11  ;;  %871 = vmatmul.mubr.bf16.gmra.mxu1 %v370_v11 }
  0xa3   : > { %687 = vmatprep.mubr.bf16.mxu0 %v3657_v0  ;;  %880 = vmatprep.mubr.bf16.mxu1 %v3657_v0 }
  0xaa   : > { %688 = vmatmul.mubr.bf16.gmra.mxu0 %v371_v14  ;;  %881 = vmatmul.mubr.bf16.gmra.mxu1 %v371_v14 }
  0xab   : > { %697 = vmatprep.mubr.bf16.mxu0 %v3657_v0  ;;  %890 = vmatprep.mubr.bf16.mxu1 %v3657_v0 }
  0xb2   : > { %698 = vmatmul.mubr.bf16.gmra.mxu0 %v372_v17  ;;  %891 = vmatmul.mubr.bf16.gmra.mxu1 %v372_v17 }
  0xb3   : > { %707 = vmatprep.mubr.bf16.mxu0 %v3657_v0  ;;  %900 = vmatprep.mubr.bf16.mxu1 %v3657_v0 }
  0xba   : > { %708 = vmatmul.mubr.bf16.gmra.mxu0 %v373_v20  ;;  %901 = vmatmul.mubr.bf16.gmra.mxu1 %v373_v20 }
  0xbb   : > { %717 = vmatprep.mubr.bf16.mxu0 %v3657_v0  ;;  %910 = vmatprep.mubr.bf16.mxu1 %v3657_v0 }
  0xc2   : > { %718 = vmatmul.mubr.bf16.gmra.mxu0 %v374_v23  ;;  %911 = vmatmul.mubr.bf16.gmra.mxu1 %v374_v23 }
  0xc3   : > { %727 = vmatprep.mubr.bf16.mxu0 %v3657_v0  ;;  %920 = vmatprep.mubr.bf16.mxu1 %v3657_v0 }
  0xca   : > { %728 = vmatmul.mubr.bf16.gmra.mxu0 %v375_v26  ;;  %921 = vmatmul.mubr.bf16.gmra.mxu1 %v375_v26 }
  0xcb   : > { %737 = vmatprep.mubr.bf16.mxu0 %v3657_v0  ;;  %930 = vmatprep.mubr.bf16.mxu1 %v3657_v0 }
  0xd2   : > { %738 = vmatmul.mubr.bf16.gmra.mxu0 %v376_v29  ;;  %931 = vmatmul.mubr.bf16.gmra.mxu1 %v376_v29 }
  0xd3   : > { %747 = vmatprep.mubr.bf16.mxu0 %v3657_v0  ;;  %940 = vmatprep.mubr.bf16.mxu1 %v3657_v0 }
  0xda   : > { %748 = vmatmul.mubr.bf16.gmra.mxu0 %v377_v39  ;;  %941 = vmatmul.mubr.bf16.gmra.mxu1 %v377_v39 }
  0xdb   : > { %757 = vmatprep.mubr.bf16.mxu0 %v3657_v0  ;;  %950 = vmatprep.mubr.bf16.mxu1 %v3657_v0 }
  0xe2   : > { %758 = vmatmul.mubr.bf16.gmra.mxu0 %v378_v43  ;;  %951 = vmatmul.mubr.bf16.gmra.mxu1 %v378_v43 }
  0xe3   : > { %767 = vmatprep.mubr.bf16.mxu0 %v3657_v0  ;;  %960 = vmatprep.mubr.bf16.mxu1 %v3657_v0 }
  0xea   : > { %768 = vmatmul.mubr.bf16.gmra.mxu0 %v379_v46  ;;  %961 = vmatmul.mubr.bf16.gmra.mxu1 %v379_v46 }
  0xeb   : > { %777 = vmatprep.mubr.bf16.mxu0 %v3657_v0  ;;  %970 = vmatprep.mubr.bf16.mxu1 %v3657_v0  ;;  %v3913_v0 = vrot.slane %v413_v54, %v425_v53 }
  0xf2   : > { %778 = vmatmul.mubr.bf16.gmra.mxu0 %v380_v49  ;;  %971 = vmatmul.mubr.bf16.gmra.mxu1 %v380_v49 }
 0x13a   : > { %v629_v57 = vpop.f32.mrf.mxu0  ;;  %v822_v58 = vpop.f32.mrf.mxu1 }
 0x13b   : > { %v630_v3 = vadd.f32 %v629_v57, %v3911_v59  ;;  %v823_v4 = vadd.f32 %v822_v58, %v3913_v0 }
 0x13c   : > { %v631_v61 = vpop.f32.mrf.mxu0  ;;  %v824_v63 = vpop.f32.mrf.mxu1 }
 0x13d   : > { %v632_v7 = vadd.f32 %v631_v61, %v3915_v60  ;;  %v825_v8 = vadd.f32 %v824_v63, %v3917_v62 }
 0x13e   : > { %v633_v1 = vpop.f32.mrf.mxu0  ;;  %v826_v2 = vpop.f32.mrf.mxu1 }
 0x13f   : > { %v634_v5 = vadd.f32 %v633_v1, %v3911_v59  ;;  %v827_v6 = vadd.f32 %v826_v2, %v3913_v0 }
 0x140   : > { %v635_v9 = vpop.f32.mrf.mxu0  ;;  %v828_v10 = vpop.f32.mrf.mxu1 }
 0x141   : > { %v3925_v11 = vpack.c.bf16 %v634_v5, %v630_v3  ;;  %v3927_v12 = vpack.c.bf16 %v827_v6, %v823_v4  ;;  %v636_v13 = vadd.f32 %v635_v9, %v3915_v60  ;;  %v829_v14 = vadd.f32 %v828_v10, %v3917_v62 }
 0x142   : > { %v639_v15 = vpop.f32.mrf.mxu0  ;;  %v832_v16 = vpop.f32.mrf.mxu1 }
 0x143   : > { %v1109_v17 = vmul.bf16 1027030327, %v3925_v11  ;;  %v1111_v18 = vmul.bf16 1027030327, %v3927_v12  ;;  %v3933_v19 = vpack.c.bf16 %v636_v13, %v632_v7  ;;  %v3935_v20 = vpack.c.bf16 %v829_v14, %v825_v8 }
 0x144   : > { %v641_v21 = vpop.f32.mrf.mxu0  ;;  %v834_v22 = vpop.f32.mrf.mxu1  ;;  %v640_v48 = vadd.f32 %v639_v15, %v3911_v59  ;;  %v833_v54 = vadd.f32 %v832_v16, %v3913_v0  ;;  %v1045_v4 = vmul.bf16 1056980736, %v3925_v11  ;;  %v1047_v14 = vmul.bf16 1056980736, %v3927_v12 }
 0x145   : > { %v1173_v23 = vmul.bf16 %v1109_v17, %v3925_v11  ;;  %v1175_v24 = vmul.bf16 %v1111_v18, %v3927_v12  ;;  %v1110_v25 = vmul.bf16 1027030327, %v3933_v19  ;;  %v1112_v26 = vmul.bf16 1027030327, %v3935_v20 }
 0x146   : > { %v643_v27 = vpop.f32.mrf.mxu0  ;;  %v836_v28 = vpop.f32.mrf.mxu1  ;;  %v642_v31 = vadd.f32 %v641_v21, %v3915_v60  ;;  %v835_v38 = vadd.f32 %v834_v22, %v3917_v62 }
 0x147   : > { %v1237_v29 = vmul.bf16 %v1173_v23, %v3925_v11  ;;  %v1239_v30 = vmul.bf16 %v1175_v24, %v3927_v12  ;;  %v1174_v34 = vmul.bf16 %v1110_v25, %v3933_v19  ;;  %v1176_v35 = vmul.bf16 %v1112_v26, %v3935_v20 }
 0x148   : > { %v645_v32 = vpop.f32.mrf.mxu0  ;;  %v838_v33 = vpop.f32.mrf.mxu1  ;;  %v644_v39 = vadd.f32 %v643_v27, %v3911_v59  ;;  %v837_v46 = vadd.f32 %v836_v28, %v3913_v0  ;;  %v1046_v25 = vmul.bf16 1056980736, %v3933_v19 }
 0x149   : > { %v1301_v36 = vadd.bf16 %v1237_v29, %v3925_v11  ;;  %v1303_v37 = vadd.bf16 %v1239_v30, %v3927_v12  ;;  %v646_v40 = vadd.f32 %v645_v32, %v3915_v60  ;;  %v839_v41 = vadd.f32 %v838_v33, %v3917_v62 }
 0x14a   : > { %v649_v42 = vpop.f32.mrf.mxu0  ;;  %v842_v43 = vpop.f32.mrf.mxu1  ;;  %v1238_v44 = vmul.bf16 %v1174_v34, %v3933_v19  ;;  %v1240_v45 = vmul.bf16 %v1176_v35, %v3935_v20  ;;  %v3962_v56 = vpack.c.bf16 %v644_v39, %v640_v48  ;;  %v3967_v2 = vpack.c.bf16 %v837_v46, %v833_v54 }
 0x14b   : > { %v1365_v47 = vmul.bf16 1061961548, %v1301_v36  ;;  %v3956_v49 = vpack.c.bf16 %v646_v40, %v642_v31  ;;  %v3958_v50 = vpack.c.bf16 %v839_v41, %v835_v38  ;;  %v1367_v53 = vmul.bf16 1061961548, %v1303_v37 }
 0x14c   : > { %v651_v51 = vpop.f32.mrf.mxu0  ;;  %v844_v52 = vpop.f32.mrf.mxu1  ;;  %v1302_v55 = vadd.bf16 %v1238_v44, %v3933_v19  ;;  %v1304_v1 = vadd.bf16 %v1240_v45, %v3935_v20  ;;  %v1113_v15 = vmul.bf16 1027030327, %v3962_v56  ;;  %v1115_v22 = vmul.bf16 1027030327, %v3967_v2 }
 0x14d   : > { %v1114_v57 = vmul.bf16 1027030327, %v3956_v49  ;;  %v1116_v58 = vmul.bf16 1027030327, %v3958_v50  ;;  %3274 = vtanh.bf16 %v1365_v47  ;;  %v652_v10 = vadd.f32 %v651_v51, %v3915_v60 }
 0x14e   : > { %v653_v61 = vpop.f32.mrf.mxu0  ;;  %v846_v63 = vpop.f32.mrf.mxu1  ;;  %v1366_v3 = vmul.bf16 1061961548, %v1302_v55  ;;  %v1368_v7 = vmul.bf16 1061961548, %v1304_v1  ;;  %3276 = vtanh.bf16 %v1367_v53  ;;  %v650_v26 = vadd.f32 %v649_v42, %v3911_v59 }
 0x14f   : > { %v1178_v8 = vmul.bf16 %v1114_v57, %v3956_v49  ;;  %v1180_v9 = vmul.bf16 %v1116_v58, %v3958_v50  ;;  %v1048_v29 = vmul.bf16 1056980736, %v3935_v20  ;;  %v845_v31 = vadd.f32 %v844_v52, %v3917_v62 }
 0x150   : > { %v655_v5 = vpop.f32.mrf.mxu0  ;;  %v848_v6 = vpop.f32.mrf.mxu1  ;;  %3278 = vtanh.bf16 %v1366_v3  ;;  %v654_v32 = vadd.f32 %v653_v61, %v3911_v59  ;;  %v847_v33 = vadd.f32 %v846_v63, %v3913_v0  ;;  %v843_v35 = vadd.f32 %v842_v43, %v3913_v0 }
 0x151   : > { %v656_v13 = vadd.f32 %v655_v5, %v3915_v60  ;;  %v1242_v18 = vmul.bf16 %v1178_v8, %v3956_v49  ;;  %v1244_v21 = vmul.bf16 %v1180_v9, %v3958_v50  ;;  %v849_v24 = vadd.f32 %v848_v6, %v3917_v62 }
 0x152   : > { %v659_v16 = vpop.f32.mrf.mxu0  ;;  %v852_v17 = vpop.f32.mrf.mxu1  ;;  %3280 = vtanh.bf16 %v1368_v7  ;;  %v1177_v40 = vmul.bf16 %v1113_v15, %v3962_v56  ;;  %v1050_v44 = vmul.bf16 1056980736, %v3956_v49  ;;  %v1179_v45 = vmul.bf16 %v1115_v22, %v3967_v2 }
 0x153   : > { %v3979_v23 = vpack.c.bf16 %v656_v13, %v652_v10  ;;  %v1306_v30 = vadd.bf16 %v1242_v18, %v3956_v49  ;;  %v1308_v39 = vadd.bf16 %v1244_v21, %v3958_v50  ;;  %v3993_v41 = vpack.c.bf16 %v849_v24, %v845_v31 }
 0x154   : > { %v661_v27 = vpop.f32.mrf.mxu0  ;;  %v854_v28 = vpop.f32.mrf.mxu1  ;;  %v1241_v43 = vmul.bf16 %v1177_v40, %v3962_v56  ;;  %v4000_v52 = vpack.c.bf16 %v654_v32, %v650_v26  ;;  %v4002_v53 = vpack.c.bf16 %v847_v33, %v843_v35  ;;  %v1052_v55 = vmul.bf16 1056980736, %v3958_v50 }
 0x155   : > { %v1118_v34 = vmul.bf16 1027030327, %v3979_v23  ;;  %v1370_v38 = vmul.bf16 1061961548, %v1306_v30  ;;  %v1372_v48 = vmul.bf16 1061961548, %v1308_v39  ;;  %v660_v57 = vadd.f32 %v659_v16, %v3911_v59 }
 0x156   : > { %v663_v36 = vpop.f32.mrf.mxu0  ;;  %v856_v37 = vpop.f32.mrf.mxu1  ;;  %v1305_v63 = vadd.bf16 %v1241_v43, %v3962_v56  ;;  %v1243_v1 = vmul.bf16 %v1179_v45, %v3967_v2  ;;  %v853_v3 = vadd.f32 %v852_v17, %v3913_v0  ;;  %v1120_v8 = vmul.bf16 1027030327, %v3993_v41 }
 0x157   : > { %v664_v42 = vadd.f32 %v663_v36, %v3911_v59  ;;  %3282 = vtanh.bf16 %v1370_v38  ;;  %v1182_v51 = vmul.bf16 %v1118_v34, %v3979_v23  ;;  %v857_v54 = vadd.f32 %v856_v37, %v3913_v0 }
 0x158   : > { %v665_v46 = vpop.f32.mrf.mxu0  ;;  %v858_v47 = vpop.f32.mrf.mxu1  ;;  %3284 = vtanh.bf16 %v1372_v48  ;;  %v1049_v15 = vmul.bf16 1056980736, %v3962_v56  ;;  %v1369_v16 = vmul.bf16 1061961548, %v1305_v63  ;;  %v1117_v18 = vmul.bf16 1027030327, %v4000_v52 }
 0x159   : > { %v666_v5 = vadd.f32 %v665_v46, %v3915_v60  ;;  %v859_v6 = vadd.f32 %v858_v47, %v3917_v62  ;;  %v1246_v7 = vmul.bf16 %v1182_v51, %v3979_v23  ;;  %v4014_v9 = vpack.c.bf16 %v664_v42, %v660_v57 }
 0x15a   : > { %v669_v58 = vpop.f32.mrf.mxu0  ;;  %v862_v61 = vpop.f32.mrf.mxu1  ;;  %v662_v21 = vadd.f32 %v661_v27, %v3915_v60  ;;  %v855_v17 = vadd.f32 %v854_v28, %v3917_v62  ;;  %v4020_v22 = vpack.c.bf16 %v857_v54, %v853_v3  ;;  %v1119_v26 = vmul.bf16 1027030327, %v4002_v53 }
 0x15b   : > { %v3275_v24 = vpop.eup %3274  ;;  %3286 = vtanh.bf16 %v1369_v16  ;;  %v1051_v32 = vmul.bf16 1056980736, %v3967_v2  ;;  %v1307_v33 = vadd.bf16 %v1243_v1, %v3967_v2  ;;  %v1054_v27 = vmul.bf16 1056980736, %v3979_v23 }
 0x15c   : > { %v671_v10 = vpop.f32.mrf.mxu0  ;;  %v864_v13 = vpop.f32.mrf.mxu1  ;;  %v4025_v35 = vpack.c.bf16 %v666_v5, %v662_v21  ;;  %v4027_v36 = vpack.c.bf16 %v859_v6, %v855_v17  ;;  %v1310_v28 = vadd.bf16 %v1246_v7, %v3979_v23  ;;  %v1121_v38 = vmul.bf16 1027030327, %v4014_v9 }
 0x15d   : > { %v3277_v34 = vpop.eup %3276  ;;  %v1371_v45 = vmul.bf16 1061961548, %v1307_v33  ;;  %v1184_v46 = vmul.bf16 %v1120_v8, %v3993_v41  ;;  %v1123_v47 = vmul.bf16 1027030327, %v4020_v22  ;;  %v670_v48 = vadd.f32 %v669_v58, %v3911_v59 }
 0x15e   : > { %v673_v30 = vpop.f32.mrf.mxu0  ;;  %v866_v31 = vpop.f32.mrf.mxu1  ;;  %v1493_v51 = vadd.bf16 1065369472, %v3275_v24  ;;  %v1374_v3 = vmul.bf16 1061961548, %v1310_v28  ;;  %v1122_v6 = vmul.bf16 1027030327, %v4025_v35  ;;  %v863_v8 = vadd.f32 %v862_v61, %v3913_v0 }
 0x15f   : > { %v3279_v37 = vpop.eup %3278  ;;  %v674_v39 = vadd.f32 %v673_v30, %v3911_v59  ;;  %v867_v43 = vadd.f32 %v866_v31, %v3913_v0  ;;  %3288 = vtanh.bf16 %v1371_v45  ;;  %v1248_v5 = vmul.bf16 %v1184_v46, %v3993_v41 }
 0x160   : > { %v675_v40 = vpop.f32.mrf.mxu0  ;;  %v868_v42 = vpop.f32.mrf.mxu1  ;;  %v1494_v1 = vadd.bf16 1065369472, %v3279_v37  ;;  %v1124_v7 = vmul.bf16 1027030327, %v4027_v36  ;;  %v1495_v16 = vadd.bf16 1065369472, %v3277_v34  ;;  %v672_v58 = vadd.f32 %v671_v10, %v3915_v60 }
 0x161   : > { %v3281_v54 = vpop.eup %3280  ;;  %v4042_v21 = vpack.c.bf16 %v674_v39, %v670_v48  ;;  %v865_v33 = vadd.f32 %v864_v13, %v3917_v62  ;;  %v4047_v28 = vpack.c.bf16 %v867_v43, %v863_v8  ;;  %v676_v37 = vadd.f32 %v675_v40, %v3915_v60 }
 0x162   : > { %v679_v57 = vpop.f32.mrf.mxu0  ;;  %v872_v63 = vpop.f32.mrf.mxu1  ;;  %v1558_v17 = vmul.bf16 %v1494_v1, %v1046_v25  ;;  %v1496_v24 = vadd.bf16 1065369472, %v3281_v54  ;;  %v1557_v61 = vmul.bf16 %v1493_v51, %v1045_v4  ;;  %3290 = vtanh.bf16 %v1374_v3 }
 0x163   : > { %v1312_v25 = vadd.bf16 %v1248_v5, %v3993_v41  ;;  %v1181_v45 = vmul.bf16 %v1117_v18, %v4000_v52  ;;  %v869_v13 = vadd.f32 %v868_v42, %v3917_v62  ;;  %v1559_v40 = vmul.bf16 %v1495_v16, %v1047_v14 }
 0x164   : > { %v681_v30 = vpop.f32.mrf.mxu0  ;;  %v874_v31 = vpop.f32.mrf.mxu1  ;;  %1916 = vmatprep.mubr.bf16.mxu0 %v1558_v17  ;;  %v1560_v10 = vmul.bf16 %v1496_v24, %v1048_v29  ;;  %v1056_v4 = vmul.bf16 1056980736, %v3993_v41  ;;  %v1125_v20 = vmul.bf16 1027030327, %v4042_v21  ;;  %v1053_v51 = vmul.bf16 1056980736, %v4000_v52 }
 0x165   : > { %v3283_v34 = vpop.eup %3282  ;;  %1917 = vmatmul.mubr.bf16.vlgmr.msra.gmra.mxu0 %v1557_v61  ;;  %v1376_v43 = vmul.bf16 1061961548, %v1312_v25  ;;  %v1245_v18 = vmul.bf16 %v1181_v45, %v4000_v52  ;;  %v1127_v42 = vmul.bf16 1027030327, %v4047_v28  ;;  %v4064_v54 = vpack.c.bf16 %v676_v37, %v672_v58 }
 0x166   : > { %v683_v39 = vpop.f32.mrf.mxu0  ;;  %v876_v19 = vpop.f32.mrf.mxu1  ;;  %v1498_v11 = vadd.bf16 1065369472, %v3283_v34  ;;  %2077 = vmatprep.mubr.bf16.mxu1 %v1560_v10  ;;  %v1183_v14 = vmul.bf16 %v1119_v26, %v4002_v53  ;;  %v4073_v17 = vpack.c.bf16 %v869_v13, %v865_v33  ;;  %v680_v58 = vadd.f32 %v679_v57, %v3911_v59 }
 0x167   : > { %v3285_v46 = vpop.eup %3284  ;;  %2078 = vmatmul.mubr.bf16.vlgmr.msra.gmra.mxu1 %v1559_v40  ;;  %v684_v12 = vadd.f32 %v683_v39, %v3911_v59  ;;  %3292 = vtanh.bf16 %v1376_v43  ;;  %v1309_v16 = vadd.bf16 %v1245_v18, %v4000_v52  ;;  %v877_v24 = vadd.f32 %v876_v19, %v3913_v0 }
 0x168   : > { %v685_v29 = vpop.f32.mrf.mxu0  ;;  %v878_v48 = vpop.f32.mrf.mxu1  ;;  %v1562_v5 = vmul.bf16 %v1498_v11, %v1050_v44  ;;  %v1500_v8 = vadd.bf16 1065369472, %v3285_v46  ;;  %v873_v26 = vadd.f32 %v872_v63, %v3913_v0  ;;  %v1126_v33 = vmul.bf16 1027030327, %v4064_v54 }
 0x169   : > { %v686_v37 = vadd.f32 %v685_v29, %v3915_v60  ;;  %v3287_v61 = vpop.eup %3286  ;;  %v879_v34 = vadd.f32 %v878_v48, %v3917_v62  ;;  %v1373_v39 = vmul.bf16 1061961548, %v1309_v16  ;;  %v682_v57 = vadd.f32 %v681_v30, %v3915_v60 }
 0x16a   : > { %v689_v1 = vpop.f32.mrf.mxu0  ;;  %v882_v3 = vpop.f32.mrf.mxu1  ;;  %1924 = vmatprep.mubr.bf16.mxu0 %v1562_v5  ;;  %v1564_v49 = vmul.bf16 %v1500_v8, %v1052_v55  ;;  %v875_v19 = vadd.f32 %v874_v31, %v3917_v62  ;;  %v1497_v25 = vadd.bf16 1065369472, %v3287_v61  ;;  %v4085_v45 = vpack.c.bf16 %v684_v12, %v680_v58 }
 0x16b   : > { %3294 = vtanh.bf16 %v1373_v39  ;;  %v1247_v40 = vmul.bf16 %v1183_v14, %v4002_v53  ;;  %v1186_v50 = vmul.bf16 %v1122_v6, %v4025_v35  ;;  %v1128_v55 = vmul.bf16 1027030327, %v4073_v17 }
 0x16c   : > { %v691_v44 = vpop.f32.mrf.mxu0  ;;  %v884_v10 = vpop.f32.mrf.mxu1  ;;  %2085 = vmatprep.mubr.bf16.mxu1 %v1564_v49  ;;  %v4092_v11 = vpack.c.bf16 %v877_v24, %v873_v26  ;;  %v4094_v30 = vpack.c.bf16 %v686_v37, %v682_v57  ;;  %v1561_v31 = vmul.bf16 %v1497_v25, %v1049_v15  ;;  %v4098_v29 = vpack.c.bf16 %v879_v34, %v875_v19 }
 0x16d   : > { %v3289_v46 = vpop.eup %3288  ;;  %v1311_v18 = vadd.bf16 %v1247_v40, %v4002_v53  ;;  %v1250_v12 = vmul.bf16 %v1186_v50, %v4025_v35  ;;  %v1188_v6 = vmul.bf16 %v1124_v7, %v4027_v36  ;;  %v1055_v5 = vmul.bf16 1056980736, %v4002_v53 }
 0x16e   : > { %v693_v63 = vpop.f32.mrf.mxu0  ;;  %v886_v13 = vpop.f32.mrf.mxu1  ;;  %1925 = vmatmul.mubr.bf16.gmra.mxu0 %v1561_v31  ;;  %v1499_v14 = vadd.bf16 1065369472, %v3289_v46  ;;  %v1058_v56 = vmul.bf16 1056980736, %v4025_v35  ;;  %v1129_v15 = vmul.bf16 1027030327, %v4085_v45  ;;  %v690_v26 = vadd.f32 %v689_v1, %v3911_v59 }
 0x16f   : > { %v1375_v58 = vmul.bf16 1061961548, %v1311_v18  ;;  %v1314_v24 = vadd.bf16 %v1250_v12, %v4025_v35  ;;  %v1252_v37 = vmul.bf16 %v1188_v6, %v4027_v36  ;;  %v1131_v61 = vmul.bf16 1027030327, %v4092_v11 }
 0x170   : > { %v695_v48 = vpop.f32.mrf.mxu0  ;;  %v888_v43 = vpop.f32.mrf.mxu1  ;;  %v1563_v7 = vmul.bf16 %v1499_v14, %v1051_v32  ;;  %v694_v34 = vadd.f32 %v693_v63, %v3911_v59  ;;  %v1130_v39 = vmul.bf16 1027030327, %v4094_v30  ;;  %v1132_v57 = vmul.bf16 1027030327, %v4098_v29 }
 0x171   : > { %v3291_v49 = vpop.eup %3290  ;;  %v883_v19 = vadd.f32 %v882_v3, %v3913_v0  ;;  %3296 = vtanh.bf16 %v1375_v58  ;;  %v692_v50 = vadd.f32 %v691_v44, %v3915_v60  ;;  %v885_v1 = vadd.f32 %v884_v10, %v3917_v62 }
 0x172   : > { %v699_v8 = vpop.f32.mrf.mxu0  ;;  %v892_v16 = vpop.f32.mrf.mxu1  ;;  %2086 = vmatmul.mubr.bf16.gmra.mxu1 %v1563_v7  ;;  %v887_v2 = vadd.f32 %v886_v13, %v3913_v0  ;;  %v1502_v32 = vadd.bf16 1065369472, %v3291_v49  ;;  %v1378_v46 = vmul.bf16 1061961548, %v1314_v24  ;;  %v1060_v18 = vmul.bf16 1056980736, %v4027_v36 }
 0x173   : > { %v1316_v12 = vadd.bf16 %v1252_v37, %v4027_v36  ;;  %v1185_v3 = vmul.bf16 %v1121_v38, %v4014_v9  ;;  %v4126_v6 = vpack.c.bf16 %v694_v34, %v690_v26  ;;  %v696_v44 = vadd.f32 %v695_v48, %v3915_v60 }
 0x174   : > { %v701_v25 = vpop.f32.mrf.mxu0  ;;  %v894_v40 = vpop.f32.mrf.mxu1  ;;  %v889_v10 = vadd.f32 %v888_v43, %v3917_v62  ;;  %v1566_v13 = vmul.bf16 %v1502_v32, %v1054_v27  ;;  %3298 = vtanh.bf16 %v1378_v46  ;;  %v1187_v38 = vmul.bf16 %v1123_v47, %v4020_v22 }
 0x175   : > { %v3293_v14 = vpop.eup %3292  ;;  %v1380_v7 = vmul.bf16 1061961548, %v1316_v12  ;;  %v1249_v37 = vmul.bf16 %v1185_v3, %v4014_v9  ;;  %v1057_v23 = vmul.bf16 1056980736, %v4014_v9  ;;  %v4139_v27 = vpack.c.bf16 %v887_v2, %v883_v19 }
 0x176   : > { %v703_v31 = vpop.f32.mrf.mxu0  ;;  %v896_v63 = vpop.f32.mrf.mxu1  ;;  %1932 = vmatprep.mubr.bf16.mxu0 %v1566_v13  ;;  %v1504_v26 = vadd.bf16 1065369472, %v3293_v14  ;;  %v1251_v46 = vmul.bf16 %v1187_v38, %v4020_v22  ;;  %v4143_v12 = vpack.c.bf16 %v696_v44, %v692_v50  ;;  %v700_v47 = vadd.f32 %v699_v8, %v3911_v59 }
 0x177   : > { %v704_v48 = vadd.f32 %v703_v31, %v3911_v59  ;;  %v897_v43 = vadd.f32 %v896_v63, %v3913_v0  ;;  %3300 = vtanh.bf16 %v1380_v7  ;;  %v1313_v32 = vadd.bf16 %v1249_v37, %v4014_v9 }
 0x178   : > { %v705_v58 = vpop.f32.mrf.mxu0  ;;  %v898_v24 = vpop.f32.mrf.mxu1  ;;  %v893_v3 = vadd.f32 %v892_v16, %v3913_v0  ;;  %v1568_v31 = vmul.bf16 %v1504_v26, %v1056_v4  ;;  %v4150_v2 = vpack.c.bf16 %v889_v10, %v885_v1  ;;  %v1315_v16 = vadd.bf16 %v1251_v46, %v4020_v22 }
 0x179   : > { %v3295_v63 = vpop.eup %3294  ;;  %v706_v13 = vadd.f32 %v705_v58, %v3915_v60  ;;  %v1377_v14 = vmul.bf16 1061961548, %v1313_v32  ;;  %v4153_v44 = vpack.c.bf16 %v704_v48, %v700_v47  ;;  %v702_v4 = vadd.f32 %v701_v25, %v3915_v60 }
 0x17a   : > { %v709_v34 = vpop.f32.mrf.mxu0  ;;  %v902_v49 = vpop.f32.mrf.mxu1  ;;  %2093 = vmatprep.mubr.bf16.mxu1 %v1568_v31  ;;  %v1501_v50 = vadd.bf16 1065369472, %v3295_v63  ;;  %v4155_v8 = vpack.c.bf16 %v897_v43, %v893_v3  ;;  %v899_v1 = vadd.f32 %v898_v24, %v3917_v62  ;;  %v1134_v38 = vmul.bf16 1027030327, %v4143_v12 }
 0x17b   : > { %3302 = vtanh.bf16 %v1377_v14  ;;  %v895_v48 = vadd.f32 %v894_v40, %v3917_v62  ;;  %v1379_v43 = vmul.bf16 1061961548, %v1315_v16  ;;  %v4166_v46 = vpack.c.bf16 %v706_v13, %v702_v4 }
 0x17c   : > { %v711_v7 = vpop.f32.mrf.mxu0  ;;  %v904_v37 = vpop.f32.mrf.mxu1  ;;  %v1565_v26 = vmul.bf16 %v1501_v50, %v1053_v51  ;;  %v1190_v25 = vmul.bf16 %v1126_v33, %v4064_v54  ;;  %v1192_v24 = vmul.bf16 %v1128_v55, %v4073_v17  ;;  %v1059_v40 = vmul.bf16 1056980736, %v4020_v22 }
 0x17d   : > { %3304 = vtanh.bf16 %v1379_v43  ;;  %v4177_v63 = vpack.c.bf16 %v899_v1, %v895_v48  ;;  %v1189_v55 = vmul.bf16 %v1125_v20, %v4042_v21  ;;  %v710_v4 = vadd.f32 %v709_v34, %v3911_v59 }
 0x17e   : > { %v713_v10 = vpop.f32.mrf.mxu0  ;;  %v906_v58 = vpop.f32.mrf.mxu1  ;;  %1933 = vmatmul.mubr.bf16.gmra.mxu0 %v1565_v26  ;;  %v1254_v50 = vmul.bf16 %v1190_v25, %v4064_v54  ;;  %v1256_v33 = vmul.bf16 %v1192_v24, %v4073_v17  ;;  %v903_v26 = vadd.f32 %v902_v49, %v3913_v0  ;;  %v712_v34 = vadd.f32 %v711_v7, %v3915_v60 }
 0x17f   : > { %v3297_v31 = vpop.eup %3296  ;;  %v714_v43 = vadd.f32 %v713_v10, %v3911_v59  ;;  %v907_v48 = vadd.f32 %v906_v58, %v3913_v0  ;;  %v1253_v10 = vmul.bf16 %v1189_v55, %v4042_v21  ;;  %v905_v1 = vadd.f32 %v904_v37, %v3917_v62 }
 0x180   : > { %v715_v47 = vpop.f32.mrf.mxu0  ;;  %v908_v3 = vpop.f32.mrf.mxu1  ;;  %v1503_v16 = vadd.bf16 1065369472, %v3297_v31  ;;  %v1318_v25 = vadd.bf16 %v1254_v50, %v4064_v54  ;;  %v1320_v49 = vadd.bf16 %v1256_v33, %v4073_v17  ;;  %v1191_v50 = vmul.bf16 %v1127_v42, %v4047_v28 }
 0x181   : > { %v716_v51 = vadd.f32 %v715_v47, %v3915_v60  ;;  %v909_v58 = vadd.f32 %v908_v3, %v3917_v62  ;;  %v1317_v33 = vadd.bf16 %v1253_v10, %v4042_v21  ;;  %v1064_v35 = vmul.bf16 1056980736, %v4073_v17 }
 0x182   : > { %v719_v13 = vpop.f32.mrf.mxu0  ;;  %v912_v14 = vpop.f32.mrf.mxu1  ;;  %v1567_v20 = vmul.bf16 %v1503_v16, %v1055_v5  ;;  %v1382_v47 = vmul.bf16 1061961548, %v1318_v25  ;;  %v4203_v5 = vpack.c.bf16 %v714_v43, %v710_v4  ;;  %v1384_v7 = vmul.bf16 1061961548, %v1320_v49 }
 0x183   : > { %v3299_v31 = vpop.eup %3298  ;;  %v4206_v16 = vpack.c.bf16 %v907_v48, %v903_v26  ;;  %v4208_v37 = vpack.c.bf16 %v716_v51, %v712_v34  ;;  %v1255_v3 = vmul.bf16 %v1191_v50, %v4047_v28  ;;  %v1381_v4 = vmul.bf16 1061961548, %v1317_v33 }
 0x184   : > { %v721_v24 = vpop.f32.mrf.mxu0  ;;  %v4191_v52 = vpop.f32.mrf.mxu1  ;;  %2094 = vmatmul.mubr.bf16.gmra.mxu1 %v1567_v20  ;;  %v1506_v53 = vadd.bf16 1065369472, %v3299_v31  ;;  %3306 = vtanh.bf16 %v1382_v47  ;;  %v1140_v43 = vmul.bf16 1027030327, %v4177_v63  ;;  %v4214_v49 = vpack.c.bf16 %v909_v58, %v905_v1 }
 0x185   : > { %v3301_v55 = vpop.eup %3300  ;;  %3308 = vtanh.bf16 %v1384_v7  ;;  %v1062_v26 = vmul.bf16 1056980736, %v4064_v54  ;;  %v1319_v51 = vadd.bf16 %v1255_v3, %v4047_v28  ;;  %v720_v58 = vadd.f32 %v719_v13, %v3911_v59 }
 0x186   : > { %v723_v41 = vpop.f32.mrf.mxu0  ;;  %v916_v19 = vpop.f32.mrf.mxu1  ;;  %v1570_v42 = vmul.bf16 %v1506_v53, %v1058_v56  ;;  %v1508_v20 = vadd.bf16 1065369472, %v3301_v55  ;;  %v1061_v56 = vmul.bf16 1056980736, %v4042_v21  ;;  %3310 = vtanh.bf16 %v1381_v4 }
 0x187   : > { %v1383_v50 = vmul.bf16 1061961548, %v1319_v51  ;;  %v913_v33 = vadd.f32 %v912_v14, %v3913_v0  ;;  %v724_v55 = vadd.f32 %v723_v41, %v3911_v59  ;;  %v1194_v13 = vmul.bf16 %v1130_v39, %v4094_v30 }
 0x188   : > { %v725_v25 = vpop.f32.mrf.mxu0  ;;  %v918_v32 = vpop.f32.mrf.mxu1  ;;  %1940 = vmatprep.mubr.bf16.mxu0 %v1570_v42  ;;  %v1572_v10 = vmul.bf16 %v1508_v20, %v1060_v18  ;;  %v917_v42 = vadd.f32 %v916_v19, %v3913_v0  ;;  %v1196_v41 = vmul.bf16 %v1132_v57, %v4098_v29  ;;  %v1193_v39 = vmul.bf16 %v1129_v15, %v4085_v45 }
 0x189   : > { %v3303_v31 = vpop.eup %3302  ;;  %3312 = vtanh.bf16 %v1383_v50  ;;  %v726_v14 = vadd.f32 %v725_v25, %v3915_v60  ;;  %v919_v19 = vadd.f32 %v918_v32, %v3917_v62  ;;  %v1258_v1 = vmul.bf16 %v1194_v13, %v4094_v30 }
 0x18a   : > { %v729_v48 = vpop.f32.mrf.mxu0  ;;  %v922_v34 = vpop.f32.mrf.mxu1  ;;  %2101 = vmatprep.mubr.bf16.mxu1 %v1572_v10  ;;  %v1505_v36 = vadd.bf16 1065369472, %v3303_v31  ;;  %v722_v31 = vadd.f32 %v721_v24, %v3915_v60  ;;  %v4251_v24 = vpack.c.bf16 %v724_v55, %v720_v58  ;;  %v1260_v25 = vmul.bf16 %v1196_v41, %v4098_v29 }
 0x18b   : > { %v3305_v51 = vpop.eup %3304  ;;  %v1195_v57 = vmul.bf16 %v1131_v61, %v4092_v11  ;;  %v1322_v15 = vadd.bf16 %v1258_v1, %v4094_v30  ;;  %v1257_v13 = vmul.bf16 %v1193_v39, %v4085_v45  ;;  %v1063_v58 = vmul.bf16 1056980736, %v4047_v28 }
 0x18c   : > { %v4225_v53 = vpop.f32.mrf.mxu0  ;;  %v4227_v7 = vpop.f32.mrf.mxu1  ;;  %v1569_v10 = vmul.bf16 %v1505_v36, %v1057_v23  ;;  %v1507_v50 = vadd.bf16 1065369472, %v3305_v51  ;;  %v915_v23 = vadd.f32 %v4191_v52, %v3917_v62  ;;  %v4259_v36 = vpack.c.bf16 %v917_v42, %v913_v33 }
 0x18d   : > { %v4268_v55 = vpack.c.bf16 %v726_v14, %v722_v31  ;;  %v1259_v61 = vmul.bf16 %v1195_v57, %v4092_v11  ;;  %v1386_v1 = vmul.bf16 1061961548, %v1322_v15  ;;  %v1321_v33 = vadd.bf16 %v1257_v13, %v4085_v45 }
 0x18e   : > { %v733_v20 = vpop.f32.mrf.mxu0  ;;  %v926_v4 = vpop.f32.mrf.mxu1  ;;  %1941 = vmatmul.mubr.bf16.gmra.mxu0 %v1569_v10  ;;  %v1571_v32 = vmul.bf16 %v1507_v50, %v1059_v40  ;;  %v1324_v10 = vadd.bf16 %v1260_v25, %v4098_v29  ;;  %v4272_v22 = vpack.c.bf16 %v919_v19, %v915_v23  ;;  %v730_v40 = vadd.f32 %v729_v48, %v3911_v59 }
 0x18f   : > { %v923_v31 = vadd.f32 %v922_v34, %v3913_v0  ;;  %v1323_v39 = vadd.bf16 %v1259_v61, %v4092_v11  ;;  %v1066_v23 = vmul.bf16 1056980736, %v4094_v30  ;;  %3314 = vtanh.bf16 %v1386_v1 }
 0x190   : > { %v735_v47 = vpop.f32.mrf.mxu0  ;;  %v928_v9 = vpop.f32.mrf.mxu1  ;;  %2102 = vmatmul.mubr.bf16.gmra.mxu1 %v1571_v32  ;;  %v1388_v14 = vmul.bf16 1061961548, %v1324_v10  ;;  %v1385_v48 = vmul.bf16 1061961548, %v1321_v33  ;;  %v734_v61 = vadd.f32 %v733_v20, %v3911_v59  ;;  %v732_v20 = vadd.f32 %v4225_v53, %v3915_v60 }
 0x191   : > { %v1387_v50 = vmul.bf16 1061961548, %v1323_v39  ;;  %v925_v54 = vadd.f32 %v4227_v7, %v3917_v62  ;;  %v1198_v17 = vmul.bf16 %v1134_v38, %v4143_v12  ;;  %v5306_v7 = vmul.bf16 1027030327, %v4126_v6 }
 0x192   : > { %v4263_v51 = vpop.f32.mrf.mxu0  ;;  %v4265_v52 = vpop.f32.mrf.mxu1  ;;  %3316 = vtanh.bf16 %v1388_v14  ;;  %v927_v14 = vadd.f32 %v926_v4, %v3913_v0  ;;  %v1065_v21 = vmul.bf16 1056980736, %v4085_v45 }
 0x193   : > { %v3307_v25 = vpop.eup %3306  ;;  %3318 = vtanh.bf16 %v1385_v48  ;;  %v736_v48 = vadd.f32 %v735_v47, %v3915_v60 }
 0x194   : > { %v4276_v42 = vpop.f32.mrf.mxu0  ;;  %v4278_v41 = vpop.f32.mrf.mxu1  ;;  %v1510_v13 = vadd.bf16 1065369472, %v3307_v25  ;;  %v1068_v25 = vmul.bf16 1056980736, %v4098_v29  ;;  %3320 = vtanh.bf16 %v1387_v50  ;;  %v4318_v50 = vpack.c.bf16 %v734_v61, %v730_v40 }
 0x195   : > { %v3309_v15 = vpop.eup %3308 }
 0x196   : > { %v743_v57 = vpop.f32.mrf.mxu0  ;;  %v4285_v32 = vpop.f32.mrf.mxu1  ;;  %v1512_v34 = vadd.bf16 1065369472, %v3309_v15  ;;  %v1574_v33 = vmul.bf16 %v1510_v13, %v1062_v26  ;;  %v929_v26 = vadd.f32 %v928_v9, %v3917_v62  ;;  %v1197_v13 = vmul.bf16 %v5306_v7, %v4126_v6 }
 0x197   : > { %v3311_v1 = vpop.eup %3310  ;;  %v5307_v9 = vmul.bf16 1027030327, %v4139_v27 }
 0x198   : > { %v4290_v19 = vpop.f32.mrf.mxu0  ;;  %v4292_v18 = vpop.f32.mrf.mxu1  ;;  %v1576_v39 = vmul.bf16 %v1512_v34, %v1064_v35  ;;  %v1509_v15 = vadd.bf16 1065369472, %v3311_v1  ;;  %1948 = vmatprep.mubr.bf16.mxu0 %v1574_v33  ;;  %v5305_v35 = vmul.bf16 1027030327, %v4150_v2  ;;  %v4326_v1 = vpack.c.bf16 %v927_v14, %v923_v31 }
 0x199   : > { %v3313_v4 = vpop.eup %3312  ;;  %v1199_v34 = vmul.bf16 %v5307_v9, %v4139_v27  ;;  %v1262_v33 = vmul.bf16 %v1198_v17, %v4143_v12  ;;  %v1261_v40 = vmul.bf16 %v1197_v13, %v4126_v6  ;;  %v4341_v14 = vpack.c.bf16 %v929_v26, %v925_v54 }
 0x19a   : > { %v4303_v10 = vpop.f32.mrf.mxu0  ;;  %v4305_v3 = vpop.f32.mrf.mxu1  ;;  %v1200_v53 = vmul.bf16 %v5305_v35, %v4150_v2  ;;  %2109 = vmatprep.mubr.bf16.mxu1 %v1576_v39  ;;  %v1573_v47 = vmul.bf16 %v1509_v15, %v1061_v56  ;;  %v1511_v38 = vadd.bf16 1065369472, %v3313_v4  ;;  %v4333_v56 = vpack.c.bf16 %v736_v48, %v732_v20 }
 0x19b   : > { %v1263_v61 = vmul.bf16 %v1199_v34, %v4139_v27  ;;  %v1326_v17 = vadd.bf16 %v1262_v33, %v4143_v12  ;;  %v1067_v4 = vmul.bf16 1056980736, %v4092_v11  ;;  %v1325_v20 = vadd.bf16 %v1261_v40, %v4126_v6 }
 0x19c   : > { %v1264_v39 = vmul.bf16 %v1200_v53, %v4150_v2  ;;  %v4330_v35 = vpop.f32.mrf.mxu0  ;;  %1949 = vmatmul.mubr.bf16.gmra.mxu0 %v1573_v47  ;;  %v4337_v15 = vpop.f32.mrf.mxu1  ;;  %v1575_v31 = vmul.bf16 %v1511_v38, %v1063_v58  ;;  %v1150_v54 = vmul.bf16 1027030327, %v4333_v56  ;;  %v744_v9 = vadd.f32 %v743_v57, %v3911_v59 }
 0x19d   : > { %v1327_v48 = vadd.bf16 %v1263_v61, %v4139_v27  ;;  %v1390_v7 = vmul.bf16 1061961548, %v1326_v17  ;;  %v1389_v26 = vmul.bf16 1061961548, %v1325_v20  ;;  %v740_v38 = vadd.f32 %v4263_v51, %v3911_v59 }
 0x19e   : > { %v1328_v53 = vadd.bf16 %v1264_v39, %v4150_v2  ;;  %2110 = vmatmul.mubr.bf16.gmra.mxu1 %v1575_v31  ;;  %v4350_v58 = vpop.f32.mrf.mxu0  ;;  %v4354_v11 = vpop.f32.mrf.mxu1  ;;  %v933_v33 = vadd.f32 %v4265_v52, %v3913_v0  ;;  %v1070_v40 = vmul.bf16 1056980736, %v4143_v12  ;;  %v1072_v61 = vmul.bf16 1056980736, %v4150_v2 }
 0x19f   : > { %v1391_v13 = vmul.bf16 1061961548, %v1327_v48  ;;  %3322 = vtanh.bf16 %v1390_v7  ;;  %v3315_v39 = vpop.eup %3314  ;;  %v742_v57 = vadd.f32 %v4276_v42, %v3915_v60  ;;  %v5308_v51 = vmul.bf16 1027030327, %v4166_v46 }
 0x1a0   : > { %v1392_v28 = vmul.bf16 1061961548, %v1328_v53  ;;  %v3317_v31 = vpop.eup %3316  ;;  %v1514_v17 = vadd.bf16 1065369472, %v3315_v39  ;;  %v937_v53 = vadd.f32 %v4285_v32, %v3913_v0  ;;  %v755_v20 = vpop.f32.mrf.mxu0  ;;  %v4370_v47 = vpack.c.bf16 %v744_v9, %v740_v38 }
 0x1a1   : > { %v1202_v52 = vmul.bf16 %v5308_v51, %v4166_v46  ;;  %v3319_v48 = vpop.eup %3318  ;;  %v1516_v7 = vadd.bf16 1065369472, %v3317_v31  ;;  %v1204_v42 = vmul.bf16 %v1140_v43, %v4177_v63  ;;  %v746_v51 = vadd.f32 %v4290_v19, %v3915_v60 }
 0x1a2   : > { %3324 = vtanh.bf16 %v1392_v28  ;;  %v4375_v28 = vpop.f32.mrf.mxu1  ;;  %v1578_v32 = vmul.bf16 %v1514_v17, %v1066_v23  ;;  %v1513_v39 = vadd.bf16 1065369472, %v3319_v48  ;;  %v5309_v43 = vmul.bf16 1027030327, %v4153_v44  ;;  %v4394_v29 = vpop.f32.mrf.mxu0 }
 0x1a3   : > { %3326 = vtanh.bf16 %v1389_v26  ;;  %v3321_v26 = vpop.eup %3320  ;;  %v1266_v45 = vmul.bf16 %v1202_v52, %v4166_v46  ;;  %v1268_v38 = vmul.bf16 %v1204_v42, %v4177_v63  ;;  %v939_v30 = vadd.f32 %v4292_v18, %v3917_v62 }
 0x1a4   : > { %3328 = vtanh.bf16 %v1391_v13  ;;  %v1580_v13 = vmul.bf16 %v1516_v7, %v1068_v25  ;;  %v1515_v9 = vadd.bf16 1065369472, %v3321_v26  ;;  %v1201_v31 = vmul.bf16 %v5309_v43, %v4153_v44  ;;  %1956 = vmatprep.mubr.bf16.mxu0 %v1578_v32 }
 0x1a5   : > { %v1577_v34 = vmul.bf16 %v1513_v39, %v1065_v21  ;;  %v1330_v23 = vadd.bf16 %v1266_v45, %v4166_v46  ;;  %v5310_v19 = vmul.bf16 1027030327, %v4155_v8  ;;  %v4396_v52 = vpack.c.bf16 %v937_v53, %v933_v33  ;;  %v4400_v21 = vpop.f32.mrf.mxu1 }
 0x1a6   : > { %2117 = vmatprep.mubr.bf16.mxu1 %v1580_v13  ;;  %v1579_v25 = vmul.bf16 %v1515_v9, %v1067_v4  ;;  %v1332_v48 = vadd.bf16 %v1268_v38, %v4177_v63  ;;  %v1265_v7 = vmul.bf16 %v1201_v31, %v4153_v44  ;;  %v935_v18 = vadd.f32 %v4278_v41, %v3917_v62 }
 0x1a7   : > { %v1203_v17 = vmul.bf16 %v5310_v19, %v4155_v8  ;;  %1957 = vmatmul.mubr.bf16.gmra.mxu0 %v1577_v34  ;;  %v4404_v45 = vpack.c.bf16 %v746_v51, %v742_v57  ;;  %v1394_v42 = vmul.bf16 1061961548, %v1330_v23  ;;  %v1069_v4 = vmul.bf16 1056980736, %v4126_v6  ;;  %v4414_v34 = vpop.f32.mrf.mxu0 }
 0x1a8   : > { %2118 = vmatmul.mubr.bf16.gmra.mxu1 %v1579_v25  ;;  %v1071_v33 = vmul.bf16 1056980736, %v4139_v27  ;;  %v1396_v53 = vmul.bf16 1061961548, %v1332_v48  ;;  %v1329_v32 = vadd.bf16 %v1265_v7, %v4153_v44  ;;  %v4411_v13 = vpack.c.bf16 %v939_v30, %v935_v18  ;;  %v4419_v27 = vpop.f32.mrf.mxu1 }
 0x1a9   : > { %v1267_v26 = vmul.bf16 %v1203_v17, %v4155_v8  ;;  %3330 = vtanh.bf16 %v1394_v42  ;;  %v754_v6 = vadd.f32 %v4350_v58, %v3911_v59  ;;  %v1154_v9 = vmul.bf16 1027030327, %v4404_v45  ;;  %v763_v48 = vpop.f32.mrf.mxu0 }
 0x1aa   : > { %3332 = vtanh.bf16 %v1396_v53  ;;  %v1393_v51 = vmul.bf16 1061961548, %v1329_v32  ;;  %v750_v38 = vadd.f32 %v4303_v10, %v3911_v59  ;;  %v947_v31 = vadd.f32 %v4354_v11, %v3913_v0 }
 0x1ab   : > { %v1331_v41 = vadd.bf16 %v1267_v26, %v4155_v8  ;;  %v943_v30 = vadd.f32 %v4305_v3, %v3913_v0  ;;  %v1074_v23 = vmul.bf16 1056980736, %v4166_v46  ;;  %v756_v19 = vadd.f32 %v755_v20, %v3915_v60  ;;  %v956_v26 = vpop.f32.mrf.mxu1 }
 0x1ac   : > { %3334 = vtanh.bf16 %v1393_v51  ;;  %v1156_v17 = vmul.bf16 1027030327, %v4411_v13  ;;  %v1076_v25 = vmul.bf16 1056980736, %v4177_v63  ;;  %v752_v10 = vadd.f32 %v4330_v35, %v3915_v60 }
 0x1ad   : > { %v1395_v43 = vmul.bf16 1061961548, %v1331_v41  ;;  %v3323_v58 = vpop.eup %3322  ;;  %v945_v3 = vadd.f32 %v4337_v15, %v3917_v62  ;;  %v4436_v18 = vpack.c.bf16 %v754_v6, %v750_v38  ;;  %v5311_v20 = vmul.bf16 1027030327, %v4208_v37  ;;  %v958_v2 = vpop.f32.mrf.mxu1 }
 0x1ae   : > { %v1518_v11 = vadd.bf16 1065369472, %v3323_v58  ;;  %v4441_v41 = vpack.c.bf16 %v947_v31, %v943_v30  ;;  %v949_v35 = vadd.f32 %v4375_v28, %v3917_v62  ;;  %v5312_v51 = vmul.bf16 1027030327, %v4214_v49 }
 0x1af   : > { %3336 = vtanh.bf16 %v1395_v43  ;;  %v1206_v42 = vmul.bf16 %v5311_v20, %v4208_v37  ;;  %v4450_v38 = vpack.c.bf16 %v756_v19, %v752_v10  ;;  %v5313_v28 = vmul.bf16 1027030327, %v4203_v5 }
 0x1b0   : > { %v3325_v7 = vpop.eup %3324  ;;  %v1208_v43 = vmul.bf16 %v5312_v51, %v4214_v49  ;;  %v1582_v15 = vmul.bf16 %v1518_v11, %v1070_v40  ;;  %v765_v51 = vpop.f32.mrf.mxu0  ;;  %v1157_v12 = vmul.bf16 1027030327, %v4436_v18  ;;  %v5314_v19 = vmul.bf16 1027030327, %v4206_v16 }
 0x1b1   : > { %v3327_v53 = vpop.eup %3326  ;;  %v1520_v32 = vadd.bf16 1065369472, %v3325_v7  ;;  %v1270_v20 = vmul.bf16 %v1206_v42, %v4208_v37  ;;  %v1205_v57 = vmul.bf16 %v5313_v28, %v4203_v5  ;;  %v4464_v11 = vpack.c.bf16 %v949_v35, %v945_v3 }
 0x1b2   : > { %v3329_v58 = vpop.eup %3328  ;;  %v1517_v6 = vadd.bf16 1065369472, %v3327_v53  ;;  %v1272_v7 = vmul.bf16 %v1208_v43, %v4214_v49  ;;  %1964 = vmatprep.mubr.bf16.mxu0 %v1582_v15  ;;  %v1207_v10 = vmul.bf16 %v5314_v19, %v4206_v16  ;;  %v1075_v15 = vmul.bf16 1056980736, %v4155_v8 }
 0x1b3   : > { %v1584_v31 = vmul.bf16 %v1520_v32, %v1072_v61  ;;  %v1519_v30 = vadd.bf16 1065369472, %v3329_v58  ;;  %v1334_v40 = vadd.bf16 %v1270_v20, %v4208_v37  ;;  %v1269_v53 = vmul.bf16 %v1205_v57, %v4203_v5  ;;  %v962_v20 = vpop.f32.mrf.mxu1 }
 0x1b4   : > { %v1581_v39 = vmul.bf16 %v1517_v6, %v1069_v4  ;;  %v1336_v42 = vadd.bf16 %v1272_v7, %v4214_v49  ;;  %v1073_v4 = vmul.bf16 1056980736, %v4153_v44  ;;  %v1159_v32 = vmul.bf16 1027030327, %v4441_v41  ;;  %v4475_v6 = vpop.f32.mrf.mxu0 }
 0x1b5   : > { %2125 = vmatprep.mubr.bf16.mxu1 %v1584_v31  ;;  %v1583_v61 = vmul.bf16 %v1519_v30, %v1071_v33  ;;  %v1398_v43 = vmul.bf16 1061961548, %v1334_v40  ;;  %v1271_v58 = vmul.bf16 %v1207_v10, %v4206_v16  ;;  %v760_v33 = vadd.f32 %v4394_v29, %v3911_v59 }
 0x1b6   : > { %1965 = vmatmul.mubr.bf16.gmra.mxu0 %v1581_v39  ;;  %v1400_v3 = vmul.bf16 1061961548, %v1336_v42  ;;  %v1333_v35 = vadd.bf16 %v1269_v53, %v4203_v5  ;;  %v4478_v39 = vmul.bf16 %v1157_v12, %v4436_v18  ;;  %v1158_v44 = vmul.bf16 1027030327, %v4450_v38  ;;  %v4491_v53 = vpop.f32.mrf.mxu0 }
 0x1b7   : > { %2126 = vmatmul.mubr.bf16.gmra.mxu1 %v1583_v61  ;;  %3338 = vtanh.bf16 %v1398_v43  ;;  %v1335_v57 = vadd.bf16 %v1271_v58, %v4206_v16  ;;  %v3331_v31 = vpop.eup %3330  ;;  %v953_v29 = vadd.f32 %v4400_v21, %v3913_v0  ;;  %v4486_v40 = vmul.bf16 %v1159_v32, %v4441_v41 }
 0x1b8   : > { %3340 = vtanh.bf16 %v1400_v3  ;;  %v1397_v30 = vmul.bf16 1061961548, %v1333_v35  ;;  %v3333_v7 = vpop.eup %3332  ;;  %v1522_v28 = vadd.bf16 1065369472, %v3331_v31  ;;  %v764_v19 = vadd.f32 %v763_v48, %v3911_v59  ;;  %v4498_v3 = vpop.f32.mrf.mxu1 }
 0x1b9   : > { %v1399_v12 = vmul.bf16 1061961548, %v1335_v57  ;;  %v1524_v10 = vadd.bf16 1065369472, %v3333_v7  ;;  %v1078_v61 = vmul.bf16 1056980736, %v4208_v37  ;;  %v957_v32 = vadd.f32 %v956_v26, %v3913_v0 }
 0x1ba   : > { %v1080_v42 = vmul.bf16 1056980736, %v4214_v49  ;;  %3342 = vtanh.bf16 %v1397_v30  ;;  %v3335_v43 = vpop.eup %3334  ;;  %v1586_v21 = vmul.bf16 %v1522_v28, %v1074_v23  ;;  %v1077_v31 = vmul.bf16 1056980736, %v4203_v5 }
 0x1bb   : > { %3344 = vtanh.bf16 %v1399_v12  ;;  %v1588_v35 = vmul.bf16 %v1524_v10, %v1076_v25  ;;  %v1521_v57 = vadd.bf16 1065369472, %v3335_v43  ;;  %v766_v30 = vadd.f32 %v765_v51, %v3915_v60  ;;  %v773_v10 = vpop.f32.mrf.mxu0 }
 0x1bc   : > { %1972 = vmatprep.mubr.bf16.mxu0 %v1586_v21  ;;  %v1079_v7 = vmul.bf16 1056980736, %v4206_v16  ;;  %v4507_v28 = vpack.c.bf16 %v764_v19, %v760_v33  ;;  %v762_v63 = vadd.f32 %v4414_v34, %v3915_v60  ;;  %v959_v25 = vadd.f32 %v958_v2, %v3917_v62 }
 0x1bd   : > { %v3337_v48 = vpop.eup %3336  ;;  %2133 = vmatprep.mubr.bf16.mxu1 %v1588_v35  ;;  %v1585_v26 = vmul.bf16 %v1521_v57, %v1073_v4  ;;  %v5315_v12 = vmul.bf16 1027030327, %v4268_v55  ;;  %v4515_v21 = vpack.c.bf16 %v957_v32, %v953_v29  ;;  %v5317_v4 = vmul.bf16 1027030327, %v4251_v24  ;;  %v966_v35 = vpop.f32.mrf.mxu1 }
 0x1be   : > { %v1523_v46 = vadd.bf16 1065369472, %v3337_v48  ;;  %v5316_v48 = vmul.bf16 1027030327, %v4272_v22  ;;  %v955_v34 = vadd.f32 %v4419_v27, %v3917_v62  ;;  %v4525_v2 = vpack.c.bf16 %v766_v30, %v762_v63 }
 0x1bf   : > { %v1210_v51 = vmul.bf16 %v5315_v12, %v4268_v55  ;;  %v1209_v19 = vmul.bf16 %v5317_v4, %v4251_v24  ;;  %1973 = vmatmul.mubr.bf16.gmra.mxu0 %v1585_v26  ;;  %v1161_v32 = vmul.bf16 1027030327, %v4507_v28  ;;  %v774_v26 = vadd.f32 %v773_v10, %v3911_v59  ;;  %v968_v58 = vpop.f32.mrf.mxu1 }
 0x1c0   : > { %v1587_v43 = vmul.bf16 %v1523_v46, %v1075_v15  ;;  %v1212_v33 = vmul.bf16 %v5316_v48, %v4272_v22  ;;  %v5318_v15 = vmul.bf16 1027030327, %v4259_v36  ;;  %v4535_v48 = vpack.c.bf16 %v959_v25, %v955_v34 }
 0x1c1   : > { %v1274_v57 = vmul.bf16 %v1210_v51, %v4268_v55  ;;  %v1273_v12 = vmul.bf16 %v1209_v19, %v4251_v24  ;;  %v967_v63 = vadd.f32 %v966_v35, %v3913_v0  ;;  %v1163_v51 = vmul.bf16 1027030327, %v4515_v21 }
 0x1c2   : > { %v1211_v29 = vmul.bf16 %v5318_v15, %v4259_v36  ;;  %2134 = vmatmul.mubr.bf16.gmra.mxu1 %v1587_v43  ;;  %v1276_v46 = vmul.bf16 %v1212_v33, %v4272_v22  ;;  %v770_v43 = vadd.f32 %v4475_v6, %v3911_v59  ;;  %v963_v25 = vadd.f32 %v962_v20, %v3913_v0  ;;  %v775_v6 = vpop.f32.mrf.mxu0 }
 0x1c3   : > { %v1338_v27 = vadd.bf16 %v1274_v57, %v4268_v55  ;;  %v1337_v33 = vadd.bf16 %v1273_v12, %v4251_v24  ;;  %v4549_v15 = vmul.bf16 %v1161_v32, %v4507_v28  ;;  %v5321_v16 = vmul.bf16 1027030327, %v4326_v1 }
 0x1c4   : > { %v1275_v30 = vmul.bf16 %v1211_v29, %v4259_v36  ;;  %v1340_v4 = vadd.bf16 %v1276_v46, %v4272_v22  ;;  %v4551_v23 = vpack.c.bf16 %v774_v26, %v770_v43  ;;  %v4553_v19 = vpack.c.bf16 %v967_v63, %v963_v25 }
 0x1c5   : > { %v1402_v10 = vmul.bf16 1061961548, %v1338_v27  ;;  %v3339_v57 = vpop.eup %3338  ;;  %v1401_v29 = vmul.bf16 1061961548, %v1337_v33  ;;  %v4556_v27 = vmul.bf16 %v1163_v51, %v4515_v21  ;;  %v776_v43 = vadd.f32 %v775_v6, %v3915_v60 }
 0x1c6   : > { %v1339_v34 = vadd.bf16 %v1275_v30, %v4259_v36  ;;  %v1404_v35 = vmul.bf16 1061961548, %v1340_v4  ;;  %v3341_v46 = vpop.eup %3340  ;;  %v1526_v8 = vadd.bf16 1065369472, %v3339_v57  ;;  %v1164_v30 = vmul.bf16 1027030327, %v4535_v48  ;;  %v972_v57 = vpop.f32.mrf.mxu1 }
 0x1c7   : > { %3346 = vtanh.bf16 %v1402_v10  ;;  %v1528_v20 = vadd.bf16 1065369472, %v3341_v46  ;;  %v969_v4 = vadd.f32 %v968_v58, %v3917_v62  ;;  %v1165_v51 = vmul.bf16 1027030327, %v4551_v23  ;;  %v779_v10 = vpop.f32.mrf.mxu0 }
 0x1c8   : > { %v1403_v12 = vmul.bf16 1061961548, %v1339_v34  ;;  %3348 = vtanh.bf16 %v1404_v35  ;;  %v3343_v32 = vpop.eup %3342  ;;  %v1590_v26 = vmul.bf16 %v1526_v8, %v1078_v61  ;;  %v772_v8 = vadd.f32 %v4491_v53, %v3915_v60 }
 0x1c9   : > { %3350 = vtanh.bf16 %v1401_v29  ;;  %v3345_v33 = vpop.eup %3344  ;;  %v1592_v63 = vmul.bf16 %v1528_v20, %v1080_v42  ;;  %v1525_v25 = vadd.bf16 1065369472, %v3343_v32  ;;  %v1167_v61 = vmul.bf16 1027030327, %v4553_v19 }
 0x1ca   : > { %3352 = vtanh.bf16 %v1403_v12  ;;  %1980 = vmatprep.mubr.bf16.mxu0 %v1590_v26  ;;  %v1527_v34 = vadd.bf16 1065369472, %v3345_v33  ;;  %v1082_v42 = vmul.bf16 1056980736, %v4268_v55  ;;  %v965_v58 = vadd.f32 %v4498_v3, %v3917_v62  ;;  %v781_v12 = vpop.f32.mrf.mxu0 }
 0x1cb   : > { %2141 = vmatprep.mubr.bf16.mxu1 %v1592_v63  ;;  %v1589_v49 = vmul.bf16 %v1525_v25, %v1077_v31  ;;  %v1214_v35 = vmul.bf16 %v1150_v54, %v4333_v56  ;;  %v4581_v53 = vpack.c.bf16 %v776_v43, %v772_v8  ;;  %v5319_v6 = vmul.bf16 1027030327, %v4341_v14 }
 0x1cc   : > { %v1591_v29 = vmul.bf16 %v1527_v34, %v1079_v7  ;;  %v5320_v55 = vmul.bf16 1027030327, %v4318_v50  ;;  %v4590_v3 = vmul.bf16 %v1165_v51, %v4551_v23  ;;  %v4592_v46 = vpack.c.bf16 %v969_v4, %v965_v58  ;;  %v974_v51 = vpop.f32.mrf.mxu1 }
 0x1cd   : > { %v1216_v5 = vmul.bf16 %v5319_v6, %v4341_v14  ;;  %1981 = vmatmul.mubr.bf16.gmra.mxu0 %v1589_v49  ;;  %v1278_v54 = vmul.bf16 %v1214_v35, %v4333_v56  ;;  %v1215_v7 = vmul.bf16 %v5321_v16, %v4326_v1  ;;  %v4601_v32 = vmul.bf16 %v1167_v61, %v4553_v19 }
 0x1ce   : > { %v1213_v31 = vmul.bf16 %v5320_v55, %v4318_v50  ;;  %2142 = vmatmul.mubr.bf16.gmra.mxu1 %v1591_v29  ;;  %v1084_v4 = vmul.bf16 1056980736, %v4272_v22  ;;  %v1081_v33 = vmul.bf16 1056980736, %v4251_v24  ;;  %v1083_v34 = vmul.bf16 1056980736, %v4259_v36  ;;  %v783_v29 = vpop.f32.mrf.mxu0 }
 0x1cf   : > { %v1280_v26 = vmul.bf16 %v1216_v5, %v4341_v14  ;;  %v1342_v63 = vadd.bf16 %v1278_v54, %v4333_v56  ;;  %v1279_v25 = vmul.bf16 %v1215_v7, %v4326_v1  ;;  %v780_v36 = vadd.f32 %v779_v10, %v3911_v59  ;;  %v976_v7 = vpop.f32.mrf.mxu1 }
 0x1d0   : > { %v1277_v43 = vmul.bf16 %v1213_v31, %v4318_v50  ;;  %v973_v31 = vadd.f32 %v972_v57, %v3913_v0  ;;  %v1086_v54 = vmul.bf16 1056980736, %v4333_v56  ;;  %v784_v10 = vadd.f32 %v783_v29, %v3911_v59 }
 0x1d1   : > { %v1344_v61 = vadd.bf16 %v1280_v26, %v4341_v14  ;;  %v1406_v35 = vmul.bf16 1061961548, %v1342_v63  ;;  %v1343_v24 = vadd.bf16 %v1279_v25, %v4326_v1  ;;  %v1085_v63 = vmul.bf16 1056980736, %v4318_v50 }
 0x1d2   : > { %v1341_v49 = vadd.bf16 %v1277_v43, %v4318_v50  ;;  %v1088_v43 = vmul.bf16 1056980736, %v4341_v14  ;;  %v1218_v57 = vmul.bf16 %v1154_v9, %v4404_v45  ;;  %v1220_v9 = vmul.bf16 %v1156_v17, %v4411_v13 }
 0x1d3   : > { %v1408_v5 = vmul.bf16 1061961548, %v1344_v61  ;;  %3354 = vtanh.bf16 %v1406_v35  ;;  %v1407_v16 = vmul.bf16 1061961548, %v1343_v24  ;;  %v785_v61 = vpop.f32.mrf.mxu0  ;;  %v782_v24 = vadd.f32 %v781_v12, %v3915_v60 }
 0x1d4   : > { %v1405_v55 = vmul.bf16 1061961548, %v1341_v49  ;;  %v1282_v59 = vmul.bf16 %v1218_v57, %v4404_v45  ;;  %v786_v37 = vadd.f32 %v785_v61, %v3915_v60  ;;  %v1284_v60 = vmul.bf16 %v1220_v9, %v4411_v13 }
 0x1d5   : > { %v3347_v26 = vpop.eup %3346  ;;  %3356 = vtanh.bf16 %v1408_v5  ;;  %v975_v5 = vadd.f32 %v974_v51, %v3917_v62  ;;  %v5329_v14 = vmul.bf16 1056980736, %v4326_v1  ;;  %v5330_v50 = vmul.bf16 %v4556_v27, %v4515_v21 }
 0x1d6   : > { %v3349_v6 = vpop.eup %3348  ;;  %v1530_v58 = vadd.bf16 1065369472, %v3347_v26  ;;  %3358 = vtanh.bf16 %v1405_v55  ;;  %v977_v26 = vadd.f32 %v976_v7, %v3913_v0  ;;  %v978_v55 = vpop.f32.mrf.mxu1  ;;  %v5322_v0 = vmul.bf16 1027030327, %v4370_v47 }
 0x1d7   : > { %v3351_v49 = vpop.eup %3350  ;;  %v1532_v35 = vadd.bf16 1065369472, %v3349_v6  ;;  %3360 = vtanh.bf16 %v1407_v16  ;;  %v4637_v6 = vpack.c.bf16 %v784_v10, %v780_v36  ;;  %v1222_v36 = vmul.bf16 %v1158_v44, %v4450_v38 }
 0x1d8   : > { %v3353_v22 = vpop.eup %3352  ;;  %v1594_v8 = vmul.bf16 %v1530_v58, %v1082_v42  ;;  %v1529_v20 = vadd.bf16 1065369472, %v3351_v49  ;;  %v1346_v42 = vadd.bf16 %v1282_v59, %v4404_v45  ;;  %v1217_v51 = vmul.bf16 %v5322_v0, %v4370_v47 }
 0x1d9   : > { %v1596_v29 = vmul.bf16 %v1532_v35, %v1084_v4  ;;  %v1531_v25 = vadd.bf16 1065369472, %v3353_v22  ;;  %v979_v4 = vadd.f32 %v978_v55, %v3917_v62  ;;  %v5323_v22 = vmul.bf16 1027030327, %v4396_v52 }
 0x1da   : > { %1988 = vmatprep.mubr.bf16.mxu0 %v1594_v8  ;;  %v1593_v12 = vmul.bf16 %v1529_v20, %v1081_v33  ;;  %v4648_v20 = vpack.c.bf16 %v977_v26, %v973_v31  ;;  %v1410_v33 = vmul.bf16 1061961548, %v1346_v42  ;;  %v1281_v8 = vmul.bf16 %v1217_v51, %v4370_v47 }
 0x1db   : > { %2149 = vmatprep.mubr.bf16.mxu1 %v1596_v29  ;;  %v1595_v58 = vmul.bf16 %v1531_v25, %v1083_v34  ;;  %v1219_v17 = vmul.bf16 %v5323_v22, %v4396_v52  ;;  %v4654_v34 = vpack.c.bf16 %v786_v37, %v782_v24  ;;  %v1348_v62 = vadd.bf16 %v1284_v60, %v4411_v13 }
 0x1dc   : > { %1989 = vmatmul.mubr.bf16.gmra.mxu0 %v1593_v12  ;;  %v5324_v7 = vmul.bf16 1027030327, %v4464_v11  ;;  %3362 = vtanh.bf16 %v1410_v33  ;;  %v1345_v31 = vadd.bf16 %v1281_v8, %v4370_v47  ;;  %v1286_v10 = vmul.bf16 %v1222_v36, %v4450_v38 }
 0x1dd   : > { %2150 = vmatmul.mubr.bf16.gmra.mxu1 %v1595_v58  ;;  %v1283_v16 = vmul.bf16 %v1219_v17, %v4396_v52  ;;  %v5325_v44 = vmul.bf16 %v4478_v39, %v4436_v18  ;;  %v1169_v37 = vmul.bf16 1027030327, %v4637_v6  ;;  %v1412_v57 = vmul.bf16 1061961548, %v1348_v62 }
 0x1de   : > { %v1224_v25 = vmul.bf16 %v5324_v7, %v4464_v11  ;;  %v4670_v24 = vpack.c.bf16 %v979_v4, %v975_v5  ;;  %v1409_v26 = vmul.bf16 1061961548, %v1345_v31  ;;  %v1350_v55 = vadd.bf16 %v1286_v10, %v4450_v38 }
 0x1df   : > { %v1349_v61 = vadd.bf16 %v5325_v44, %v4436_v18  ;;  %v1347_v49 = vadd.bf16 %v1283_v16, %v4396_v52  ;;  %v5326_v59 = vmul.bf16 %v4486_v40, %v4441_v41  ;;  %v1171_v39 = vmul.bf16 1027030327, %v4648_v20 }
 0x1e0   : > { %v1288_v35 = vmul.bf16 %v1224_v25, %v4464_v11  ;;  %3364 = vtanh.bf16 %v1412_v57  ;;  %v1414_v0 = vmul.bf16 1061961548, %v1350_v55  ;;  %v5327_v5 = vmul.bf16 1027030327, %v4525_v2 }
 0x1e1   : > { %v1351_v29 = vadd.bf16 %v5326_v59, %v4441_v41  ;;  %v1411_v9 = vmul.bf16 1061961548, %v1347_v49  ;;  %v3355_v42 = vpop.eup %3354  ;;  %3366 = vtanh.bf16 %v1409_v26  ;;  %v1413_v51 = vmul.bf16 1061961548, %v1349_v61 }
 0x1e2   : > { %v1352_v12 = vadd.bf16 %v1288_v35, %v4464_v11  ;;  %v1226_v58 = vmul.bf16 %v5327_v5, %v4525_v2  ;;  %v1534_v60 = vadd.bf16 1065369472, %v3355_v42  ;;  %v1228_v36 = vmul.bf16 %v1164_v30, %v4535_v48 }
 0x1e3   : > { %v3357_v4 = vpop.eup %3356  ;;  %3368 = vtanh.bf16 %v1411_v9  ;;  %v1415_v40 = vmul.bf16 1061961548, %v1351_v29  ;;  %v4689_v25 = vmul.bf16 %v1169_v37, %v4637_v6  ;;  %v4704_v37 = vmul.bf16 %v1171_v39, %v4648_v20 }
 0x1e4   : > { %v1416_v22 = vmul.bf16 1061961548, %v1352_v12  ;;  %v3359_v17 = vpop.eup %3358  ;;  %v1536_v33 = vadd.bf16 1065369472, %v3357_v4  ;;  %3370 = vtanh.bf16 %v1414_v0  ;;  %v1290_v8 = vmul.bf16 %v1226_v58, %v4525_v2 }
 0x1e5   : > { %v3361_v62 = vpop.eup %3360  ;;  %v1598_v16 = vmul.bf16 %v1534_v60, %v1086_v54  ;;  %v1533_v7 = vadd.bf16 1065369472, %v3359_v17  ;;  %v1292_v56 = vmul.bf16 %v1228_v36, %v4535_v48  ;;  %v5328_v54 = vmul.bf16 %v4549_v15, %v4507_v28 }
 0x1e6   : > { %3372 = vtanh.bf16 %v1416_v22  ;;  %v1600_v31 = vmul.bf16 %v1536_v33, %v1088_v43  ;;  %v1535_v10 = vadd.bf16 1065369472, %v3361_v62  ;;  %v1354_v44 = vadd.bf16 %v1290_v8, %v4525_v2 }
 0x1e7   : > { %3374 = vtanh.bf16 %v1413_v51  ;;  %1996 = vmatprep.mubr.bf16.mxu0 %v1598_v16  ;;  %v1597_v30 = vmul.bf16 %v1533_v7, %v1085_v63  ;;  %v1353_v61 = vadd.bf16 %v5328_v54, %v4507_v28  ;;  %v1355_v63 = vadd.bf16 %v5330_v50, %v4515_v21 }
 0x1e8   : > { %3376 = vtanh.bf16 %v1415_v40  ;;  %2157 = vmatprep.mubr.bf16.mxu1 %v1600_v31  ;;  %v1599_v43 = vmul.bf16 %v1535_v10, %v5329_v14  ;;  %v1418_v57 = vmul.bf16 1061961548, %v1354_v44  ;;  %v1170_v49 = vmul.bf16 1027030327, %v4654_v34 }
 0x1e9   : > { %1997 = vmatmul.mubr.bf16.gmra.mxu0 %v1597_v30  ;;  %v1172_v35 = vmul.bf16 1027030327, %v4670_v24  ;;  %v1356_v15 = vadd.bf16 %v1292_v56, %v4535_v48  ;;  %v5331_v1 = vmul.bf16 1027030327, %v4581_v53  ;;  %v1090_v55 = vmul.bf16 1056980736, %v4404_v45 }
 0x1ea   : > { %2158 = vmatmul.mubr.bf16.gmra.mxu1 %v1599_v43  ;;  %3378 = vtanh.bf16 %v1418_v57  ;;  %v1417_v59 = vmul.bf16 1061961548, %v1353_v61  ;;  %v5332_v27 = vmul.bf16 1027030327, %v4592_v46  ;;  %v1297_v39 = vmul.bf16 %v4689_v25, %v4637_v6  ;;  %v3363_v0 = vpop.eup %3362 }
 0x1eb   : > { %v1230_v26 = vmul.bf16 %v5331_v1, %v4581_v53  ;;  %v1420_v9 = vmul.bf16 1061961548, %v1356_v15  ;;  %v1419_v12 = vmul.bf16 1061961548, %v1355_v63  ;;  %v1299_v51 = vmul.bf16 %v4704_v37, %v4648_v20 }
 0x1ec   : > { %v1232_v29 = vmul.bf16 %v5332_v27, %v4592_v46  ;;  %v1092_v5 = vmul.bf16 1056980736, %v4411_v13  ;;  %v1089_v45 = vmul.bf16 1056980736, %v4370_v47  ;;  %v1538_v4 = vadd.bf16 1065369472, %v3363_v0 }
 0x1ed   : > { %v1294_v42 = vmul.bf16 %v1230_v26, %v4581_v53  ;;  %3380 = vtanh.bf16 %v1420_v9  ;;  %v5333_v22 = vmul.bf16 %v4590_v3, %v4551_v23  ;;  %v1091_v17 = vmul.bf16 1056980736, %v4396_v52 }
 0x1ee   : > { %v1296_v58 = vmul.bf16 %v1232_v29, %v4592_v46  ;;  %3382 = vtanh.bf16 %v1417_v59  ;;  %v1234_v13 = vmul.bf16 %v1170_v49, %v4654_v34  ;;  %v3365_v8 = vpop.eup %3364  ;;  %v1602_v47 = vmul.bf16 %v1538_v4, %v1090_v55 }
 0x1ef   : > { %v1358_v60 = vadd.bf16 %v1294_v42, %v4581_v53  ;;  %v1357_v40 = vadd.bf16 %v5333_v22, %v4551_v23  ;;  %3384 = vtanh.bf16 %v1419_v12  ;;  %v5334_v62 = vmul.bf16 %v4601_v32, %v4553_v19  ;;  %v3367_v7 = vpop.eup %3366 }
 0x1f0   : > { %v1360_v33 = vadd.bf16 %v1296_v58, %v4592_v46  ;;  %v1540_v25 = vadd.bf16 1065369472, %v3365_v8  ;;  %v1094_v3 = vmul.bf16 1056980736, %v4450_v38  ;;  %v1298_v52 = vmul.bf16 %v1234_v13, %v4654_v34  ;;  %2004 = vmatprep.mubr.bf16.mxu0 %v1602_v47 }
 0x1f1   : > { %v1422_v36 = vmul.bf16 1061961548, %v1358_v60  ;;  %v1359_v16 = vadd.bf16 %v5334_v62, %v4553_v19  ;;  %v3369_v10 = vpop.eup %3368  ;;  %v1537_v44 = vadd.bf16 1065369472, %v3367_v7  ;;  %v1421_v30 = vmul.bf16 1061961548, %v1357_v40 }
 0x1f2   : > { %v1424_v31 = vmul.bf16 1061961548, %v1360_v33  ;;  %v1236_v56 = vmul.bf16 %v1172_v35, %v4670_v24  ;;  %v3371_v54 = vpop.eup %3370  ;;  %v1604_v61 = vmul.bf16 %v1540_v25, %v1092_v5  ;;  %v1539_v14 = vadd.bf16 1065369472, %v3369_v10 }
 0x1f3   : > { %3386 = vtanh.bf16 %v1422_v36  ;;  %v1362_v32 = vadd.bf16 %v1298_v52, %v4654_v34  ;;  %v1601_v37 = vmul.bf16 %v1537_v44, %v1089_v45  ;;  %v1542_v57 = vadd.bf16 1065369472, %v3371_v54 }
 0x1f4   : > { %3388 = vtanh.bf16 %v1424_v31  ;;  %v3373_v43 = vpop.eup %3372  ;;  %v1423_v38 = vmul.bf16 1061961548, %v1359_v16  ;;  %v1300_v50 = vmul.bf16 %v1236_v56, %v4670_v24  ;;  %2165 = vmatprep.mubr.bf16.mxu1 %v1604_v61  ;;  %v1603_v49 = vmul.bf16 %v1539_v14, %v1091_v17 }
 0x1f5   : > { %v3375_v63 = vpop.eup %3374  ;;  %v1096_v15 = vmul.bf16 1056980736, %v4464_v11  ;;  %v1544_v1 = vadd.bf16 1065369472, %v3373_v43  ;;  %v1426_v26 = vmul.bf16 1061961548, %v1362_v32  ;;  %2005 = vmatmul.mubr.bf16.gmra.mxu0 %v1601_v37  ;;  %v1606_v55 = vmul.bf16 %v1542_v57, %v1094_v3 }
 0x1f6   : > { %v3377_v35 = vpop.eup %3376  ;;  %3390 = vtanh.bf16 %v1421_v30  ;;  %v1364_v59 = vadd.bf16 %v1300_v50, %v4670_v24  ;;  %2166 = vmatmul.mubr.bf16.gmra.mxu1 %v1603_v49  ;;  %v1361_v29 = vadd.bf16 %v1297_v39, %v4637_v6  ;;  %v1541_v9 = vadd.bf16 1065369472, %v3375_v63 }
 0x1f7   : > { %v1608_v27 = vmul.bf16 %v1544_v1, %v1096_v15  ;;  %3392 = vtanh.bf16 %v1426_v26  ;;  %2012 = vmatprep.mubr.bf16.mxu0 %v1606_v55  ;;  %v1363_v42 = vadd.bf16 %v1299_v51, %v4648_v20  ;;  %v1543_v0 = vadd.bf16 1065369472, %v3377_v35 }
 0x1f8   : > { %3394 = vtanh.bf16 %v1423_v38  ;;  %v1428_v12 = vmul.bf16 1061961548, %v1364_v59  ;;  %v3379_v11 = vpop.eup %3378  ;;  %v1093_v5 = vmul.bf16 1056980736, %v4436_v18  ;;  %v1098_v45 = vmul.bf16 1056980736, %v4525_v2 }
 0x1f9   : > { %2173 = vmatprep.mubr.bf16.mxu1 %v1608_v27  ;;  %v1546_v58 = vadd.bf16 1065369472, %v3379_v11  ;;  %v1095_v4 = vmul.bf16 1056980736, %v4441_v41  ;;  %v1425_v60 = vmul.bf16 1061961548, %v1361_v29 }
 0x1fa   : > { %3396 = vtanh.bf16 %v1428_v12  ;;  %v1605_v39 = vmul.bf16 %v1541_v9, %v1093_v5  ;;  %v1427_v17 = vmul.bf16 1061961548, %v1363_v42  ;;  %v1100_v51 = vmul.bf16 1056980736, %v4535_v48  ;;  %v4766_v27 = vld [vmem:[%s5284_s4] ss:$0 sm:$0xff] }
 0x1fb   : > { %v3381_v22 = vpop.eup %3380  ;;  %v1610_v40 = vmul.bf16 %v1546_v58, %v1098_v45  ;;  %v1607_v13 = vmul.bf16 %v1543_v0, %v1095_v4  ;;  %3398 = vtanh.bf16 %v1425_v60  ;;  %v1102_v16 = vmul.bf16 1056980736, %v4581_v53 }
 0x1fc   : > { %v3383_v33 = vpop.eup %3382  ;;  %v1548_v8 = vadd.bf16 1065369472, %v3381_v22  ;;  %3400 = vtanh.bf16 %v1427_v17  ;;  %v1097_v25 = vmul.bf16 1056980736, %v4507_v28  ;;  %v1104_v48 = vmul.bf16 1056980736, %v4592_v46 }
 0x1fd   : > { %v3385_v47 = vpop.eup %3384  ;;  %2013 = vmatmul.mubr.bf16.gmra.mxu0 %v1605_v39  ;;  %v1545_v36 = vadd.bf16 1065369472, %v3383_v33  ;;  %v1099_v31 = vmul.bf16 1056980736, %v4515_v21  ;;  %v1106_v46 = vmul.bf16 1056980736, %v4654_v34 }
 0x1fe   : > { %2174 = vmatmul.mubr.bf16.gmra.mxu1 %v1607_v13  ;;  %2020 = vmatprep.mubr.bf16.mxu0 %v1610_v40  ;;  %v1612_v18 = vmul.bf16 %v1548_v8, %v1100_v51  ;;  %v1547_v62 = vadd.bf16 1065369472, %v3385_v47  ;;  %v1101_v21 = vmul.bf16 1056980736, %v4551_v23  ;;  %v1108_v37 = vmul.bf16 1056980736, %v4670_v24 }
 0x1ff   : > { %v1609_v44 = vmul.bf16 %v1545_v36, %v1097_v25  ;;  %v1103_v57 = vmul.bf16 1056980736, %v4553_v19  ;;  %v1105_v34 = vmul.bf16 1056980736, %v4637_v6  ;;  %v1107_v23 = vmul.bf16 1056980736, %v4648_v20 }
 0x200   : > { %2181 = vmatprep.mubr.bf16.mxu1 %v1612_v18  ;;  %v1611_v54 = vmul.bf16 %v1547_v62, %v1099_v31  ;;  %v3466_v22 = vld [vmem:[%s3834_s19] sm:$0xff]  ;;  %v3467_v51 = vld [vmem:[%s3834_s19 + $0x8] sm:$0xff] }
 0x201   : > { %v3387_v2 = vpop.eup %3386 }
 0x202   : > { %v3389_v41 = vpop.eup %3388  ;;  %v1550_v7 = vadd.bf16 1065369472, %v3387_v2 }
 0x203   : > { %v1552_v3 = vadd.bf16 1065369472, %v3389_v41 }
 0x204   : > { %v1614_v52 = vmul.bf16 %v1550_v7, %v1102_v16  ;;  %v3391_v10 = vpop.eup %3390 }
 0x205   : > { %v1616_v30 = vmul.bf16 %v1552_v3, %v1104_v48  ;;  %v3393_v56 = vpop.eup %3392  ;;  %2021 = vmatmul.mubr.bf16.gmra.mxu0 %v1609_v44  ;;  %v1549_v32 = vadd.bf16 1065369472, %v3391_v10 }
 0x206   : > { %v3395_v61 = vpop.eup %3394  ;;  %2182 = vmatmul.mubr.bf16.gmra.mxu1 %v1611_v54  ;;  %2028 = vmatprep.mubr.bf16.mxu0 %v1614_v52  ;;  %v1554_v14 = vadd.bf16 1065369472, %v3393_v56  ;;  %v3468_v52 = vld [vmem:[%s3834_s19 + $0x10] sm:$0xff] }
 0x207   : > { %2189 = vmatprep.mubr.bf16.mxu1 %v1616_v30  ;;  %v1551_v28 = vadd.bf16 1065369472, %v3395_v61  ;;  %v1613_v50 = vmul.bf16 %v1549_v32, %v1101_v21  ;;  %v3469_v30 = vld [vmem:[%s3834_s19 + $0x18] sm:$0xff] }
 0x208   : > { %v3397_v53 = vpop.eup %3396  ;;  %v1618_v38 = vmul.bf16 %v1554_v14, %v1106_v46 }
 0x209   : > { %v1556_v43 = vadd.bf16 1065369472, %v3397_v53  ;;  %v3399_v49 = vpop.eup %3398  ;;  %v1615_v15 = vmul.bf16 %v1551_v28, %v1103_v57 }
 0x20a   : > { %v3401_v1 = vpop.eup %3400  ;;  %v1553_v26 = vadd.bf16 1065369472, %v3399_v49 }
 0x20b   : > { %v1620_v63 = vmul.bf16 %v1556_v43, %v1108_v37  ;;  %v1555_v35 = vadd.bf16 1065369472, %v3401_v1 }
 0x20c   : > { %v1617_v55 = vmul.bf16 %v1553_v26, %v1105_v34  ;;  %v3471_v34 = vld [vmem:[%s3834_s19 + $0x28] sm:$0xff] }
 0x20d   : > { %2029 = vmatmul.mubr.bf16.gmra.mxu0 %v1613_v50  ;;  %v1619_v24 = vmul.bf16 %v1555_v35, %v1107_v23 }
 0x20e   : > { %2190 = vmatmul.mubr.bf16.gmra.mxu1 %v1615_v15  ;;  %2036 = vmatprep.mubr.bf16.mxu0 %v1618_v38  ;;  %v3470_v15 = vld [vmem:[%s3834_s19 + $0x20] sm:$0xff] }
 0x20f   : > { %2197 = vmatprep.mubr.bf16.mxu1 %v1620_v63 }
 0x215   : > { %2037 = vmatmul.mubr.bf16.gmra.mxu0 %v1617_v55 }
 0x216   : > { %2198 = vmatmul.mubr.bf16.gmra.mxu1 %v1619_v24 }
 0x225   : > { %v2910_v19 = vpop.f32.mrf.mxu0 }
 0x227   : > { %v3022_v59 = vpop.f32.mrf.mxu1  ;;  %v2911_v29 = vpop.f32.mrf.mxu0 }
 0x228   : > { %v2912_v9 = vadd.f32 %v2911_v29, %v2910_v19 }
 0x229   : > { %v3023_v12 = vpop.f32.mrf.mxu1  ;;  %v2913_v42 = vpop.f32.mrf.mxu0 }
 0x22a   : > { %v1919_v6 = vadd.f32 %v2912_v9, %v4766_v27  ;;  %v3024_v20 = vadd.f32 %v3023_v12, %v3022_v59 }
 0x22b   : > { %v3025_v11 = vpop.f32.mrf.mxu1  ;;  %v2914_v0 = vpop.f32.mrf.mxu0 }
 0x22c   : > { %v2080_v5 = vadd.f32 %v3024_v20, %v1919_v6  ;;  %v2915_v45 = vadd.f32 %v2914_v0, %v2913_v42 }
 0x22d   : > { %v3026_v58 = vpop.f32.mrf.mxu1 }
 0x22e   : > { %v1922_v4 = vadd.f32 %v2915_v45, %v4766_v27  ;;  %v3027_v60 = vadd.f32 %v3026_v58, %v3025_v11  ;;  %v4771_v39 = vadd.f32 %v3466_v22, %v2080_v5  ;;  %v2916_v40 = vpop.f32.mrf.mxu0  ;;  %v3472_v58 = vld [vmem:[%s3834_s19 + $0x30] sm:$0xff] }
 0x230   : > { %v2083_v17 = vadd.f32 %v3027_v60, %v1922_v4  ;;  %2238 = vadd.xlane.f32.xlu0 %v4771_v39  ;;  %v2917_v33 = vpop.f32.mrf.mxu0 }
 0x231   : > { %v2918_v13 = vadd.f32 %v2917_v33, %v2916_v40  ;;  %v3473_v40 = vld [vmem:[%s3834_s19 + $0x38] sm:$0xff] }
 0x232   : > { %v4775_v8 = vadd.f32 %v3467_v51, %v2083_v17  ;;  %v3028_v47 = vpop.f32.mrf.mxu1  ;;  %v2919_v18 = vpop.f32.mrf.mxu0 }
 0x233   : > { %v1927_v2 = vadd.f32 %v2918_v13, %v4766_v27 }
 0x234   : > { %2240 = vadd.xlane.f32.xlu0 %v4775_v8  ;;  %v3029_v36 = vpop.f32.mrf.mxu1  ;;  %v2920_v41 = vpop.f32.mrf.mxu0 }
 0x235   : > { %v3030_v62 = vadd.f32 %v3029_v36, %v3028_v47  ;;  %v2921_v16 = vadd.f32 %v2920_v41, %v2919_v18 }
 0x236   : > { %v3031_v7 = vpop.f32.mrf.mxu1 }
 0x237   : > { %v2088_v25 = vadd.f32 %v3030_v62, %v1927_v2  ;;  %v1930_v48 = vadd.f32 %v2921_v16, %v4766_v27 }
 0x238   : > { %v3032_v3 = vpop.f32.mrf.mxu1 }
 0x239   : > { %v3033_v31 = vadd.f32 %v3032_v3, %v3031_v7  ;;  %v4781_v10 = vadd.f32 %v3468_v52, %v2088_v25 }
 0x23b   : > { %v2091_v44 = vadd.f32 %v3033_v31, %v1930_v48  ;;  %2242 = vadd.xlane.f32.xlu1 %v4781_v10  ;;  %v3474_v31 = vld [vmem:[%s3834_s19 + $0x40] sm:$0xff] }
 0x23d   : > { %v4785_v56 = vadd.f32 %v3469_v30, %v2091_v44 }
 0x23e   : > { %v2922_v54 = vpop.f32.mrf.mxu0 }
 0x23f   : > { %2244 = vadd.xlane.f32.xlu1 %v4785_v56 }
 0x240   : > { %v2923_v61 = vpop.f32.mrf.mxu0 }
 0x241   : > { %v2924_v14 = vadd.f32 %v2923_v61, %v2922_v54  ;;  %v3475_v61 = vld [vmem:[%s3834_s19 + $0x48] sm:$0xff] }
 0x242   : > { %v2925_v53 = vpop.f32.mrf.mxu0 }
 0x243   : > { %v1935_v46 = vadd.f32 %v2924_v14, %v4766_v27 }
 0x244   : > { %v3034_v32 = vpop.f32.mrf.mxu1  ;;  %v2926_v28 = vpop.f32.mrf.mxu0 }
 0x245   : > { %v2927_v43 = vadd.f32 %v2926_v28, %v2925_v53 }
 0x246   : > { %v3035_v21 = vpop.f32.mrf.mxu1 }
 0x247   : > { %v3036_v37 = vadd.f32 %v3035_v21, %v3034_v32  ;;  %v1938_v50 = vadd.f32 %v2927_v43, %v4766_v27 }
 0x248   : > { %v3037_v57 = vpop.f32.mrf.mxu1 }
 0x249   : > { %v2096_v38 = vadd.f32 %v3036_v37, %v1935_v46 }
 0x24a   : > { %v3038_v63 = vpop.f32.mrf.mxu1 }
 0x24b   : > { %v3039_v49 = vadd.f32 %v3038_v63, %v3037_v57  ;;  %v4791_v1 = vadd.f32 %v3470_v15, %v2096_v38 }
 0x24d   : > { %v2099_v26 = vadd.f32 %v3039_v49, %v1938_v50  ;;  %2246 = vadd.xlane.f32.xlu0 %v4791_v1 }
 0x24e   : > { %v2928_v35 = vpop.f32.mrf.mxu0 }
 0x24f   : > { %v4795_v23 = vadd.f32 %v3471_v34, %v2099_v26  ;;  %v3476_v26 = vld [vmem:[%s3834_s19 + $0x50] sm:$0xff] }
 0x250   : > { %v2929_v55 = vpop.f32.mrf.mxu0  ;;  %v3040_v24 = vpop.f32.mrf.mxu1 }
 0x251   : > { %v2930_v19 = vadd.f32 %v2929_v55, %v2928_v35  ;;  %2248 = vadd.xlane.f32.xlu1 %v4795_v23 }
 0x252   : > { %v2931_v59 = vpop.f32.mrf.mxu0  ;;  %v3041_v9 = vpop.f32.mrf.mxu1 }
 0x253   : > { %v1943_v29 = vadd.f32 %v2930_v19, %v4766_v27  ;;  %v3042_v12 = vadd.f32 %v3041_v9, %v3040_v24  ;;  %v3477_v24 = vld [vmem:[%s3834_s19 + $0x58] sm:$0xff] }
 0x254   : > { %v2932_v42 = vpop.f32.mrf.mxu0  ;;  %v3043_v6 = vpop.f32.mrf.mxu1 }
 0x255   : > { %v2933_v20 = vadd.f32 %v2932_v42, %v2931_v59  ;;  %v2104_v11 = vadd.f32 %v3042_v12, %v1943_v29 }
 0x256   : > { %v3044_v5 = vpop.f32.mrf.mxu1 }
 0x257   : > { %v1946_v0 = vadd.f32 %v2933_v20, %v4766_v27  ;;  %v3045_v45 = vadd.f32 %v3044_v5, %v3043_v6  ;;  %v4801_v4 = vadd.f32 %v3472_v58, %v2104_v11 }
 0x259   : > { %v2107_v60 = vadd.f32 %v3045_v45, %v1946_v0  ;;  %2250 = vadd.xlane.f32.xlu0 %v4801_v4 }
 0x25b   : > { %v4805_v17 = vadd.f32 %v3473_v40, %v2107_v60  ;;  %v3478_v40 = vld [vmem:[%s3834_s19 + $0x60] sm:$0xff] }
 0x25c   : > { %v2934_v22 = vpop.f32.mrf.mxu0 }
 0x25d   : > { %2252 = vadd.xlane.f32.xlu1 %v4805_v17 }
 0x25e   : > { %v2935_v33 = vpop.f32.mrf.mxu0  ;;  %v3046_v13 = vpop.f32.mrf.mxu1 }
 0x25f   : > { %v2936_v51 = vadd.f32 %v2935_v33, %v2934_v22 }
 0x260   : > { %v2937_v47 = vpop.f32.mrf.mxu0  ;;  %v3047_v2 = vpop.f32.mrf.mxu1 }
 0x261   : > { %v1951_v18 = vadd.f32 %v2936_v51, %v4766_v27  ;;  %v3048_v36 = vadd.f32 %v3047_v2, %v3046_v13  ;;  %v3479_v2 = vld [vmem:[%s3834_s19 + $0x68] sm:$0xff] }
 0x262   : > { %v2938_v41 = vpop.f32.mrf.mxu0  ;;  %v3049_v62 = vpop.f32.mrf.mxu1 }
 0x263   : > { %v2939_v16 = vadd.f32 %v2938_v41, %v2937_v47  ;;  %v2112_v7 = vadd.f32 %v3048_v36, %v1951_v18 }
 0x264   : > { %v3050_v48 = vpop.f32.mrf.mxu1 }
 0x265   : > { %v1954_v25 = vadd.f32 %v2939_v16, %v4766_v27  ;;  %v3051_v3 = vadd.f32 %v3050_v48, %v3049_v62  ;;  %v4811_v52 = vadd.f32 %v3474_v31, %v2112_v7 }
 0x267   : > { %v2115_v44 = vadd.f32 %v3051_v3, %v1954_v25  ;;  %2254 = vadd.xlane.f32.xlu0 %v4811_v52  ;;  %v2940_v30 = vpop.f32.mrf.mxu0 }
 0x268   : > { %v3052_v54 = vpop.f32.mrf.mxu1 }
 0x269   : > { %v4815_v14 = vadd.f32 %v3475_v61, %v2115_v44  ;;  %v2941_v53 = vpop.f32.mrf.mxu0 }
 0x26a   : > { %v2942_v32 = vadd.f32 %v2941_v53, %v2940_v30  ;;  %v3053_v28 = vpop.f32.mrf.mxu1  ;;  %v3480_v53 = vld [vmem:[%s3834_s19 + $0x70] sm:$0xff] }
 0x26b   : > { %2256 = vadd.xlane.f32.xlu1 %v4815_v14  ;;  %v2943_v46 = vpop.f32.mrf.mxu0  ;;  %v3054_v21 = vadd.f32 %v3053_v28, %v3052_v54 }
 0x26c   : > { %v1959_v43 = vadd.f32 %v2942_v32, %v4766_v27  ;;  %v3055_v37 = vpop.f32.mrf.mxu1 }
 0x26d   : > { %v2944_v57 = vpop.f32.mrf.mxu0 }
 0x26e   : > { %v2120_v38 = vadd.f32 %v3054_v21, %v1959_v43  ;;  %v2945_v50 = vadd.f32 %v2944_v57, %v2943_v46  ;;  %v3056_v63 = vpop.f32.mrf.mxu1  ;;  %v3481_v43 = vld [vmem:[%s3834_s19 + $0x78] sm:$0xff] }
 0x26f   : > { %v3057_v15 = vadd.f32 %v3056_v63, %v3055_v37 }
 0x270   : > { %v1962_v49 = vadd.f32 %v2945_v50, %v4766_v27  ;;  %v4821_v35 = vadd.f32 %v3476_v26, %v2120_v38 }
 0x272   : > { %v2123_v34 = vadd.f32 %v3057_v15, %v1962_v49  ;;  %2258 = vadd.xlane.f32.xlu0 %v4821_v35 }
 0x274   : > { %v4825_v19 = vadd.f32 %v3477_v24, %v2123_v34 }
 0x276   : > { %v2946_v55 = vpop.f32.mrf.mxu0  ;;  %2260 = vadd.xlane.f32.xlu1 %v4825_v19 }
 0x277   : > { %v3058_v59 = vpop.f32.mrf.mxu1 }
 0x278   : > { %v2947_v29 = vpop.f32.mrf.mxu0 }
 0x279   : > { %v2948_v9 = vadd.f32 %v2947_v29, %v2946_v55  ;;  %v3059_v12 = vpop.f32.mrf.mxu1 }
 0x27a   : > { %v2949_v42 = vpop.f32.mrf.mxu0  ;;  %v3060_v20 = vadd.f32 %v3059_v12, %v3058_v59  ;;  %v3482_v12 = vld [vmem:[%s3834_s19 + $0x80] sm:$0xff] }
 0x27b   : > { %v1967_v6 = vadd.f32 %v2948_v9, %v4766_v27  ;;  %v3061_v11 = vpop.f32.mrf.mxu1 }
 0x27c   : > { %v2950_v0 = vpop.f32.mrf.mxu0 }
 0x27d   : > { %v2128_v5 = vadd.f32 %v3060_v20, %v1967_v6  ;;  %v2951_v45 = vadd.f32 %v2950_v0, %v2949_v42  ;;  %v3062_v58 = vpop.f32.mrf.mxu1  ;;  %v3483_v20 = vld [vmem:[%s3834_s19 + $0x88] sm:$0xff] }
 0x27e   : > { %v3063_v22 = vadd.f32 %v3062_v58, %v3061_v11 }
 0x27f   : > { %v1970_v60 = vadd.f32 %v2951_v45, %v4766_v27  ;;  %v4831_v33 = vadd.f32 %v3478_v40, %v2128_v5  ;;  %v2952_v51 = vpop.f32.mrf.mxu0 }
 0x281   : > { %v2131_v13 = vadd.f32 %v3063_v22, %v1970_v60  ;;  %2262 = vadd.xlane.f32.xlu0 %v4831_v33  ;;  %v2953_v18 = vpop.f32.mrf.mxu0 }
 0x282   : > { %v3064_v47 = vpop.f32.mrf.mxu1  ;;  %v2954_v41 = vadd.f32 %v2953_v18, %v2952_v51 }
 0x283   : > { %v4835_v36 = vadd.f32 %v3479_v2, %v2131_v13  ;;  %v2955_v16 = vpop.f32.mrf.mxu0 }
 0x284   : > { %v3065_v62 = vpop.f32.mrf.mxu1  ;;  %v1975_v7 = vadd.f32 %v2954_v41, %v4766_v27 }
 0x285   : > { %2264 = vadd.xlane.f32.xlu1 %v4835_v36  ;;  %v3066_v25 = vadd.f32 %v3065_v62, %v3064_v47  ;;  %v2956_v3 = vpop.f32.mrf.mxu0 }
 0x286   : > { %v3067_v48 = vpop.f32.mrf.mxu1  ;;  %v2957_v44 = vadd.f32 %v2956_v3, %v2955_v16 }
 0x287   : > { %v2136_v31 = vadd.f32 %v3066_v25, %v1975_v7  ;;  %v3484_v7 = vld [vmem:[%s3834_s19 + $0x90] sm:$0xff] }
 0x288   : > { %v3068_v30 = vpop.f32.mrf.mxu1  ;;  %v1978_v54 = vadd.f32 %v2957_v44, %v4766_v27 }
 0x289   : > { %v3069_v61 = vadd.f32 %v3068_v30, %v3067_v48  ;;  %v4841_v32 = vadd.f32 %v3480_v53, %v2136_v31  ;;  %v3485_v31 = vld [vmem:[%s3834_s19 + $0x98] sm:$0xff] }
 0x28b   : > { %v2139_v28 = vadd.f32 %v3069_v61, %v1978_v54  ;;  %2266 = vadd.xlane.f32.xlu0 %v4841_v32 }
 0x28d   : > { %v2958_v46 = vpop.f32.mrf.mxu0  ;;  %v4845_v21 = vadd.f32 %v3481_v43, %v2139_v28 }
 0x28e   : > { %v3070_v37 = vpop.f32.mrf.mxu1 }
 0x28f   : > { %v2959_v57 = vpop.f32.mrf.mxu0  ;;  %2268 = vadd.xlane.f32.xlu1 %v4845_v21 }
 0x290   : > { %v2960_v38 = vadd.f32 %v2959_v57, %v2958_v46  ;;  %v3071_v50 = vpop.f32.mrf.mxu1 }
 0x291   : > { %v2961_v63 = vpop.f32.mrf.mxu0  ;;  %v3072_v15 = vadd.f32 %v3071_v50, %v3070_v37 }
 0x292   : > { %v1983_v49 = vadd.f32 %v2960_v38, %v4766_v27  ;;  %v3073_v26 = vpop.f32.mrf.mxu1 }
 0x293   : > { %v2962_v34 = vpop.f32.mrf.mxu0 }
 0x294   : > { %v2144_v55 = vadd.f32 %v3072_v15, %v1983_v49  ;;  %v2963_v24 = vadd.f32 %v2962_v34, %v2961_v63  ;;  %v3074_v59 = vpop.f32.mrf.mxu1 }
 0x295   : > { %v3075_v9 = vadd.f32 %v3074_v59, %v3073_v26  ;;  %v3486_v26 = vld [vmem:[%s3834_s19 + $0xa0] sm:$0xff] }
 0x296   : > { %v1986_v29 = vadd.f32 %v2963_v24, %v4766_v27  ;;  %v4851_v42 = vadd.f32 %v3482_v12, %v2144_v55 }
 0x298   : > { %v2147_v6 = vadd.f32 %v3075_v9, %v1986_v29  ;;  %2270 = vadd.xlane.f32.xlu0 %v4851_v42  ;;  %v3487_v29 = vld [vmem:[%s3834_s19 + $0xa8] sm:$0xff] }
 0x29a   : > { %v4855_v11 = vadd.f32 %v3483_v20, %v2147_v6 }
 0x29c   : > { %v2964_v0 = vpop.f32.mrf.mxu0  ;;  %2272 = vadd.xlane.f32.xlu1 %v4855_v11 }
 0x29d   : > { %v3076_v5 = vpop.f32.mrf.mxu1 }
 0x29e   : > { %v2965_v45 = vpop.f32.mrf.mxu0 }
 0x29f   : > { %v2966_v58 = vadd.f32 %v2965_v45, %v2964_v0  ;;  %v3077_v60 = vpop.f32.mrf.mxu1 }
 0x2a0   : > { %v2967_v22 = vpop.f32.mrf.mxu0  ;;  %v3078_v13 = vadd.f32 %v3077_v60, %v3076_v5 }
 0x2a1   : > { %v1991_v40 = vadd.f32 %v2966_v58, %v4766_v27  ;;  %v3079_v51 = vpop.f32.mrf.mxu1 }
 0x2a2   : > { %v2968_v47 = vpop.f32.mrf.mxu0 }
 0x2a3   : > { %v2152_v18 = vadd.f32 %v3078_v13, %v1991_v40  ;;  %v2969_v2 = vadd.f32 %v2968_v47, %v2967_v22  ;;  %v3080_v41 = vpop.f32.mrf.mxu1 }
 0x2a4   : > { %v3081_v16 = vadd.f32 %v3080_v41, %v3079_v51  ;;  %v3488_v41 = vld [vmem:[%s3834_s19 + $0xb0] sm:$0xff] }
 0x2a5   : > { %v1994_v62 = vadd.f32 %v2969_v2, %v4766_v27  ;;  %v4861_v25 = vadd.f32 %v3484_v7, %v2152_v18 }
 0x2a7   : > { %v2155_v48 = vadd.f32 %v3081_v16, %v1994_v62  ;;  %2274 = vadd.xlane.f32.xlu0 %v4861_v25 }
 0x2a9   : > { %v2970_v3 = vpop.f32.mrf.mxu0  ;;  %v4865_v44 = vadd.f32 %v3485_v31, %v2155_v48 }
 0x2aa   : > { %v3082_v30 = vpop.f32.mrf.mxu1 }
 0x2ab   : > { %v2971_v54 = vpop.f32.mrf.mxu0  ;;  %2276 = vadd.xlane.f32.xlu1 %v4865_v44 }
 0x2ac   : > { %v2972_v61 = vadd.f32 %v2971_v54, %v2970_v3  ;;  %v3083_v53 = vpop.f32.mrf.mxu1 }
 0x2ad   : > { %v2973_v28 = vpop.f32.mrf.mxu0  ;;  %v3084_v43 = vadd.f32 %v3083_v53, %v3082_v30  ;;  %v3489_v53 = vld [vmem:[%s3834_s19 + $0xb8] sm:$0xff] }
 0x2ae   : > { %v1999_v46 = vadd.f32 %v2972_v61, %v4766_v27  ;;  %v3085_v37 = vpop.f32.mrf.mxu1 }
 0x2af   : > { %v2974_v57 = vpop.f32.mrf.mxu0 }
 0x2b0   : > { %v2160_v38 = vadd.f32 %v3084_v43, %v1999_v46  ;;  %v2975_v50 = vadd.f32 %v2974_v57, %v2973_v28  ;;  %v3086_v63 = vpop.f32.mrf.mxu1 }
 0x2b1   : > { %v3087_v15 = vadd.f32 %v3086_v63, %v3085_v37 }
 0x2b2   : > { %v2002_v49 = vadd.f32 %v2975_v50, %v4766_v27  ;;  %v4871_v34 = vadd.f32 %v3486_v26, %v2160_v38 }
 0x2b4   : > { %v2163_v55 = vadd.f32 %v3087_v15, %v2002_v49  ;;  %2278 = vadd.xlane.f32.xlu0 %v4871_v34  ;;  %v3490_v15 = vld [vmem:[%s3834_s19 + $0xc0] sm:$0xff] }
 0x2b5   : > { %v2976_v24 = vpop.f32.mrf.mxu0 }
 0x2b6   : > { %v3088_v59 = vpop.f32.mrf.mxu1  ;;  %v4875_v9 = vadd.f32 %v3487_v29, %v2163_v55 }
 0x2b7   : > { %v2977_v12 = vpop.f32.mrf.mxu0 }
 0x2b8   : > { %v2978_v6 = vadd.f32 %v2977_v12, %v2976_v24  ;;  %v3089_v20 = vpop.f32.mrf.mxu1  ;;  %2280 = vadd.xlane.f32.xlu1 %v4875_v9 }
 0x2b9   : > { %v2979_v0 = vpop.f32.mrf.mxu0  ;;  %v3090_v45 = vadd.f32 %v3089_v20, %v3088_v59 }
 0x2ba   : > { %v2007_v5 = vadd.f32 %v2978_v6, %v4766_v27  ;;  %v3091_v58 = vpop.f32.mrf.mxu1 }
 0x2bb   : > { %v2980_v60 = vpop.f32.mrf.mxu0 }
 0x2bc   : > { %v2168_v22 = vadd.f32 %v3090_v45, %v2007_v5  ;;  %v2981_v40 = vadd.f32 %v2980_v60, %v2979_v0  ;;  %v3092_v13 = vpop.f32.mrf.mxu1  ;;  %v3491_v5 = vld [vmem:[%s3834_s19 + $0xc8] sm:$0xff] }
 0x2bd   : > { %v2982_v51 = vpop.f32.mrf.mxu0  ;;  %v3093_v18 = vadd.f32 %v3092_v13, %v3091_v58 }
 0x2be   : > { %v2010_v47 = vadd.f32 %v2981_v40, %v4766_v27  ;;  %v3094_v2 = vpop.f32.mrf.mxu1  ;;  %v4881_v62 = vadd.f32 %v3488_v41, %v2168_v22 }
 0x2bf   : > { %v2983_v16 = vpop.f32.mrf.mxu0 }
 0x2c0   : > { %v2171_v7 = vadd.f32 %v3093_v18, %v2010_v47  ;;  %v2984_v48 = vadd.f32 %v2983_v16, %v2982_v51  ;;  %v3095_v3 = vpop.f32.mrf.mxu1  ;;  %2282 = vadd.xlane.f32.xlu0 %v4881_v62 }
 0x2c1   : > { %v2985_v31 = vpop.f32.mrf.mxu0  ;;  %v3096_v54 = vadd.f32 %v3095_v3, %v3094_v2  ;;  %v3492_v2 = vld [vmem:[%s3834_s19 + $0xd0] sm:$0xff] }
 0x2c2   : > { %v2015_v30 = vadd.f32 %v2984_v48, %v4766_v27  ;;  %v3097_v61 = vpop.f32.mrf.mxu1  ;;  %v4886_v28 = vadd.f32 %v3489_v53, %v2171_v7  ;;  %v3493_v53 = vld [vmem:[%s3834_s19 + $0xd8] sm:$0xff] }
 0x2c3   : > { %v2986_v46 = vpop.f32.mrf.mxu0 }
 0x2c4   : > { %v2176_v43 = vadd.f32 %v3096_v54, %v2015_v30  ;;  %v2987_v37 = vadd.f32 %v2986_v46, %v2985_v31  ;;  %v3098_v57 = vpop.f32.mrf.mxu1  ;;  %2284 = vadd.xlane.f32.xlu1 %v4886_v28 }
 0x2c5   : > { %v2988_v38 = vpop.f32.mrf.mxu0  ;;  %v3099_v63 = vadd.f32 %v3098_v57, %v3097_v61 }
 0x2c6   : > { %v2018_v50 = vadd.f32 %v2987_v37, %v4766_v27  ;;  %v3100_v49 = vpop.f32.mrf.mxu1  ;;  %v4891_v26 = vadd.f32 %v3490_v15, %v2176_v43  ;;  %v2239_v37 = vpop.xlane.xlu0 %2238 }
 0x2c7   : > { %v2989_v55 = vpop.f32.mrf.mxu0 }
 0x2c8   : > { %v2179_v24 = vadd.f32 %v3099_v63, %v2018_v50  ;;  %v2990_v59 = vadd.f32 %v2989_v55, %v2988_v38  ;;  %v3101_v29 = vpop.f32.mrf.mxu1  ;;  %2286 = vadd.xlane.f32.xlu0 %v4891_v26 }
 0x2c9   : > { %v2991_v12 = vpop.f32.mrf.mxu0  ;;  %v3102_v20 = vadd.f32 %v3101_v29, %v3100_v49  ;;  %v2243_v29 = vpop.xlane.xlu1 %2242 }
 0x2ca   : > { %v2023_v6 = vadd.f32 %v2990_v59, %v4766_v27  ;;  %v3103_v0 = vpop.f32.mrf.mxu1  ;;  %v4896_v45 = vadd.f32 %v3491_v5, %v2179_v24  ;;  %v3494_v24 = vld [vmem:[%s3834_s19 + $0xe0] sm:$0xff] }
 0x2cb   : > { %v2992_v58 = vpop.f32.mrf.mxu0 }
 0x2cc   : > { %v2184_v60 = vadd.f32 %v3102_v20, %v2023_v6  ;;  %v2993_v22 = vadd.f32 %v2992_v58, %v2991_v12  ;;  %v3104_v40 = vpop.f32.mrf.mxu1  ;;  %2288 = vadd.xlane.f32.xlu1 %v4896_v45  ;;  %v2303_v6 = vmul.f32 0.0078125, %v2239_v37 }
 0x2cd   : > { %v2994_v13 = vpop.f32.mrf.mxu0  ;;  %v3105_v47 = vadd.f32 %v3104_v40, %v3103_v0 }
 0x2ce   : > { %v2026_v51 = vadd.f32 %v2993_v22, %v4766_v27  ;;  %v3106_v18 = vpop.f32.mrf.mxu1  ;;  %v4901_v41 = vadd.f32 %v3492_v2, %v2184_v60  ;;  %v2241_v60 = vpop.xlane.xlu0 %2240  ;;  %v4919_v2 = vsub.f32 %v4771_v39, %v2303_v6 }
 0x2cf   : > { %v2995_v16 = vpop.f32.mrf.mxu0 }
 0x2d0   : > { %v2187_v7 = vadd.f32 %v3105_v47, %v2026_v51  ;;  %v2996_v48 = vadd.f32 %v2995_v16, %v2994_v13  ;;  %v3107_v3 = vpop.f32.mrf.mxu1  ;;  %2290 = vadd.xlane.f32.xlu0 %v4901_v41  ;;  %v3495_v51 = vld [vmem:[%s3834_s19 + $0xe8] sm:$0xff]  ;;  %v2367_v39 = vmul.f32 %v4919_v2, %v4919_v2 }
 0x2d1   : > { %v2997_v31 = vpop.f32.mrf.mxu0  ;;  %v3108_v54 = vadd.f32 %v3107_v3, %v3106_v18  ;;  %v2304_v3 = vmul.f32 0.0078125, %v2241_v60 }
 0x2d2   : > { %v2031_v30 = vadd.f32 %v2996_v48, %v4766_v27  ;;  %v3109_v61 = vpop.f32.mrf.mxu1  ;;  %v4906_v46 = vadd.f32 %v3493_v53, %v2187_v7 }
 0x2d3   : > { %v2998_v43 = vpop.f32.mrf.mxu0 }
 0x2d4   : > { %v2192_v57 = vadd.f32 %v3108_v54, %v2031_v30  ;;  %v2999_v38 = vadd.f32 %v2998_v43, %v2997_v31  ;;  %v3110_v50 = vpop.f32.mrf.mxu1  ;;  %2292 = vadd.xlane.f32.xlu1 %v4906_v46  ;;  %v2305_v31 = vmul.f32 0.0078125, %v2243_v29  ;;  %v2245_v30 = vpop.xlane.xlu1 %2244  ;;  %v3496_v43 = vld [vmem:[%s3834_s19 + $0xf0] sm:$0xff] }
 0x2d5   : > { %v3000_v63 = vpop.f32.mrf.mxu0  ;;  %v3111_v15 = vadd.f32 %v3110_v50, %v3109_v61  ;;  %v4930_v50 = vsub.f32 %v4775_v8, %v2304_v3 }
 0x2d6   : > { %v2034_v49 = vadd.f32 %v2999_v38, %v4766_v27  ;;  %v3112_v55 = vpop.f32.mrf.mxu1  ;;  %v4911_v59 = vadd.f32 %v3494_v24, %v2192_v57  ;;  %v2247_v54 = vpop.xlane.xlu0 %2246  ;;  %v2306_v57 = vmul.f32 0.0078125, %v2245_v30 }
 0x2d7   : > { %v3001_v12 = vpop.f32.mrf.mxu0  ;;  %v2368_v29 = vmul.f32 %v4930_v50, %v4930_v50 }
 0x2d8   : > { %v2195_v20 = vadd.f32 %v3111_v15, %v2034_v49  ;;  %v3002_v0 = vadd.f32 %v3001_v12, %v3000_v63  ;;  %v3113_v5 = vpop.f32.mrf.mxu1  ;;  %2294 = vadd.xlane.f32.xlu0 %v4911_v59  ;;  %v4933_v63 = vsub.f32 %v4781_v10, %v2305_v31  ;;  %v2307_v49 = vmul.f32 0.0078125, %v2247_v54 }
 0x2d9   : > { %v3003_v58 = vpop.f32.mrf.mxu0  ;;  %v3114_v40 = vadd.f32 %v3113_v5, %v3112_v55  ;;  %v4939_v24 = vsub.f32 %v4785_v56, %v2306_v57 }
 0x2da   : > { %v2039_v22 = vadd.f32 %v3002_v0, %v4766_v27  ;;  %v3115_v13 = vpop.f32.mrf.mxu1  ;;  %v4916_v47 = vadd.f32 %v3495_v51, %v2195_v20  ;;  %v2249_v15 = vpop.xlane.xlu1 %2248  ;;  %v2369_v8 = vmul.f32 %v4933_v63, %v4933_v63  ;;  %v4947_v10 = vsub.f32 %v4791_v1, %v2307_v49 }
 0x2db   : > { %v3004_v18 = vpop.f32.mrf.mxu0  ;;  %v2308_v12 = vmul.f32 0.0078125, %v2249_v15  ;;  %v2370_v0 = vmul.f32 %v4939_v24, %v4939_v24 }
 0x2dc   : > { %v2200_v16 = vadd.f32 %v3114_v40, %v2039_v22  ;;  %v3005_v7 = vadd.f32 %v3004_v18, %v3003_v58  ;;  %v3116_v48 = vpop.f32.mrf.mxu1  ;;  %2296 = vadd.xlane.f32.xlu1 %v4916_v47  ;;  %v2371_v5 = vmul.f32 %v4947_v10, %v4947_v10 }
 0x2dd   : > { %v3117_v53 = vadd.f32 %v3116_v48, %v3115_v13  ;;  %v4952_v56 = vsub.f32 %v4795_v23, %v2308_v12 }
 0x2de   : > { %v2042_v61 = vadd.f32 %v3005_v7, %v4766_v27  ;;  %v4924_v37 = vadd.f32 %v3496_v43, %v2200_v16  ;;  %v3497_v27 = vld [vmem:[%s3834_s19 + $0xf8] sm:$0xff]  ;;  %s5233_s19 = scalar_lea.hbm %s5287_s7, %s2893_s11 }
 0x2df   : > { %v2372_v22 = vmul.f32 %v4952_v56, %v4952_v56 }
 0x2e0   : > { %v2203_v38 = vadd.f32 %v3117_v53, %v2042_v61  ;;  %2298 = vadd.xlane.f32.xlu0 %v4924_v37 }
 0x2e2   : > { %v4936_v55 = vadd.f32 %v3497_v27, %v2203_v38  ;;  %v2251_v6 = vpop.xlane.xlu0 %2250 }
 0x2e3   : > { %v2309_v20 = vmul.f32 0.0078125, %v2251_v6 }
 0x2e4   : > { %2300 = vadd.xlane.f32.xlu1 %v4936_v55  ;;  %2399 = vadd.xlane.f32.xlu0 %v2367_v39 }
 0x2e5   : > { %v4957_v58 = vsub.f32 %v4801_v4, %v2309_v20 }
 0x2e6   : > { %v2253_v60 = vpop.xlane.xlu1 %2252 }
 0x2e7   : > { %v2310_v1 = vmul.f32 0.0078125, %v2253_v60  ;;  %v2373_v23 = vmul.f32 %v4957_v58, %v4957_v58 }
 0x2e8   : > { %2401 = vadd.xlane.f32.xlu1 %v2368_v29  ;;  %2403 = vadd.xlane.f32.xlu0 %v2369_v8 }
 0x2e9   : > { %v4962_v40 = vsub.f32 %v4805_v17, %v2310_v1 }
 0x2eb   : > { %v2374_v13 = vmul.f32 %v4962_v40, %v4962_v40 }
 0x2ec   : > { %2405 = vadd.xlane.f32.xlu1 %v2370_v0  ;;  %2407 = vadd.xlane.f32.xlu0 %v2371_v5 }
 0x2f0   : > { %2409 = vadd.xlane.f32.xlu1 %v2372_v22  ;;  %2411 = vadd.xlane.f32.xlu0 %v2373_v23  ;;  %v2255_v4 = vpop.xlane.xlu0 %2254 }
 0x2f1   : > { %v2311_v51 = vmul.f32 0.0078125, %v2255_v4 }
 0x2f3   : > { %v4969_v18 = vsub.f32 %v4811_v52, %v2311_v51 }
 0x2f4   : > { %2413 = vadd.xlane.f32.xlu1 %v2374_v13  ;;  %v2257_v16 = vpop.xlane.xlu1 %2256 }
 0x2f5   : > { %v2312_v7 = vmul.f32 0.0078125, %v2257_v16  ;;  %v2375_v17 = vmul.f32 %v4969_v18, %v4969_v18 }
 0x2f7   : > { %v4974_v48 = vsub.f32 %v4815_v14, %v2312_v7  ;;  %2415 = vadd.xlane.f32.xlu0 %v2375_v17 }
 0x2f9   : > { %v2376_v3 = vmul.f32 %v4974_v48, %v4974_v48 }
 0x2fb   : > { %2417 = vadd.xlane.f32.xlu1 %v2376_v3  ;;  %v2259_v31 = vpop.xlane.xlu0 %2258 }
 0x2fc   : > { %v2313_v30 = vmul.f32 0.0078125, %v2259_v31 }
 0x2fe   : > { %v4979_v54 = vsub.f32 %v4821_v35, %v2313_v30 }
 0x2ff   : > { %v2261_v52 = vpop.xlane.xlu1 %2260 }
 0x300   : > { %v2314_v61 = vmul.f32 0.0078125, %v2261_v52  ;;  %v2377_v53 = vmul.f32 %v4979_v54, %v4979_v54 }
 0x302   : > { %v4984_v43 = vsub.f32 %v4825_v19, %v2314_v61  ;;  %2419 = vadd.xlane.f32.xlu0 %v2377_v53 }
 0x304   : > { %v2378_v14 = vmul.f32 %v4984_v43, %v4984_v43 }
 0x306   : > { %2421 = vadd.xlane.f32.xlu1 %v2378_v14 }
 0x30a   : > { %v2263_v39 = vpop.xlane.xlu0 %2262 }
 0x30b   : > { %v2315_v57 = vmul.f32 0.0078125, %v2263_v39 }
 0x30d   : > { %v4989_v38 = vsub.f32 %v4831_v33, %v2315_v57 }
 0x30e   : > { %v2265_v35 = vpop.xlane.xlu1 %2264 }
 0x30f   : > { %v2316_v49 = vmul.f32 0.0078125, %v2265_v35  ;;  %v2379_v15 = vmul.f32 %v4989_v38, %v4989_v38 }
 0x311   : > { %v4994_v27 = vsub.f32 %v4835_v36, %v2316_v49  ;;  %2423 = vadd.xlane.f32.xlu0 %v2379_v15 }
 0x313   : > { %v2380_v19 = vmul.f32 %v4994_v27, %v4994_v27 }
 0x314   : > { %v2267_v29 = vpop.xlane.xlu0 %2266 }
 0x315   : > { %2425 = vadd.xlane.f32.xlu1 %v2380_v19  ;;  %v2317_v8 = vmul.f32 0.0078125, %v2267_v29 }
 0x317   : > { %v4999_v12 = vsub.f32 %v4841_v32, %v2317_v8 }
 0x318   : > { %v2269_v33 = vpop.xlane.xlu1 %2268 }
 0x319   : > { %v2318_v6 = vmul.f32 0.0078125, %v2269_v33  ;;  %v2381_v20 = vmul.f32 %v4999_v12, %v4999_v12 }
 0x31b   : > { %v5004_v0 = vsub.f32 %v4845_v21, %v2318_v6  ;;  %2427 = vadd.xlane.f32.xlu0 %v2381_v20 }
 0x31d   : > { %v2382_v36 = vmul.f32 %v5004_v0, %v5004_v0 }
 0x31f   : > { %2429 = vadd.xlane.f32.xlu1 %v2382_v36 }
 0x321   : > { %v2271_v5 = vpop.xlane.xlu0 %2270 }
 0x322   : > { %v2319_v60 = vmul.f32 0.0078125, %v2271_v5 }
 0x324   : > { %v5009_v1 = vsub.f32 %v4851_v42, %v2319_v60 }
 0x325   : > { %v2273_v32 = vpop.xlane.xlu1 %2272 }
 0x326   : > { %v2320_v22 = vmul.f32 0.0078125, %v2273_v32  ;;  %v2383_v23 = vmul.f32 %v5009_v1, %v5009_v1 }
 0x328   : > { %v5014_v13 = vsub.f32 %v4855_v11, %v2320_v22  ;;  %2431 = vadd.xlane.f32.xlu0 %v2383_v23 }
 0x32a   : > { %v2384_v21 = vmul.f32 %v5014_v13, %v5014_v13 }
 0x32c   : > { %2433 = vadd.xlane.f32.xlu1 %v2384_v21 }
 0x330   : > { %v2275_v4 = vpop.xlane.xlu0 %2274 }
 0x331   : > { %v2321_v51 = vmul.f32 0.0078125, %v2275_v4 }
 0x333   : > { %v5019_v16 = vsub.f32 %v4861_v25, %v2321_v51 }
 0x334   : > { %v2277_v42 = vpop.xlane.xlu1 %2276 }
 0x335   : > { %v2322_v7 = vmul.f32 0.0078125, %v2277_v42  ;;  %v2385_v17 = vmul.f32 %v5019_v16, %v5019_v16 }
 0x337   : > { %v5024_v3 = vsub.f32 %v4865_v44, %v2322_v7  ;;  %2435 = vadd.xlane.f32.xlu0 %v2385_v17 }
 0x339   : > { %v2386_v11 = vmul.f32 %v5024_v3, %v5024_v3 }
 0x33b   : > { %2437 = vadd.xlane.f32.xlu1 %v2386_v11 }
 0x33d   : > { %v2279_v31 = vpop.xlane.xlu0 %2278 }
 0x33e   : > { %v2323_v30 = vmul.f32 0.0078125, %v2279_v31 }
 0x340   : > { %v5029_v52 = vsub.f32 %v4871_v34, %v2323_v30 }
 0x341   : > { %v2281_v25 = vpop.xlane.xlu1 %2280 }
 0x342   : > { %v2324_v61 = vmul.f32 0.0078125, %v2281_v25  ;;  %v2387_v53 = vmul.f32 %v5029_v52, %v5029_v52 }
 0x344   : > { %v5034_v14 = vsub.f32 %v4875_v9, %v2324_v61  ;;  %2439 = vadd.xlane.f32.xlu0 %v2387_v53 }
 0x346   : > { %v2388_v44 = vmul.f32 %v5034_v14, %v5034_v14 }
 0x348   : > { %2441 = vadd.xlane.f32.xlu1 %v2388_v44 }
 0x349   : > { %v2283_v39 = vpop.xlane.xlu0 %2282 }
 0x34a   : > { %v2325_v57 = vmul.f32 0.0078125, %v2283_v39 }
 0x34c   : > { %v5039_v35 = vsub.f32 %v4881_v62, %v2325_v57 }
 0x34d   : > { %v2285_v34 = vpop.xlane.xlu1 %2284 }
 0x34e   : > { %v2326_v49 = vmul.f32 0.0078125, %v2285_v34  ;;  %v2389_v15 = vmul.f32 %v5039_v35, %v5039_v35 }
 0x350   : > { %v5044_v19 = vsub.f32 %v4886_v28, %v2326_v49  ;;  %2443 = vadd.xlane.f32.xlu0 %v2389_v15 }
 0x351   : > { %v2287_v9 = vpop.xlane.xlu0 %2286 }
 0x352   : > { %v2327_v29 = vmul.f32 0.0078125, %v2287_v9  ;;  %v2390_v8 = vmul.f32 %v5044_v19, %v5044_v19 }
 0x354   : > { %v5049_v33 = vsub.f32 %v4891_v26, %v2327_v29  ;;  %2445 = vadd.xlane.f32.xlu1 %v2390_v8 }
 0x355   : > { %v2289_v62 = vpop.xlane.xlu1 %2288 }
 0x356   : > { %v2328_v6 = vmul.f32 0.0078125, %v2289_v62  ;;  %v2391_v20 = vmul.f32 %v5049_v33, %v5049_v33 }
 0x358   : > { %v5054_v36 = vsub.f32 %v4896_v45, %v2328_v6  ;;  %2447 = vadd.xlane.f32.xlu0 %v2391_v20 }
 0x359   : > { %v2291_v28 = vpop.xlane.xlu0 %2290 }
 0x35a   : > { %v2329_v5 = vmul.f32 0.0078125, %v2291_v28  ;;  %v2392_v60 = vmul.f32 %v5054_v36, %v5054_v36 }
 0x35c   : > { %v5059_v32 = vsub.f32 %v4901_v41, %v2329_v5  ;;  %2449 = vadd.xlane.f32.xlu1 %v2392_v60 }
 0x35d   : > { %v2293_v26 = vpop.xlane.xlu1 %2292 }
 0x35e   : > { %v2330_v22 = vmul.f32 0.0078125, %v2293_v26  ;;  %v2393_v23 = vmul.f32 %v5059_v32, %v5059_v32 }
 0x360   : > { %v5064_v21 = vsub.f32 %v4906_v46, %v2330_v22  ;;  %2451 = vadd.xlane.f32.xlu0 %v2393_v23 }
 0x361   : > { %v2295_v45 = vpop.xlane.xlu0 %2294 }
 0x362   : > { %v2331_v4 = vmul.f32 0.0078125, %v2295_v45  ;;  %v2394_v51 = vmul.f32 %v5064_v21, %v5064_v21 }
 0x364   : > { %v5069_v42 = vsub.f32 %v4911_v59, %v2331_v4  ;;  %2453 = vadd.xlane.f32.xlu1 %v2394_v51 }
 0x365   : > { %v2297_v41 = vpop.xlane.xlu1 %2296 }
 0x366   : > { %v2332_v7 = vmul.f32 0.0078125, %v2297_v41  ;;  %v2395_v17 = vmul.f32 %v5069_v42, %v5069_v42 }
 0x368   : > { %v5074_v11 = vsub.f32 %v4916_v47, %v2332_v7  ;;  %2455 = vadd.xlane.f32.xlu0 %v2395_v17  ;;  %v5091_v17 = vld [vmem:[%s5285_s5] ss:$0 sm:$0xff] }
 0x369   : > { %v2299_v46 = vpop.xlane.xlu0 %2298 }
 0x36a   : > { %v2333_v31 = vmul.f32 0.0078125, %v2299_v46  ;;  %v2396_v30 = vmul.f32 %v5074_v11, %v5074_v11 }
 0x36c   : > { %v5079_v25 = vsub.f32 %v4924_v37, %v2333_v31  ;;  %2457 = vadd.xlane.f32.xlu1 %v2396_v30  ;;  %v5097_v30 = vld [vmem:[%s5286_s6] ss:$0 sm:$0xff] }
 0x36d   : > { %v2301_v59 = vpop.xlane.xlu1 %2300  ;;  %v2400_v61 = vpop.xlane.xlu0 %2399 }
 0x36e   : > { %v2334_v53 = vmul.f32 0.0078125, %v2301_v59  ;;  %v2397_v44 = vmul.f32 %v5079_v25, %v5079_v25  ;;  %v2463_v39 = vmul.f32 0.0078125, %v2400_v61 }
 0x370   : > { %v5084_v47 = vsub.f32 %v4936_v55, %v2334_v53  ;;  %2459 = vadd.xlane.f32.xlu0 %v2397_v44  ;;  %v2495_v57 = vadd.f32 1e-05, %v2463_v39 }
 0x371   : > { %v2402_v34 = vpop.xlane.xlu1 %2401  ;;  %v2404_v49 = vpop.xlane.xlu0 %2403 }
 0x372   : > { %v2398_v15 = vmul.f32 %v5084_v47, %v5084_v47  ;;  %3402 = vrsqrt.f32 %v2495_v57  ;;  %v2464_v37 = vmul.f32 0.0078125, %v2402_v34  ;;  %v2465_v9 = vmul.f32 0.0078125, %v2404_v49 }
 0x374   : > { %2461 = vadd.xlane.f32.xlu1 %v2398_v15  ;;  %v2496_v29 = vadd.f32 1e-05, %v2464_v37  ;;  %v2497_v8 = vadd.f32 1e-05, %v2465_v9 }
 0x375   : > { %v2406_v62 = vpop.xlane.xlu1 %2405  ;;  %v2408_v6 = vpop.xlane.xlu0 %2407 }
 0x376   : > { %3404 = vrsqrt.f32 %v2496_v29  ;;  %v2466_v20 = vmul.f32 0.0078125, %v2406_v62  ;;  %v2467_v28 = vmul.f32 0.0078125, %v2408_v6 }
 0x377   : > { %3406 = vrsqrt.f32 %v2497_v8 }
 0x378   : > { %v2498_v55 = vadd.f32 1e-05, %v2466_v20  ;;  %v2499_v5 = vadd.f32 1e-05, %v2467_v28 }
 0x379   : > { %v2410_v60 = vpop.xlane.xlu1 %2409  ;;  %v2412_v26 = vpop.xlane.xlu0 %2411 }
 0x37a   : > { %3408 = vrsqrt.f32 %v2498_v55  ;;  %v2468_v22 = vmul.f32 0.0078125, %v2410_v60  ;;  %v2469_v23 = vmul.f32 0.0078125, %v2412_v26 }
 0x37b   : > { %3410 = vrsqrt.f32 %v2499_v5 }
 0x37c   : > { %v2500_v45 = vadd.f32 1e-05, %v2468_v22  ;;  %v2501_v4 = vadd.f32 1e-05, %v2469_v23 }
 0x37d   : > { %v2414_v51 = vpop.xlane.xlu1 %2413 }
 0x37e   : > { %3412 = vrsqrt.f32 %v2500_v45  ;;  %v2470_v41 = vmul.f32 0.0078125, %v2414_v51 }
 0x37f   : > { %v3403_v7 = vpop.eup %3402  ;;  %3414 = vrsqrt.f32 %v2501_v4 }
 0x380   : > { %v2559_v46 = vmul.f32 %v3403_v7, %v4919_v2  ;;  %v2502_v31 = vadd.f32 1e-05, %v2470_v41  ;;  %v2416_v59 = vpop.xlane.xlu0 %2415 }
 0x381   : > { %v2471_v53 = vmul.f32 0.0078125, %v2416_v59 }
 0x382   : > { %v2598_v61 = vmul.f32 %v5091_v17, %v2559_v46  ;;  %3416 = vrsqrt.f32 %v2502_v31 }
 0x383   : > { %v3405_v44 = vpop.eup %3404  ;;  %v2503_v49 = vadd.f32 1e-05, %v2471_v53 }
 0x384   : > { %v3407_v39 = vpop.eup %3406  ;;  %v2637_v57 = vadd.f32 %v5097_v30, %v2598_v61  ;;  %v2560_v34 = vmul.f32 %v3405_v44, %v4930_v50  ;;  %v2418_v15 = vpop.xlane.xlu1 %2417 }
 0x385   : > { %v2561_v2 = vmul.f32 %v3407_v39, %v4933_v63  ;;  %3418 = vrsqrt.f32 %v2503_v49  ;;  %v2472_v9 = vmul.f32 0.0078125, %v2418_v15 }
 0x386   : > { %2669 = vst [vmem:[%s5105_s13] sm:$0xff] %v2637_v57  ;;  %v2599_v37 = vmul.f32 %v5091_v17, %v2560_v34 }
 0x387   : > { %v3409_v29 = vpop.eup %3408  ;;  %v2600_v8 = vmul.f32 %v5091_v17, %v2561_v2  ;;  %v2504_v6 = vadd.f32 1e-05, %v2472_v9 }
 0x388   : > { %v3411_v62 = vpop.eup %3410  ;;  %v2638_v50 = vadd.f32 %v5097_v30, %v2599_v37  ;;  %v2562_v63 = vmul.f32 %v3409_v29, %v4939_v24 }
 0x389   : > { %v2639_v20 = vadd.f32 %v5097_v30, %v2600_v8  ;;  %v2563_v28 = vmul.f32 %v3411_v62, %v4947_v10  ;;  %3420 = vrsqrt.f32 %v2504_v6 }
 0x38a   : > { %2670 = vst [vmem:[%s5105_s13 + $0x8] sm:$0xff] %v2638_v50  ;;  %v2601_v55 = vmul.f32 %v5091_v17, %v2562_v63 }
 0x38b   : > { %v3413_v5 = vpop.eup %3412  ;;  %2671 = vst [vmem:[%s5105_s13 + $0x10] sm:$0xff] %v2639_v20  ;;  %v2602_v60 = vmul.f32 %v5091_v17, %v2563_v28  ;;  %v2420_v10 = vpop.xlane.xlu0 %2419 }
 0x38c   : > { %v3415_v26 = vpop.eup %3414  ;;  %v2640_v22 = vadd.f32 %v5097_v30, %v2601_v55  ;;  %v2564_v24 = vmul.f32 %v3413_v5, %v4952_v56  ;;  %v2473_v51 = vmul.f32 0.0078125, %v2420_v10 }
 0x38d   : > { %v2641_v23 = vadd.f32 %v5097_v30, %v2602_v60  ;;  %v2565_v45 = vmul.f32 %v3415_v26, %v4957_v58 }
 0x38e   : > { %2672 = vst [vmem:[%s5105_s13 + $0x18] sm:$0xff] %v2640_v22  ;;  %v2603_v4 = vmul.f32 %v5091_v17, %v2564_v24  ;;  %v2505_v56 = vadd.f32 1e-05, %v2473_v51 }
 0x38f   : > { %v3417_v41 = vpop.eup %3416  ;;  %2673 = vst [vmem:[%s5105_s13 + $0x20] sm:$0xff] %v2641_v23  ;;  %v2604_v7 = vmul.f32 %v5091_v17, %v2565_v45  ;;  %v2422_v61 = vpop.xlane.xlu1 %2421 }
 0x390   : > { %v2642_v46 = vadd.f32 %v5097_v30, %v2603_v4  ;;  %v2566_v31 = vmul.f32 %v3417_v41, %v4962_v40  ;;  %3422 = vrsqrt.f32 %v2505_v56  ;;  %v2474_v53 = vmul.f32 0.0078125, %v2422_v61 }
 0x391   : > { %v2643_v59 = vadd.f32 %v5097_v30, %v2604_v7 }
 0x392   : > { %2674 = vst [vmem:[%s5105_s13 + $0x28] sm:$0xff] %v2642_v46  ;;  %v2605_v58 = vmul.f32 %v5091_v17, %v2566_v31  ;;  %v3419_v44 = vpop.eup %3418  ;;  %v2506_v34 = vadd.f32 1e-05, %v2474_v53 }
 0x393   : > { %2675 = vst [vmem:[%s5105_s13 + $0x30] sm:$0xff] %v2643_v59  ;;  %v2567_v57 = vmul.f32 %v3419_v44, %v4969_v18 }
 0x394   : > { %v2644_v39 = vadd.f32 %v5097_v30, %v2605_v58  ;;  %3424 = vrsqrt.f32 %v2506_v34 }
 0x395   : > { %v2606_v40 = vmul.f32 %v5091_v17, %v2567_v57 }
 0x396   : > { %2676 = vst [vmem:[%s5105_s13 + $0x38] sm:$0xff] %v2644_v39  ;;  %v3421_v49 = vpop.eup %3420 }
 0x397   : > { %v2645_v2 = vadd.f32 %v5097_v30, %v2606_v40  ;;  %v2568_v15 = vmul.f32 %v3421_v49, %v4974_v48 }
 0x399   : > { %2677 = vst [vmem:[%s5105_s13 + $0x40] sm:$0xff] %v2645_v2  ;;  %v2607_v37 = vmul.f32 %v5091_v17, %v2568_v15 }
 0x39a   : > { %v2424_v9 = vpop.xlane.xlu0 %2423 }
 0x39b   : > { %v2475_v29 = vmul.f32 0.0078125, %v2424_v9  ;;  %v2646_v8 = vadd.f32 %v5097_v30, %v2607_v37 }
 0x39d   : > { %v2507_v62 = vadd.f32 1e-05, %v2475_v29  ;;  %2678 = vst [vmem:[%s5105_s13 + $0x48] sm:$0xff] %v2646_v8  ;;  %v3423_v50 = vpop.eup %3422 }
 0x39e   : > { %v2426_v18 = vpop.xlane.xlu1 %2425  ;;  %v2569_v6 = vmul.f32 %v3423_v50, %v4979_v54 }
 0x39f   : > { %3426 = vrsqrt.f32 %v2507_v62  ;;  %v2476_v63 = vmul.f32 0.0078125, %v2426_v18 }
 0x3a0   : > { %v2608_v48 = vmul.f32 %v5091_v17, %v2569_v6 }
 0x3a1   : > { %v2508_v20 = vadd.f32 1e-05, %v2476_v63  ;;  %v3425_v28 = vpop.eup %3424 }
 0x3a2   : > { %v2647_v55 = vadd.f32 %v5097_v30, %v2608_v48  ;;  %v2570_v5 = vmul.f32 %v3425_v28, %v4984_v43 }
 0x3a3   : > { %3428 = vrsqrt.f32 %v2508_v20 }
 0x3a4   : > { %v2428_v60 = vpop.xlane.xlu0 %2427  ;;  %2679 = vst [vmem:[%s5105_s13 + $0x50] sm:$0xff] %v2647_v55  ;;  %v2609_v26 = vmul.f32 %v5091_v17, %v2570_v5 }
 0x3a5   : > { %v2477_v22 = vmul.f32 0.0078125, %v2428_v60 }
 0x3a6   : > { %v2648_v24 = vadd.f32 %v5097_v30, %v2609_v26 }
 0x3a7   : > { %v2509_v23 = vadd.f32 1e-05, %v2477_v22 }
 0x3a8   : > { %v2430_v45 = vpop.xlane.xlu1 %2429  ;;  %2680 = vst [vmem:[%s5105_s13 + $0x58] sm:$0xff] %v2648_v24 }
 0x3a9   : > { %3430 = vrsqrt.f32 %v2509_v23  ;;  %v2478_v54 = vmul.f32 0.0078125, %v2430_v45 }
 0x3ab   : > { %v2510_v4 = vadd.f32 1e-05, %v2478_v54 }
 0x3ac   : > { %v3427_v10 = vpop.eup %3426 }
 0x3ad   : > { %v2571_v51 = vmul.f32 %v3427_v10, %v4989_v38  ;;  %3432 = vrsqrt.f32 %v2510_v4 }
 0x3af   : > { %v2610_v43 = vmul.f32 %v5091_v17, %v2571_v51 }
 0x3b0   : > { %v3429_v41 = vpop.eup %3428 }
 0x3b1   : > { %v2649_v7 = vadd.f32 %v5097_v30, %v2610_v43  ;;  %v2572_v46 = vmul.f32 %v3429_v41, %v4994_v27  ;;  %v2432_v31 = vpop.xlane.xlu0 %2431 }
 0x3b2   : > { %v2479_v59 = vmul.f32 0.0078125, %v2432_v31 }
 0x3b3   : > { %2681 = vst [vmem:[%s5105_s13 + $0x60] sm:$0xff] %v2649_v7  ;;  %v2611_v56 = vmul.f32 %v5091_v17, %v2572_v46 }
 0x3b4   : > { %v2511_v58 = vadd.f32 1e-05, %v2479_v59 }
 0x3b5   : > { %v2650_v61 = vadd.f32 %v5097_v30, %v2611_v56  ;;  %v2434_v53 = vpop.xlane.xlu1 %2433 }
 0x3b6   : > { %v3431_v44 = vpop.eup %3430  ;;  %3434 = vrsqrt.f32 %v2511_v58  ;;  %v2480_v38 = vmul.f32 0.0078125, %v2434_v53 }
 0x3b7   : > { %2682 = vst [vmem:[%s5105_s13 + $0x68] sm:$0xff] %v2650_v61  ;;  %v2573_v39 = vmul.f32 %v3431_v44, %v4999_v12 }
 0x3b8   : > { %v2512_v57 = vadd.f32 1e-05, %v2480_v38 }
 0x3b9   : > { %v2612_v27 = vmul.f32 %v5091_v17, %v2573_v39 }
 0x3ba   : > { %v3433_v34 = vpop.eup %3432  ;;  %3436 = vrsqrt.f32 %v2512_v57 }
 0x3bb   : > { %v2651_v40 = vadd.f32 %v5097_v30, %v2612_v27  ;;  %v2574_v49 = vmul.f32 %v3433_v34, %v5004_v0 }
 0x3bd   : > { %2683 = vst [vmem:[%s5105_s13 + $0x70] sm:$0xff] %v2651_v40  ;;  %v2613_v2 = vmul.f32 %v5091_v17, %v2574_v49 }
 0x3bf   : > { %v2652_v15 = vadd.f32 %v5097_v30, %v2613_v2 }
 0x3c0   : > { %v2436_v37 = vpop.xlane.xlu0 %2435 }
 0x3c1   : > { %v2481_v9 = vmul.f32 0.0078125, %v2436_v37  ;;  %2684 = vst [vmem:[%s5105_s13 + $0x78] sm:$0xff] %v2652_v15 }
 0x3c3   : > { %v2513_v29 = vadd.f32 1e-05, %v2481_v9  ;;  %v3435_v12 = vpop.eup %3434 }
 0x3c4   : > { %v2438_v8 = vpop.xlane.xlu1 %2437  ;;  %v2575_v62 = vmul.f32 %v3435_v12, %v5009_v1 }
 0x3c5   : > { %3438 = vrsqrt.f32 %v2513_v29  ;;  %v2482_v18 = vmul.f32 0.0078125, %v2438_v8 }
 0x3c6   : > { %v2614_v50 = vmul.f32 %v5091_v17, %v2575_v62 }
 0x3c7   : > { %v2514_v0 = vadd.f32 1e-05, %v2482_v18  ;;  %v3437_v63 = vpop.eup %3436 }
 0x3c8   : > { %v2653_v6 = vadd.f32 %v5097_v30, %v2614_v50  ;;  %v2576_v20 = vmul.f32 %v3437_v63, %v5014_v13 }
 0x3c9   : > { %3440 = vrsqrt.f32 %v2514_v0 }
 0x3ca   : > { %2685 = vst [vmem:[%s5105_s13 + $0x80] sm:$0xff] %v2653_v6  ;;  %v2615_v48 = vmul.f32 %v5091_v17, %v2576_v20 }
 0x3cc   : > { %v2654_v28 = vadd.f32 %v5097_v30, %v2615_v48 }
 0x3cd   : > { %v2440_v55 = vpop.xlane.xlu0 %2439 }
 0x3ce   : > { %v2483_v5 = vmul.f32 0.0078125, %v2440_v55  ;;  %2686 = vst [vmem:[%s5105_s13 + $0x88] sm:$0xff] %v2654_v28 }
 0x3d0   : > { %v2515_v1 = vadd.f32 1e-05, %v2483_v5 }
 0x3d1   : > { %v2442_v60 = vpop.xlane.xlu1 %2441 }
 0x3d2   : > { %v3439_v26 = vpop.eup %3438  ;;  %3442 = vrsqrt.f32 %v2515_v1  ;;  %v2484_v22 = vmul.f32 0.0078125, %v2442_v60 }
 0x3d3   : > { %v2577_v24 = vmul.f32 %v3439_v26, %v5019_v16 }
 0x3d4   : > { %v2516_v23 = vadd.f32 1e-05, %v2484_v22 }
 0x3d5   : > { %v2616_v13 = vmul.f32 %v5091_v17, %v2577_v24 }
 0x3d6   : > { %v3441_v45 = vpop.eup %3440  ;;  %3444 = vrsqrt.f32 %v2516_v23 }
 0x3d7   : > { %v2655_v54 = vadd.f32 %v5097_v30, %v2616_v13  ;;  %v2578_v10 = vmul.f32 %v3441_v45, %v5024_v3 }
 0x3d9   : > { %2687 = vst [vmem:[%s5105_s13 + $0x90] sm:$0xff] %v2655_v54  ;;  %v2617_v4 = vmul.f32 %v5091_v17, %v2578_v10  ;;  %v2444_v51 = vpop.xlane.xlu0 %2443 }
 0x3da   : > { %v2485_v43 = vmul.f32 0.0078125, %v2444_v51 }
 0x3db   : > { %v2656_v41 = vadd.f32 %v5097_v30, %v2617_v4 }
 0x3dc   : > { %v2517_v7 = vadd.f32 1e-05, %v2485_v43 }
 0x3dd   : > { %2688 = vst [vmem:[%s5105_s13 + $0x98] sm:$0xff] %v2656_v41  ;;  %v2446_v16 = vpop.xlane.xlu1 %2445 }
 0x3de   : > { %3446 = vrsqrt.f32 %v2517_v7  ;;  %v2486_v46 = vmul.f32 0.0078125, %v2446_v16 }
 0x3df   : > { %v3443_v31 = vpop.eup %3442 }
 0x3e0   : > { %v2579_v56 = vmul.f32 %v3443_v31, %v5029_v52  ;;  %v2518_v59 = vadd.f32 1e-05, %v2486_v46 }
 0x3e1   : > { %v2448_v61 = vpop.xlane.xlu0 %2447 }
 0x3e2   : > { %v2618_v3 = vmul.f32 %v5091_v17, %v2579_v56  ;;  %3448 = vrsqrt.f32 %v2518_v59  ;;  %v2487_v58 = vmul.f32 0.0078125, %v2448_v61 }
 0x3e3   : > { %v3445_v53 = vpop.eup %3444 }
 0x3e4   : > { %v2657_v44 = vadd.f32 %v5097_v30, %v2618_v3  ;;  %v2580_v38 = vmul.f32 %v3445_v53, %v5034_v14  ;;  %v2519_v39 = vadd.f32 1e-05, %v2487_v58 }
 0x3e5   : > { %v2450_v57 = vpop.xlane.xlu1 %2449 }
 0x3e6   : > { %2689 = vst [vmem:[%s5105_s13 + $0xa0] sm:$0xff] %v2657_v44  ;;  %v2619_v27 = vmul.f32 %v5091_v17, %v2580_v38  ;;  %3450 = vrsqrt.f32 %v2519_v39  ;;  %v2488_v34 = vmul.f32 0.0078125, %v2450_v57 }
 0x3e8   : > { %v2658_v52 = vadd.f32 %v5097_v30, %v2619_v27  ;;  %v2520_v40 = vadd.f32 1e-05, %v2488_v34 }
 0x3e9   : > { %v2452_v49 = vpop.xlane.xlu0 %2451 }
 0x3ea   : > { %2690 = vst [vmem:[%s5105_s13 + $0xa8] sm:$0xff] %v2658_v52  ;;  %3452 = vrsqrt.f32 %v2520_v40  ;;  %v2489_v2 = vmul.f32 0.0078125, %v2452_v49 }
 0x3eb   : > { %v3447_v15 = vpop.eup %3446 }
 0x3ec   : > { %v2581_v37 = vmul.f32 %v3447_v15, %v5039_v35  ;;  %v2521_v9 = vadd.f32 1e-05, %v2489_v2 }
 0x3ed   : > { %v2454_v14 = vpop.xlane.xlu1 %2453 }
 0x3ee   : > { %v2620_v29 = vmul.f32 %v5091_v17, %v2581_v37  ;;  %3454 = vrsqrt.f32 %v2521_v9  ;;  %v2490_v12 = vmul.f32 0.0078125, %v2454_v14 }
 0x3ef   : > { %v3449_v8 = vpop.eup %3448 }
 0x3f0   : > { %v2659_v62 = vadd.f32 %v5097_v30, %v2620_v29  ;;  %v2582_v18 = vmul.f32 %v3449_v8, %v5044_v19  ;;  %v2522_v50 = vadd.f32 1e-05, %v2490_v12 }
 0x3f1   : > { %v2456_v0 = vpop.xlane.xlu0 %2455 }
 0x3f2   : > { %2691 = vst [vmem:[%s5105_s13 + $0xb0] sm:$0xff] %v2659_v62  ;;  %v2621_v63 = vmul.f32 %v5091_v17, %v2582_v18  ;;  %3456 = vrsqrt.f32 %v2522_v50  ;;  %v2491_v35 = vmul.f32 0.0078125, %v2456_v0 }
 0x3f3   : > { %v3451_v6 = vpop.eup %3450 }
 0x3f4   : > { %v2660_v20 = vadd.f32 %v5097_v30, %v2621_v63  ;;  %v2583_v48 = vmul.f32 %v3451_v6, %v5049_v33  ;;  %v2523_v28 = vadd.f32 1e-05, %v2491_v35 }
 0x3f5   : > { %v2458_v55 = vpop.xlane.xlu1 %2457 }
 0x3f6   : > { %2692 = vst [vmem:[%s5105_s13 + $0xb8] sm:$0xff] %v2660_v20  ;;  %v2622_v5 = vmul.f32 %v5091_v17, %v2583_v48  ;;  %3458 = vrsqrt.f32 %v2523_v28  ;;  %v2492_v19 = vmul.f32 0.0078125, %v2458_v55 }
 0x3f7   : > { %v3453_v1 = vpop.eup %3452 }
 0x3f8   : > { %v2661_v60 = vadd.f32 %v5097_v30, %v2622_v5  ;;  %v2584_v26 = vmul.f32 %v3453_v1, %v5054_v36  ;;  %v2524_v22 = vadd.f32 1e-05, %v2492_v19 }
 0x3f9   : > { %v2460_v24 = vpop.xlane.xlu0 %2459 }
 0x3fa   : > { %2693 = vst [vmem:[%s5105_s13 + $0xc0] sm:$0xff] %v2661_v60  ;;  %v2623_v23 = vmul.f32 %v5091_v17, %v2584_v26  ;;  %3460 = vrsqrt.f32 %v2524_v22  ;;  %v2493_v33 = vmul.f32 0.0078125, %v2460_v24 }
 0x3fb   : > { %v3455_v13 = vpop.eup %3454 }
 0x3fc   : > { %v2662_v45 = vadd.f32 %v5097_v30, %v2623_v23  ;;  %v2585_v54 = vmul.f32 %v3455_v13, %v5059_v32  ;;  %v2525_v10 = vadd.f32 1e-05, %v2493_v33 }
 0x3fd   : > { %v2462_v4 = vpop.xlane.xlu1 %2461 }
 0x3fe   : > { %2694 = vst [vmem:[%s5105_s13 + $0xc8] sm:$0xff] %v2662_v45  ;;  %v2624_v51 = vmul.f32 %v5091_v17, %v2585_v54  ;;  %3462 = vrsqrt.f32 %v2525_v10  ;;  %v2494_v36 = vmul.f32 0.0078125, %v2462_v4 }
 0x3ff   : > { %v3457_v43 = vpop.eup %3456 }
 0x400   : > { %v2663_v41 = vadd.f32 %v5097_v30, %v2624_v51  ;;  %v2586_v7 = vmul.f32 %v3457_v43, %v5064_v21  ;;  %v2526_v16 = vadd.f32 1e-05, %v2494_v36 }
 0x402   : > { %2695 = vst [vmem:[%s5105_s13 + $0xd0] sm:$0xff] %v2663_v41  ;;  %v2625_v46 = vmul.f32 %v5091_v17, %v2586_v7  ;;  %3464 = vrsqrt.f32 %v2526_v16 }
 0x403   : > { %v3459_v32 = vpop.eup %3458 }
 0x404   : > { %v2664_v31 = vadd.f32 %v5097_v30, %v2625_v46  ;;  %v2587_v56 = vmul.f32 %v3459_v32, %v5069_v42 }
 0x406   : > { %2696 = vst [vmem:[%s5105_s13 + $0xd8] sm:$0xff] %v2664_v31  ;;  %v2626_v59 = vmul.f32 %v5091_v17, %v2587_v56 }
 0x407   : > { %v3461_v61 = vpop.eup %3460 }
 0x408   : > { %v2665_v21 = vadd.f32 %v5097_v30, %v2626_v59  ;;  %v2588_v3 = vmul.f32 %v3461_v61, %v5074_v11 }
 0x40a   : > { %2697 = vst [vmem:[%s5105_s13 + $0xe0] sm:$0xff] %v2665_v21  ;;  %v2627_v58 = vmul.f32 %v5091_v17, %v2588_v3 }
 0x40b   : > { %v3463_v53 = vpop.eup %3462 }
 0x40c   : > { %v2666_v44 = vadd.f32 %v5097_v30, %v2627_v58  ;;  %v2589_v42 = vmul.f32 %v3463_v53, %v5079_v25 }
 0x40e   : > { %2698 = vst [vmem:[%s5105_s13 + $0xe8] sm:$0xff] %v2666_v44  ;;  %v2628_v38 = vmul.f32 %v5091_v17, %v2589_v42 }
 0x40f   : > { %v3465_v39 = vpop.eup %3464 }
 0x410   : > { %v2667_v57 = vadd.f32 %v5097_v30, %v2628_v38  ;;  %v2590_v27 = vmul.f32 %v3465_v39, %v5084_v47 }
 0x412   : > { %2699 = vst [vmem:[%s5105_s13 + $0xf0] sm:$0xff] %v2667_v57  ;;  %v2629_v11 = vmul.f32 %v5091_v17, %v2590_v27 }
 0x414   : > { %v2668_v25 = vadd.f32 %v5097_v30, %v2629_v11 }
 0x416   : > { %2700 = vst [vmem:[%s5105_s13 + $0xf8] sm:$0xff] %v2668_v25 }
 0x417   : > { %3591 = shalt.err (!%p3588_p9)
}
 0x418   : > { %s3592_s23 = scalar_lea.hbm %s5233_s19, 4096  ;;  %s3596_s21 = scalar_lea.hbm %s5287_s7, 8192 }
 0x419   : > { %p3593_p13 = scmp.ne.s32.totalorder %s5233_s19, %s3592_s23  ;;  %p3597_p4 = scmp.lt.s32.totalorder %s5233_s19, %s5287_s7 }
 0x41a   : > { %p3598_p8 = scmp.lt.s32.totalorder %s3596_s21, %s3592_s23 }
 0x41b   : > { %p3594_p5 = pnand %p3593_p13, %p5335_p10 }
 0x41c   : > { %p3599_p7 = por %p3598_p8, %p3597_p4 }
 0x41d   : > { %p3595_p0 = pneg %p3594_p5 }
 0x41f   : > { %p3600_p11 = pnand %p3599_p7, %p3595_p0 }
 0x421   : > { %3603 = shalt.err (!%p3600_p11)
}
 0x422   : > { %s3659_s1 = smov 128   ;;  %s3660_s18 = smov 8  }
 0x423   : > { %3128 = dma.vmem_to_hbm [thread:$0]  (%p5335_p10), %s5235_s14, 4096, %s5233_s19, %s2702_s30, %s3659_s1, %s3659_s1, %s3660_s18  }
 0x424 PF: > { %s2730_s9 = sand.u32 1, %s3634_s24   ;;  %p5336_p1 = scmp.ne.s32.totalorder %s5294_s8, 0 }
 0x425   : > { %p5337_p2 = scmp.ge.s32.totalorder %s3646_s27, 2  ;;  %s2731_s28 = scalar_lea.sflag [#allocation4], %s2730_s9 }
 0x427   : > { %p3142_p6 = pnand %p5337_p2, %p5336_p1 }
 0x429   : > { %p3143_p12 = pneg %p3142_p6 }
 0x42b   : > { %3629 = dma.done.wait (%p3143_p12), %s2731_s28, 4096  }
 0x42c   : > { %3631 = vsyncadd (%p3143_p12), %s2731_s28, 4294963200  ;;  %p21_p3 = scmp.ge.s32.totalorder %s3773_s10, 4   ;;  %s5338_s24 = smov %s3638_s25 }
 0x42d   : > { %s5339_s25 = smov %s3642_s26  ;;  %s5340_s26 = smov %s3782_s15 }
 0x42e   : > { %s5341_s27 = smov %s3773_s10  ;;  %23 = sbr.rel (!%p21_p3) target bundleno = 8 (0x8), region = 101 }
 0x433   :  { %2736 = vsyncpa [#allocation3], 1 }
 0x434   :  { %2738 = vsyncpa [#allocation3 + $0x1], 1 }
 0x435   :  { %2739 = vsyncpa [#allocation6], 1 }
 0x436   :  { %2740 = vsyncpa [#allocation4], 1 }
 0x437   :  { %2742 = vsyncpa [#allocation4 + $0x1], 1 }

</bundles_post_ra>
